<compile_context>
chip_gen: v7x
topology: tpu7x:2x2x1
jax: 0.10.0
libtpu: 0.0.40
codegen_flags: <defaults>
</compile_context>

<pallas_src>
import functools

import jax
import jax.numpy as jnp
import numpy as np
from jax.experimental import pallas as pl
from jax.experimental.pallas import tpu as pltpu


# --------------------------------------------------------------------------
# helpers
# --------------------------------------------------------------------------
def _bilinear_matrix(in_h, in_w, out_h, out_w):
    """(in_h*in_w, out_h*out_w) matrix implementing
    F.interpolate(mode='bilinear', align_corners=False) as a right matmul on
    flattened (channels, h*w) maps.  Built once with numpy (static shapes)."""
    def weights_1d(n_in, n_out):
        m = np.zeros((n_in, n_out), np.float32)
        if n_in == n_out:
            np.fill_diagonal(m, 1.0)
            return m
        scale = n_in / n_out                      # PyTorch: in/out (no align)
        for o in range(n_out):
            src = max((o + 0.5) * scale - 0.5, 0.0)
            i0 = min(int(np.floor(src)), n_in - 1)
            i1 = min(i0 + 1, n_in - 1)
            l1 = src - i0
            m[i0, o] += 1.0 - l1
            m[i1, o] += l1
        return m

    wy = weights_1d(in_h, out_h)                  # (in_h, out_h)
    wx = weights_1d(in_w, out_w)                  # (in_w, out_w)
    u = np.einsum("yY,xX->yxYX", wy, wx).reshape(in_h * in_w, out_h * out_w)
    return jnp.asarray(u)


def _store_shifted_tap(tap_ref, row0, a, xx, dy, dx, h, w):
    """tap_ref[row0:row0+R, y*w + x] = a[:, (y+dy)*w + (x+dx)]  (0 outside).

    `a` is an (R, h*w) map (channels on sublanes, flat spatial on lanes),
    `xx` is a (1, h*w) int32 map of the x coordinate (lane index mod w).
    The shift is realized with two static lane-range stores plus an edge mask,
    so only plain slice / masked-store ops are emitted (no roll / concat)."""
    rows = a.shape[0]
    hw = h * w
    s = dy * w + dx
    if dx != 0:
        # zero source columns whose x coordinate would wrap across a row edge
        valid = (xx - dx >= 0) & (xx - dx < w)
        a = jnp.where(valid, a, 0.0)
    r0, r1 = row0, row0 + rows
    if s > 0:
        tap_ref[r0:r1, 0:hw - s] = a[:, s:hw]
        tap_ref[r0:r1, hw - s:hw] = jnp.zeros((rows, s), jnp.float32)
    elif s < 0:
        tap_ref[r0:r1, -s:hw] = a[:, 0:hw + s]
        tap_ref[r0:r1, 0:-s] = jnp.zeros((rows, -s), jnp.float32)
    else:
        tap_ref[r0:r1, :] = a


# --------------------------------------------------------------------------
# fused ESA kernel (one grid step == one batch element)
# --------------------------------------------------------------------------
def _esa_kernel(x_ref, w1_ref, b1_ref, wd_ref, bd_ref, wf_ref, bf_ref,
                wm_ref, bm_ref, w3_ref, b3_ref, w3p_ref, b3p_ref,
                up_ref, w4_ref, b4_ref, o_ref,
                tap_a_ref, tap_b_ref, pool_ref,
                *, H, W, PH, PW, f, dilations):
    F32 = jnp.float32
    HW = H * W
    PHW = PH * PW

    x = x_ref[0]                                                    # (C, HW)

    # ---- conv1 (1x1, n_feats -> f): channel matmul, lane-dense over HW ----
    c1 = jnp.dot(w1_ref[...], x, preferred_element_type=F32) + b1_ref[...]

    # ---- conv_f (1x1) on c1_ ----
    cf = jnp.dot(wf_ref[...], c1, preferred_element_type=F32) + bf_ref[...]

    # ---- dconv1 + dconv2 + dconv3 (3x3, dilation 1/3/5), fused ----
    xx_img = jax.lax.broadcasted_iota(jnp.int32, (1, HW), 1) % W
    t = 0
    for d in dilations:
        for ky in range(3):
            for kx in range(3):
                _store_shifted_tap(tap_a_ref, t * f, c1, xx_img,
                                   (ky - 1) * d, (kx - 1) * d, H, W)
                t += 1
    c = (jnp.dot(wd_ref[...], tap_a_ref[...], preferred_element_type=F32)
         + bd_ref[...])                                             # (f, HW)

    # ---- max_pool2d(kernel=7, stride=3): explicit 7x7 window maxima ----
    for oy in range(PH):
        for ox in range(PW):
            acc = None
            for ky in range(7):
                start = (3 * oy + ky) * W + 3 * ox
                seg = jnp.max(c[:, start:start + 7], axis=1, keepdims=True)
                acc = seg if acc is None else jnp.maximum(acc, seg)
            j = oy * PW + ox
            pool_ref[:, j:j + 1] = acc
    v = pool_ref[...]                                               # (f, PHW)

    # ---- conv_max -> relu -> conv3 -> relu -> conv3_  (3x3, pad 1) ----
    xx_small = jax.lax.broadcasted_iota(jnp.int32, (1, PHW), 1) % PW

    def conv3x3(a, w_r, b_r):
        t2 = 0
        for ky in range(3):
            for kx in range(3):
                _store_shifted_tap(tap_b_ref, t2 * f, a, xx_small,
                                   ky - 1, kx - 1, PH, PW)
                t2 += 1
        return (jnp.dot(w_r[...], tap_b_ref[...], preferred_element_type=F32)
                + b_r[...])

    v = jnp.maximum(conv3x3(v, wm_ref, bm_ref), 0.0)
    v = jnp.maximum(conv3x3(v, w3_ref, b3_ref), 0.0)
    v = conv3x3(v, w3p_ref, b3p_ref)                                # (f, PHW)

    # ---- bilinear upsample to (H, W): one (f, PHW) @ (PHW, HW) matmul ----
    c_up = jnp.dot(v, up_ref[...], preferred_element_type=F32)      # (f, HW)

    # ---- conv4 (1x1, f -> n_feats) + sigmoid gate ----
    c4 = (jnp.dot(w4_ref[...], c_up + cf, preferred_element_type=F32)
          + b4_ref[...])                                            # (C, HW)
    o_ref[0] = x * jax.nn.sigmoid(c4)


# --------------------------------------------------------------------------
# wrapper: weight layout prep + pallas_call
# --------------------------------------------------------------------------
def esa_forward(x, params):
    B, C, H, W = x.shape
    f = params["conv1_w"].shape[0]
    assert H >= 7 and W >= 7, "max_pool2d(kernel=7) needs H, W >= 7"
    HW = H * W
    PH = (H - 7) // 3 + 1
    PW = (W - 7) // 3 + 1
    PHW = PH * PW
    dilations = (1, 3, 5)

    # ---- weight layout prep (pure reshapes / transposes, once per call) ----
    w1 = params["conv1_w"].reshape(f, C)
    b1 = params["conv1_b"].reshape(f, 1)
    wd = jnp.stack([params["dconv1_w"], params["dconv2_w"], params["dconv3_w"]])
    wd = wd.transpose(1, 0, 3, 4, 2).reshape(f, 27 * f)   # [o, (d, ky, kx, c)]
    bd = (params["dconv1_b"] + params["dconv2_b"]
          + params["dconv3_b"]).reshape(f, 1)
    wf = params["conv_f_w"].reshape(f, f)
    bf = params["conv_f_b"].reshape(f, 1)

    def w9(w):                                  # (o,c,ky,kx) -> (o, (ky,kx,c))
        return w.transpose(0, 2, 3, 1).reshape(f, 9 * f)

    wm, bm = w9(params["conv_max_w"]), params["conv_max_b"].reshape(f, 1)
    w3, b3 = w9(params["conv3_w"]), params["conv3_b"].reshape(f, 1)
    w3p, b3p = w9(params["conv3p_w"]), params["conv3p_b"].reshape(f, 1)
    up = _bilinear_matrix(PH, PW, H, W)                   # (PHW, HW) constant
    w4 = params["conv4_w"].reshape(C, f)
    b4 = params["conv4_b"].reshape(C, 1)

    x_flat = x.reshape(B, C, HW)

    kernel = functools.partial(_esa_kernel, H=H, W=W, PH=PH, PW=PW, f=f,
                               dilations=dilations)

    def bcast(shape):                           # same (weight) block every step
        n = len(shape)
        return pl.BlockSpec(shape, lambda b, n=n: (0,) * n)

    out_flat = pl.pallas_call(
        kernel,
        out_shape=jax.ShapeDtypeStruct((B, C, HW), jnp.float32),
        grid=(B,),
        in_specs=[
            pl.BlockSpec((1, C, HW), lambda b: (b, 0, 0)),   # x (per batch)
            bcast((f, C)), bcast((f, 1)),                    # conv1
            bcast((f, 27 * f)), bcast((f, 1)),               # dconv1/2/3 stacked
            bcast((f, f)), bcast((f, 1)),                    # conv_f
            bcast((f, 9 * f)), bcast((f, 1)),                # conv_max
            bcast((f, 9 * f)), bcast((f, 1)),                # conv3
            bcast((f, 9 * f)), bcast((f, 1)),                # conv3_
            bcast((PHW, HW)),                                # bilinear matrix
            bcast((C, f)), bcast((C, 1)),                    # conv4
        ],
        out_specs=pl.BlockSpec((1, C, HW), lambda b: (b, 0, 0)),
        scratch_shapes=[
            pltpu.VMEM((27 * f, HW), jnp.float32),   # stacked dilated-conv taps
            pltpu.VMEM((9 * f, PHW), jnp.float32),   # stacked 3x3 taps (pooled)
            pltpu.VMEM((f, PHW), jnp.float32),       # pooled map
        ],
        compiler_params=pltpu.CompilerParams(
            dimension_semantics=("parallel",)),
    )(x_flat, w1, b1, wd, bd, wf, bf, wm, bm, w3, b3, w3p, b3p, up, w4, b4)

    return out_flat.reshape(B, C, H, W)


# --------------------------------------------------------------------------
# pure-JAX / XLA reference (mirrors the torch forward)
# --------------------------------------------------------------------------
def _conv2d_ref(x, w, b, *, padding, dilation=1):
    out = jax.lax.conv_general_dilated(
        x, w, window_strides=(1, 1),
        padding=((padding, padding), (padding, padding)),
        rhs_dilation=(dilation, dilation),
        dimension_numbers=("NCHW", "OIHW", "NCHW"),
        precision=jax.lax.Precision.HIGHEST)
    return out + b[None, :, None, None]


def esa_reference(x, p):
    H, W = x.shape[2], x.shape[3]
    c1_ = _conv2d_ref(x, p["conv1_w"], p["conv1_b"], padding=0)
    c1 = _conv2d_ref(c1_, p["dconv1_w"], p["dconv1_b"], padding=1, dilation=1)
    c2 = _conv2d_ref(c1_, p["dconv2_w"], p["dconv2_b"], padding=3, dilation=3)
    c3 = _conv2d_ref(c1_, p["dconv3_w"], p["dconv3_b"], padding=5, dilation=5)
    c = c1 + c2 + c3
    c = jax.lax.reduce_window(c, jnp.array(-jnp.inf, c.dtype), jax.lax.max,
                              (1, 1, 7, 7), (1, 1, 3, 3), "VALID")
    c = jax.nn.relu(_conv2d_ref(c, p["conv_max_w"], p["conv_max_b"], padding=1))
    c = jax.nn.relu(_conv2d_ref(c, p["conv3_w"], p["conv3_b"], padding=1))
    c = _conv2d_ref(c, p["conv3p_w"], p["conv3p_b"], padding=1)
    # bilinear upsample, align_corners=False (PyTorch half-pixel convention)
    B, f, ph, pw = c.shape
    u = _bilinear_matrix(ph, pw, H, W)
    c = jnp.einsum("bcp,pq->bcq", c.reshape(B, f, ph * pw), u,
                   precision=jax.lax.Precision.HIGHEST).reshape(B, f, H, W)
    cf = _conv2d_ref(c1_, p["conv_f_w"], p["conv_f_b"], padding=0)
    c4 = _conv2d_ref(c + cf, p["conv4_w"], p["conv4_b"], padding=0)
    return x * jax.nn.sigmoid(c4)


# --------------------------------------------------------------------------
# deterministic parameter init (shapes from ESA.__init__; all convs have bias)
# --------------------------------------------------------------------------
def init_esa_params(key, n_feats):
    f = n_feats // 4
    layers = {
        "conv1":    (f, n_feats, 1),
        "dconv1":   (f, f, 3),
        "dconv2":   (f, f, 3),
        "dconv3":   (f, f, 3),
        "conv_f":   (f, f, 1),
        "conv_max": (f, f, 3),
        "conv3":    (f, f, 3),
        "conv3p":   (f, f, 3),      # `conv3_` in the torch module
        "conv4":    (n_feats, f, 1),
    }
    params = {}
    keys = jax.random.split(key, 2 * len(layers))
    for i, (name, (co, ci, k)) in enumerate(layers.items()):
        params[f"{name}_w"] = 0.1 * jax.random.normal(
            keys[2 * i], (co, ci, k, k), jnp.float32)
        params[f"{name}_b"] = 0.1 * jax.random.normal(
            keys[2 * i + 1], (co,), jnp.float32)
    return params


# --------------------------------------------------------------------------
if __name__ == "__main__":
    B, n_feats, H, W = 2, 32, 16, 16          # f = n_feats // 4 = 8

    key = jax.random.PRNGKey(0)
    kx, kp = jax.random.split(key)
    x = jax.random.normal(kx, (B, n_feats, H, W), jnp.float32)
    params = init_esa_params(kp, n_feats)

    out = jax.block_until_ready(jax.jit(esa_forward)(x, params))
    assert out.shape == (B, n_feats, H, W), out.shape

    ref = jax.block_until_ready(jax.jit(esa_reference)(x, params))
    # tolerance accounts for possible MXU f32 multi-pass rounding differences
    np.testing.assert_allclose(np.asarray(out), np.asarray(ref),
                               rtol=1e-2, atol=1e-2)
    print("KERNEL_OK")
</pallas_src>

<mosaic_0001>
module attributes {stable_mosaic.version = 11 : i64} {
  func.func @_esa_kernel(%arg0: i32, %arg1: memref<1x32x256xf32, #tpu.memory_space<vmem>>, %arg2: memref<8x32xf32, #tpu.memory_space<vmem>>, %arg3: memref<8x1xf32, #tpu.memory_space<vmem>>, %arg4: memref<8x216xf32, #tpu.memory_space<vmem>>, %arg5: memref<8x1xf32, #tpu.memory_space<vmem>>, %arg6: memref<8x8xf32, #tpu.memory_space<vmem>>, %arg7: memref<8x1xf32, #tpu.memory_space<vmem>>, %arg8: memref<8x72xf32, #tpu.memory_space<vmem>>, %arg9: memref<8x1xf32, #tpu.memory_space<vmem>>, %arg10: memref<8x72xf32, #tpu.memory_space<vmem>>, %arg11: memref<8x1xf32, #tpu.memory_space<vmem>>, %arg12: memref<8x72xf32, #tpu.memory_space<vmem>>, %arg13: memref<8x1xf32, #tpu.memory_space<vmem>>, %arg14: memref<16x256xf32, #tpu.memory_space<vmem>>, %arg15: memref<32x8xf32, #tpu.memory_space<vmem>>, %arg16: memref<32x1xf32, #tpu.memory_space<vmem>>, %arg17: memref<1x32x256xf32, #tpu.memory_space<vmem>>, %arg18: memref<216x256xf32, #tpu.memory_space<vmem>>, %arg19: memref<72x16xf32, #tpu.memory_space<vmem>>, %arg20: memref<8x16xf32, #tpu.memory_space<vmem>>) attributes {dimension_semantics = [#tpu.dimension_semantics<parallel>], iteration_bounds = array<i64: 2>, scalar_prefetch = 0 : i64, scratch_operands = 3 : i64, tpu.core_type = #tpu.core_type<tc>, window_params = [{transform_indices = @transform_0, window_bounds = array<i64: 1, 32, 256>}, {pipeline_mode = #tpu.pipeline_mode<synchronous>, transform_indices = @transform_1, window_bounds = array<i64: 8, 32>}, {pipeline_mode = #tpu.pipeline_mode<synchronous>, transform_indices = @transform_2, window_bounds = array<i64: 8, 1>}, {pipeline_mode = #tpu.pipeline_mode<synchronous>, transform_indices = @transform_3, window_bounds = array<i64: 8, 216>}, {pipeline_mode = #tpu.pipeline_mode<synchronous>, transform_indices = @transform_4, window_bounds = array<i64: 8, 1>}, {pipeline_mode = #tpu.pipeline_mode<synchronous>, transform_indices = @transform_5, window_bounds = array<i64: 8, 8>}, {pipeline_mode = #tpu.pipeline_mode<synchronous>, transform_indices = @transform_6, window_bounds = array<i64: 8, 1>}, {pipeline_mode = #tpu.pipeline_mode<synchronous>, transform_indices = @transform_7, window_bounds = array<i64: 8, 72>}, {pipeline_mode = #tpu.pipeline_mode<synchronous>, transform_indices = @transform_8, window_bounds = array<i64: 8, 1>}, {pipeline_mode = #tpu.pipeline_mode<synchronous>, transform_indices = @transform_9, window_bounds = array<i64: 8, 72>}, {pipeline_mode = #tpu.pipeline_mode<synchronous>, transform_indices = @transform_10, window_bounds = array<i64: 8, 1>}, {pipeline_mode = #tpu.pipeline_mode<synchronous>, transform_indices = @transform_11, window_bounds = array<i64: 8, 72>}, {pipeline_mode = #tpu.pipeline_mode<synchronous>, transform_indices = @transform_12, window_bounds = array<i64: 8, 1>}, {pipeline_mode = #tpu.pipeline_mode<synchronous>, transform_indices = @transform_13, window_bounds = array<i64: 16, 256>}, {pipeline_mode = #tpu.pipeline_mode<synchronous>, transform_indices = @transform_14, window_bounds = array<i64: 32, 8>}, {pipeline_mode = #tpu.pipeline_mode<synchronous>, transform_indices = @transform_15, window_bounds = array<i64: 32, 1>}, {transform_indices = @transform_16, window_bounds = array<i64: 1, 32, 256>}]} {
    %c0 = arith.constant 0 : index
    %c0_0 = arith.constant 0 : index
    %c0_1 = arith.constant 0 : index
    %0 = vector.load %arg1[%c0, %c0_0, %c0_1] : memref<1x32x256xf32, #tpu.memory_space<vmem>>, vector<1x32x256xf32>
    %1 = vector.shape_cast %0 : vector<1x32x256xf32> to vector<32x256xf32>
    %c0_2 = arith.constant 0 : index
    %c0_3 = arith.constant 0 : index
    %2 = vector.load %arg2[%c0_2, %c0_3] : memref<8x32xf32, #tpu.memory_space<vmem>>, vector<8x32xf32>
    %cst = arith.constant dense<0.000000e+00> : vector<8x256xf32>
    %3 = tpu.matmul %2, %1, %cst {dimension_numbers = #tpu.dot_dimension_numbers<[1], [0], [0], [1], [0, 0, 1, 1], [], []>} : vector<8x32xf32>, vector<32x256xf32>, vector<8x256xf32> -> vector<8x256xf32>
    %c0_4 = arith.constant 0 : index
    %c0_5 = arith.constant 0 : index
    %4 = vector.load %arg3[%c0_4, %c0_5] : memref<8x1xf32, #tpu.memory_space<vmem>>, vector<8x1xf32>
    %5 = vector.broadcast %4 : vector<8x1xf32> to vector<8x256xf32>
    %6 = arith.addf %3, %5 : vector<8x256xf32>
    %c0_6 = arith.constant 0 : index
    %c0_7 = arith.constant 0 : index
    %7 = vector.load %arg6[%c0_6, %c0_7] : memref<8x8xf32, #tpu.memory_space<vmem>>, vector<8x8xf32>
    %cst_8 = arith.constant dense<0.000000e+00> : vector<8x256xf32>
    %8 = tpu.matmul %7, %6, %cst_8 {dimension_numbers = #tpu.dot_dimension_numbers<[1], [0], [0], [1], [0, 0, 1, 1], [], []>} : vector<8x8xf32>, vector<8x256xf32>, vector<8x256xf32> -> vector<8x256xf32>
    %c0_9 = arith.constant 0 : index
    %c0_10 = arith.constant 0 : index
    %9 = vector.load %arg7[%c0_9, %c0_10] : memref<8x1xf32, #tpu.memory_space<vmem>>, vector<8x1xf32>
    %10 = vector.broadcast %9 : vector<8x1xf32> to vector<8x256xf32>
    %11 = arith.addf %8, %10 : vector<8x256xf32>
    %12 = tpu.iota {dimensions = array<i32: 1>} : vector<1x256xi32>
    %c16_i32 = arith.constant 16 : i32
    %c0_i32 = arith.constant 0 : i32
    %13 = arith.cmpi eq, %c16_i32, %c0_i32 : i32
    %c1_i32 = arith.constant 1 : i32
    %14 = arith.select %13, %c1_i32, %c16_i32 : i32
    %15 = vector.broadcast %14 : i32 to vector<1x256xi32>
    %16 = arith.remsi %12, %15 : vector<1x256xi32>
    %c0_i32_11 = arith.constant 0 : i32
    %17 = vector.broadcast %c0_i32_11 : i32 to vector<1x256xi32>
    %18 = arith.cmpi ne, %16, %17 : vector<1x256xi32>
    %c0_i32_12 = arith.constant 0 : i32
    %19 = vector.broadcast %c0_i32_12 : i32 to vector<1x256xi32>
    %20 = arith.cmpi slt, %16, %19 : vector<1x256xi32>
    %c0_i32_13 = arith.constant 0 : i32
    %21 = arith.cmpi slt, %14, %c0_i32_13 : i32
    %22 = vector.broadcast %21 : i1 to vector<1x256xi1>
    %23 = vector.broadcast %22 : vector<1x256xi1> to vector<1x256xi1>
    %24 = arith.xori %20, %23 : vector<1x256xi1>
    %25 = arith.andi %24, %18 : vector<1x256xi1>
    %26 = vector.broadcast %14 : i32 to vector<1x256xi32>
    %27 = arith.addi %16, %26 : vector<1x256xi32>
    %28 = arith.select %25, %27, %16 : vector<1x256xi1>, vector<1x256xi32>
    %c-1_i32 = arith.constant -1 : i32
    %29 = vector.broadcast %c-1_i32 : i32 to vector<1x256xi32>
    %30 = arith.subi %28, %29 : vector<1x256xi32>
    %c0_i32_14 = arith.constant 0 : i32
    %31 = vector.broadcast %c0_i32_14 : i32 to vector<1x256xi32>
    %32 = arith.cmpi sge, %30, %31 : vector<1x256xi32>
    %c-1_i32_15 = arith.constant -1 : i32
    %33 = vector.broadcast %c-1_i32_15 : i32 to vector<1x256xi32>
    %34 = arith.subi %28, %33 : vector<1x256xi32>
    %c16_i32_16 = arith.constant 16 : i32
    %35 = vector.broadcast %c16_i32_16 : i32 to vector<1x256xi32>
    %36 = arith.cmpi slt, %34, %35 : vector<1x256xi32>
    %37 = arith.andi %32, %36 : vector<1x256xi1>
    %cst_17 = arith.constant 0.000000e+00 : f32
    %38 = vector.shape_cast %37 : vector<1x256xi1> to vector<1x256xi1>
    %39 = vector.broadcast %38 : vector<1x256xi1> to vector<8x256xi1>
    %40 = vector.broadcast %cst_17 : f32 to vector<8x256xf32>
    %41 = arith.select %39, %6, %40 : vector<8x256xi1>, vector<8x256xf32>
    %42 = vector.extract_strided_slice %41 {offsets = [0, 0], sizes = [8, 239], strides = [1, 1]} : vector<8x256xf32> to vector<8x239xf32>
    %c0_18 = arith.constant 0 : index
    %c17 = arith.constant 17 : index
    %43 = vector.load %arg18[%c0_18, %c17] : memref<216x256xf32, #tpu.memory_space<vmem>>, vector<8x239xf32>
    tpu.vector_store %arg18[%c0_18, %c17], %42 {strides = array<i32>} : memref<216x256xf32, #tpu.memory_space<vmem>>, vector<8x239xf32>,
    %cst_19 = arith.constant 0.000000e+00 : f32
    %44 = vector.broadcast %cst_19 : f32 to vector<8x17xf32>
    %c0_20 = arith.constant 0 : index
    %c0_21 = arith.constant 0 : index
    %45 = vector.load %arg18[%c0_20, %c0_21] : memref<216x256xf32, #tpu.memory_space<vmem>>, vector<8x17xf32>
    tpu.vector_store %arg18[%c0_20, %c0_21], %44 {strides = array<i32>} : memref<216x256xf32, #tpu.memory_space<vmem>>, vector<8x17xf32>,
    %46 = vector.extract_strided_slice %6 {offsets = [0, 0], sizes = [8, 240], strides = [1, 1]} : vector<8x256xf32> to vector<8x240xf32>
    %c8 = arith.constant 8 : index
    %c16 = arith.constant 16 : index
    %47 = vector.load %arg18[%c8, %c16] : memref<216x256xf32, #tpu.memory_space<vmem>>, vector<8x240xf32>
    tpu.vector_store %arg18[%c8, %c16], %46 {strides = array<i32>} : memref<216x256xf32, #tpu.memory_space<vmem>>, vector<8x240xf32>,
    %cst_22 = arith.constant 0.000000e+00 : f32
    %48 = vector.broadcast %cst_22 : f32 to vector<8x16xf32>
    %c8_23 = arith.constant 8 : index
    %c0_24 = arith.constant 0 : index
    %49 = vector.load %arg18[%c8_23, %c0_24] : memref<216x256xf32, #tpu.memory_space<vmem>>, vector<8x16xf32>
    tpu.vector_store %arg18[%c8_23, %c0_24], %48 {strides = array<i32>} : memref<216x256xf32, #tpu.memory_space<vmem>>, vector<8x16xf32>,
    %c1_i32_25 = arith.constant 1 : i32
    %50 = vector.broadcast %c1_i32_25 : i32 to vector<1x256xi32>
    %51 = arith.subi %28, %50 : vector<1x256xi32>
    %c0_i32_26 = arith.constant 0 : i32
    %52 = vector.broadcast %c0_i32_26 : i32 to vector<1x256xi32>
    %53 = arith.cmpi sge, %51, %52 : vector<1x256xi32>
    %c1_i32_27 = arith.constant 1 : i32
    %54 = vector.broadcast %c1_i32_27 : i32 to vector<1x256xi32>
    %55 = arith.subi %28, %54 : vector<1x256xi32>
    %c16_i32_28 = arith.constant 16 : i32
    %56 = vector.broadcast %c16_i32_28 : i32 to vector<1x256xi32>
    %57 = arith.cmpi slt, %55, %56 : vector<1x256xi32>
    %58 = arith.andi %53, %57 : vector<1x256xi1>
    %cst_29 = arith.constant 0.000000e+00 : f32
    %59 = vector.shape_cast %58 : vector<1x256xi1> to vector<1x256xi1>
    %60 = vector.broadcast %59 : vector<1x256xi1> to vector<8x256xi1>
    %61 = vector.broadcast %cst_29 : f32 to vector<8x256xf32>
    %62 = arith.select %60, %6, %61 : vector<8x256xi1>, vector<8x256xf32>
    %63 = vector.extract_strided_slice %62 {offsets = [0, 0], sizes = [8, 241], strides = [1, 1]} : vector<8x256xf32> to vector<8x241xf32>
    %c16_30 = arith.constant 16 : index
    %c15 = arith.constant 15 : index
    %64 = vector.load %arg18[%c16_30, %c15] : memref<216x256xf32, #tpu.memory_space<vmem>>, vector<8x241xf32>
    tpu.vector_store %arg18[%c16_30, %c15], %63 {strides = array<i32>} : memref<216x256xf32, #tpu.memory_space<vmem>>, vector<8x241xf32>,
    %cst_31 = arith.constant 0.000000e+00 : f32
    %65 = vector.broadcast %cst_31 : f32 to vector<8x15xf32>
    %c16_32 = arith.constant 16 : index
    %c0_33 = arith.constant 0 : index
    %66 = vector.load %arg18[%c16_32, %c0_33] : memref<216x256xf32, #tpu.memory_space<vmem>>, vector<8x15xf32>
    tpu.vector_store %arg18[%c16_32, %c0_33], %65 {strides = array<i32>} : memref<216x256xf32, #tpu.memory_space<vmem>>, vector<8x15xf32>,
    %c-1_i32_34 = arith.constant -1 : i32
    %67 = vector.broadcast %c-1_i32_34 : i32 to vector<1x256xi32>
    %68 = arith.subi %28, %67 : vector<1x256xi32>
    %c0_i32_35 = arith.constant 0 : i32
    %69 = vector.broadcast %c0_i32_35 : i32 to vector<1x256xi32>
    %70 = arith.cmpi sge, %68, %69 : vector<1x256xi32>
    %c-1_i32_36 = arith.constant -1 : i32
    %71 = vector.broadcast %c-1_i32_36 : i32 to vector<1x256xi32>
    %72 = arith.subi %28, %71 : vector<1x256xi32>
    %c16_i32_37 = arith.constant 16 : i32
    %73 = vector.broadcast %c16_i32_37 : i32 to vector<1x256xi32>
    %74 = arith.cmpi slt, %72, %73 : vector<1x256xi32>
    %75 = arith.andi %70, %74 : vector<1x256xi1>
    %cst_38 = arith.constant 0.000000e+00 : f32
    %76 = vector.shape_cast %75 : vector<1x256xi1> to vector<1x256xi1>
    %77 = vector.broadcast %76 : vector<1x256xi1> to vector<8x256xi1>
    %78 = vector.broadcast %cst_38 : f32 to vector<8x256xf32>
    %79 = arith.select %77, %6, %78 : vector<8x256xi1>, vector<8x256xf32>
    %80 = vector.extract_strided_slice %79 {offsets = [0, 0], sizes = [8, 255], strides = [1, 1]} : vector<8x256xf32> to vector<8x255xf32>
    %c24 = arith.constant 24 : index
    %c1 = arith.constant 1 : index
    %81 = vector.load %arg18[%c24, %c1] : memref<216x256xf32, #tpu.memory_space<vmem>>, vector<8x255xf32>
    tpu.vector_store %arg18[%c24, %c1], %80 {strides = array<i32>} : memref<216x256xf32, #tpu.memory_space<vmem>>, vector<8x255xf32>,
    %cst_39 = arith.constant 0.000000e+00 : f32
    %82 = vector.broadcast %cst_39 : f32 to vector<8x1xf32>
    %c24_40 = arith.constant 24 : index
    %c0_41 = arith.constant 0 : index
    %83 = vector.load %arg18[%c24_40, %c0_41] : memref<216x256xf32, #tpu.memory_space<vmem>>, vector<8x1xf32>
    tpu.vector_store %arg18[%c24_40, %c0_41], %82 {strides = array<i32>} : memref<216x256xf32, #tpu.memory_space<vmem>>, vector<8x1xf32>,
    %c32 = arith.constant 32 : index
    %c0_42 = arith.constant 0 : index
    %84 = vector.load %arg18[%c32, %c0_42] : memref<216x256xf32, #tpu.memory_space<vmem>>, vector<8x256xf32>
    tpu.vector_store %arg18[%c32, %c0_42], %6 {strides = array<i32>} : memref<216x256xf32, #tpu.memory_space<vmem>>, vector<8x256xf32>,
    %c1_i32_43 = arith.constant 1 : i32
    %85 = vector.broadcast %c1_i32_43 : i32 to vector<1x256xi32>
    %86 = arith.subi %28, %85 : vector<1x256xi32>
    %c0_i32_44 = arith.constant 0 : i32
    %87 = vector.broadcast %c0_i32_44 : i32 to vector<1x256xi32>
    %88 = arith.cmpi sge, %86, %87 : vector<1x256xi32>
    %c1_i32_45 = arith.constant 1 : i32
    %89 = vector.broadcast %c1_i32_45 : i32 to vector<1x256xi32>
    %90 = arith.subi %28, %89 : vector<1x256xi32>
    %c16_i32_46 = arith.constant 16 : i32
    %91 = vector.broadcast %c16_i32_46 : i32 to vector<1x256xi32>
    %92 = arith.cmpi slt, %90, %91 : vector<1x256xi32>
    %93 = arith.andi %88, %92 : vector<1x256xi1>
    %cst_47 = arith.constant 0.000000e+00 : f32
    %94 = vector.shape_cast %93 : vector<1x256xi1> to vector<1x256xi1>
    %95 = vector.broadcast %94 : vector<1x256xi1> to vector<8x256xi1>
    %96 = vector.broadcast %cst_47 : f32 to vector<8x256xf32>
    %97 = arith.select %95, %6, %96 : vector<8x256xi1>, vector<8x256xf32>
    %98 = vector.extract_strided_slice %97 {offsets = [0, 1], sizes = [8, 255], strides = [1, 1]} : vector<8x256xf32> to vector<8x255xf32>
    %c40 = arith.constant 40 : index
    %c0_48 = arith.constant 0 : index
    %99 = vector.load %arg18[%c40, %c0_48] : memref<216x256xf32, #tpu.memory_space<vmem>>, vector<8x255xf32>
    tpu.vector_store %arg18[%c40, %c0_48], %98 {strides = array<i32>} : memref<216x256xf32, #tpu.memory_space<vmem>>, vector<8x255xf32>,
    %cst_49 = arith.constant 0.000000e+00 : f32
    %100 = vector.broadcast %cst_49 : f32 to vector<8x1xf32>
    %c40_50 = arith.constant 40 : index
    %c255 = arith.constant 255 : index
    %101 = vector.load %arg18[%c40_50, %c255] : memref<216x256xf32, #tpu.memory_space<vmem>>, vector<8x1xf32>
    tpu.vector_store %arg18[%c40_50, %c255], %100 {strides = array<i32>} : memref<216x256xf32, #tpu.memory_space<vmem>>, vector<8x1xf32>,
    %c-1_i32_51 = arith.constant -1 : i32
    %102 = vector.broadcast %c-1_i32_51 : i32 to vector<1x256xi32>
    %103 = arith.subi %28, %102 : vector<1x256xi32>
    %c0_i32_52 = arith.constant 0 : i32
    %104 = vector.broadcast %c0_i32_52 : i32 to vector<1x256xi32>
    %105 = arith.cmpi sge, %103, %104 : vector<1x256xi32>
    %c-1_i32_53 = arith.constant -1 : i32
    %106 = vector.broadcast %c-1_i32_53 : i32 to vector<1x256xi32>
    %107 = arith.subi %28, %106 : vector<1x256xi32>
    %c16_i32_54 = arith.constant 16 : i32
    %108 = vector.broadcast %c16_i32_54 : i32 to vector<1x256xi32>
    %109 = arith.cmpi slt, %107, %108 : vector<1x256xi32>
    %110 = arith.andi %105, %109 : vector<1x256xi1>
    %cst_55 = arith.constant 0.000000e+00 : f32
    %111 = vector.shape_cast %110 : vector<1x256xi1> to vector<1x256xi1>
    %112 = vector.broadcast %111 : vector<1x256xi1> to vector<8x256xi1>
    %113 = vector.broadcast %cst_55 : f32 to vector<8x256xf32>
    %114 = arith.select %112, %6, %113 : vector<8x256xi1>, vector<8x256xf32>
    %115 = vector.extract_strided_slice %114 {offsets = [0, 15], sizes = [8, 241], strides = [1, 1]} : vector<8x256xf32> to vector<8x241xf32>
    %c48 = arith.constant 48 : index
    %c0_56 = arith.constant 0 : index
    %116 = vector.load %arg18[%c48, %c0_56] : memref<216x256xf32, #tpu.memory_space<vmem>>, vector<8x241xf32>
    tpu.vector_store %arg18[%c48, %c0_56], %115 {strides = array<i32>} : memref<216x256xf32, #tpu.memory_space<vmem>>, vector<8x241xf32>,
    %cst_57 = arith.constant 0.000000e+00 : f32
    %117 = vector.broadcast %cst_57 : f32 to vector<8x15xf32>
    %c48_58 = arith.constant 48 : index
    %c241 = arith.constant 241 : index
    %118 = vector.load %arg18[%c48_58, %c241] : memref<216x256xf32, #tpu.memory_space<vmem>>, vector<8x15xf32>
    tpu.vector_store %arg18[%c48_58, %c241], %117 {strides = array<i32>} : memref<216x256xf32, #tpu.memory_space<vmem>>, vector<8x15xf32>,
    %119 = vector.extract_strided_slice %6 {offsets = [0, 16], sizes = [8, 240], strides = [1, 1]} : vector<8x256xf32> to vector<8x240xf32>
    %c56 = arith.constant 56 : index
    %c0_59 = arith.constant 0 : index
    %120 = vector.load %arg18[%c56, %c0_59] : memref<216x256xf32, #tpu.memory_space<vmem>>, vector<8x240xf32>
    tpu.vector_store %arg18[%c56, %c0_59], %119 {strides = array<i32>} : memref<216x256xf32, #tpu.memory_space<vmem>>, vector<8x240xf32>,
    %cst_60 = arith.constant 0.000000e+00 : f32
    %121 = vector.broadcast %cst_60 : f32 to vector<8x16xf32>
    %c56_61 = arith.constant 56 : index
    %c240 = arith.constant 240 : index
    %122 = vector.load %arg18[%c56_61, %c240] : memref<216x256xf32, #tpu.memory_space<vmem>>, vector<8x16xf32>
    tpu.vector_store %arg18[%c56_61, %c240], %121 {strides = array<i32>} : memref<216x256xf32, #tpu.memory_space<vmem>>, vector<8x16xf32>,
    %c1_i32_62 = arith.constant 1 : i32
    %123 = vector.broadcast %c1_i32_62 : i32 to vector<1x256xi32>
    %124 = arith.subi %28, %123 : vector<1x256xi32>
    %c0_i32_63 = arith.constant 0 : i32
    %125 = vector.broadcast %c0_i32_63 : i32 to vector<1x256xi32>
    %126 = arith.cmpi sge, %124, %125 : vector<1x256xi32>
    %c1_i32_64 = arith.constant 1 : i32
    %127 = vector.broadcast %c1_i32_64 : i32 to vector<1x256xi32>
    %128 = arith.subi %28, %127 : vector<1x256xi32>
    %c16_i32_65 = arith.constant 16 : i32
    %129 = vector.broadcast %c16_i32_65 : i32 to vector<1x256xi32>
    %130 = arith.cmpi slt, %128, %129 : vector<1x256xi32>
    %131 = arith.andi %126, %130 : vector<1x256xi1>
    %cst_66 = arith.constant 0.000000e+00 : f32
    %132 = vector.shape_cast %131 : vector<1x256xi1> to vector<1x256xi1>
    %133 = vector.broadcast %132 : vector<1x256xi1> to vector<8x256xi1>
    %134 = vector.broadcast %cst_66 : f32 to vector<8x256xf32>
    %135 = arith.select %133, %6, %134 : vector<8x256xi1>, vector<8x256xf32>
    %136 = vector.extract_strided_slice %135 {offsets = [0, 17], sizes = [8, 239], strides = [1, 1]} : vector<8x256xf32> to vector<8x239xf32>
    %c64 = arith.constant 64 : index
    %c0_67 = arith.constant 0 : index
    %137 = vector.load %arg18[%c64, %c0_67] : memref<216x256xf32, #tpu.memory_space<vmem>>, vector<8x239xf32>
    tpu.vector_store %arg18[%c64, %c0_67], %136 {strides = array<i32>} : memref<216x256xf32, #tpu.memory_space<vmem>>, vector<8x239xf32>,
    %cst_68 = arith.constant 0.000000e+00 : f32
    %138 = vector.broadcast %cst_68 : f32 to vector<8x17xf32>
    %c64_69 = arith.constant 64 : index
    %c239 = arith.constant 239 : index
    %139 = vector.load %arg18[%c64_69, %c239] : memref<216x256xf32, #tpu.memory_space<vmem>>, vector<8x17xf32>
    tpu.vector_store %arg18[%c64_69, %c239], %138 {strides = array<i32>} : memref<216x256xf32, #tpu.memory_space<vmem>>, vector<8x17xf32>,
    %c-3_i32 = arith.constant -3 : i32
    %140 = vector.broadcast %c-3_i32 : i32 to vector<1x256xi32>
    %141 = arith.subi %28, %140 : vector<1x256xi32>
    %c0_i32_70 = arith.constant 0 : i32
    %142 = vector.broadcast %c0_i32_70 : i32 to vector<1x256xi32>
    %143 = arith.cmpi sge, %141, %142 : vector<1x256xi32>
    %c-3_i32_71 = arith.constant -3 : i32
    %144 = vector.broadcast %c-3_i32_71 : i32 to vector<1x256xi32>
    %145 = arith.subi %28, %144 : vector<1x256xi32>
    %c16_i32_72 = arith.constant 16 : i32
    %146 = vector.broadcast %c16_i32_72 : i32 to vector<1x256xi32>
    %147 = arith.cmpi slt, %145, %146 : vector<1x256xi32>
    %148 = arith.andi %143, %147 : vector<1x256xi1>
    %cst_73 = arith.constant 0.000000e+00 : f32
    %149 = vector.shape_cast %148 : vector<1x256xi1> to vector<1x256xi1>
    %150 = vector.broadcast %149 : vector<1x256xi1> to vector<8x256xi1>
    %151 = vector.broadcast %cst_73 : f32 to vector<8x256xf32>
    %152 = arith.select %150, %6, %151 : vector<8x256xi1>, vector<8x256xf32>
    %153 = vector.extract_strided_slice %152 {offsets = [0, 0], sizes = [8, 205], strides = [1, 1]} : vector<8x256xf32> to vector<8x205xf32>
    %c72 = arith.constant 72 : index
    %c51 = arith.constant 51 : index
    %154 = vector.load %arg18[%c72, %c51] : memref<216x256xf32, #tpu.memory_space<vmem>>, vector<8x205xf32>
    tpu.vector_store %arg18[%c72, %c51], %153 {strides = array<i32>} : memref<216x256xf32, #tpu.memory_space<vmem>>, vector<8x205xf32>,
    %cst_74 = arith.constant 0.000000e+00 : f32
    %155 = vector.broadcast %cst_74 : f32 to vector<8x51xf32>
    %c72_75 = arith.constant 72 : index
    %c0_76 = arith.constant 0 : index
    %156 = vector.load %arg18[%c72_75, %c0_76] : memref<216x256xf32, #tpu.memory_space<vmem>>, vector<8x51xf32>
    tpu.vector_store %arg18[%c72_75, %c0_76], %155 {strides = array<i32>} : memref<216x256xf32, #tpu.memory_space<vmem>>, vector<8x51xf32>,
    %157 = vector.extract_strided_slice %6 {offsets = [0, 0], sizes = [8, 208], strides = [1, 1]} : vector<8x256xf32> to vector<8x208xf32>
    %c80 = arith.constant 80 : index
    %c48_77 = arith.constant 48 : index
    %158 = vector.load %arg18[%c80, %c48_77] : memref<216x256xf32, #tpu.memory_space<vmem>>, vector<8x208xf32>
    tpu.vector_store %arg18[%c80, %c48_77], %157 {strides = array<i32>} : memref<216x256xf32, #tpu.memory_space<vmem>>, vector<8x208xf32>,
    %cst_78 = arith.constant 0.000000e+00 : f32
    %159 = vector.broadcast %cst_78 : f32 to vector<8x48xf32>
    %c80_79 = arith.constant 80 : index
    %c0_80 = arith.constant 0 : index
    %160 = vector.load %arg18[%c80_79, %c0_80] : memref<216x256xf32, #tpu.memory_space<vmem>>, vector<8x48xf32>
    tpu.vector_store %arg18[%c80_79, %c0_80], %159 {strides = array<i32>} : memref<216x256xf32, #tpu.memory_space<vmem>>, vector<8x48xf32>,
    %c3_i32 = arith.constant 3 : i32
    %161 = vector.broadcast %c3_i32 : i32 to vector<1x256xi32>
    %162 = arith.subi %28, %161 : vector<1x256xi32>
    %c0_i32_81 = arith.constant 0 : i32
    %163 = vector.broadcast %c0_i32_81 : i32 to vector<1x256xi32>
    %164 = arith.cmpi sge, %162, %163 : vector<1x256xi32>
    %c3_i32_82 = arith.constant 3 : i32
    %165 = vector.broadcast %c3_i32_82 : i32 to vector<1x256xi32>
    %166 = arith.subi %28, %165 : vector<1x256xi32>
    %c16_i32_83 = arith.constant 16 : i32
    %167 = vector.broadcast %c16_i32_83 : i32 to vector<1x256xi32>
    %168 = arith.cmpi slt, %166, %167 : vector<1x256xi32>
    %169 = arith.andi %164, %168 : vector<1x256xi1>
    %cst_84 = arith.constant 0.000000e+00 : f32
    %170 = vector.shape_cast %169 : vector<1x256xi1> to vector<1x256xi1>
    %171 = vector.broadcast %170 : vector<1x256xi1> to vector<8x256xi1>
    %172 = vector.broadcast %cst_84 : f32 to vector<8x256xf32>
    %173 = arith.select %171, %6, %172 : vector<8x256xi1>, vector<8x256xf32>
    %174 = vector.extract_strided_slice %173 {offsets = [0, 0], sizes = [8, 211], strides = [1, 1]} : vector<8x256xf32> to vector<8x211xf32>
    %c88 = arith.constant 88 : index
    %c45 = arith.constant 45 : index
    %175 = vector.load %arg18[%c88, %c45] : memref<216x256xf32, #tpu.memory_space<vmem>>, vector<8x211xf32>
    tpu.vector_store %arg18[%c88, %c45], %174 {strides = array<i32>} : memref<216x256xf32, #tpu.memory_space<vmem>>, vector<8x211xf32>,
    %cst_85 = arith.constant 0.000000e+00 : f32
    %176 = vector.broadcast %cst_85 : f32 to vector<8x45xf32>
    %c88_86 = arith.constant 88 : index
    %c0_87 = arith.constant 0 : index
    %177 = vector.load %arg18[%c88_86, %c0_87] : memref<216x256xf32, #tpu.memory_space<vmem>>, vector<8x45xf32>
    tpu.vector_store %arg18[%c88_86, %c0_87], %176 {strides = array<i32>} : memref<216x256xf32, #tpu.memory_space<vmem>>, vector<8x45xf32>,
    %c-3_i32_88 = arith.constant -3 : i32
    %178 = vector.broadcast %c-3_i32_88 : i32 to vector<1x256xi32>
    %179 = arith.subi %28, %178 : vector<1x256xi32>
    %c0_i32_89 = arith.constant 0 : i32
    %180 = vector.broadcast %c0_i32_89 : i32 to vector<1x256xi32>
    %181 = arith.cmpi sge, %179, %180 : vector<1x256xi32>
    %c-3_i32_90 = arith.constant -3 : i32
    %182 = vector.broadcast %c-3_i32_90 : i32 to vector<1x256xi32>
    %183 = arith.subi %28, %182 : vector<1x256xi32>
    %c16_i32_91 = arith.constant 16 : i32
    %184 = vector.broadcast %c16_i32_91 : i32 to vector<1x256xi32>
    %185 = arith.cmpi slt, %183, %184 : vector<1x256xi32>
    %186 = arith.andi %181, %185 : vector<1x256xi1>
    %cst_92 = arith.constant 0.000000e+00 : f32
    %187 = vector.shape_cast %186 : vector<1x256xi1> to vector<1x256xi1>
    %188 = vector.broadcast %187 : vector<1x256xi1> to vector<8x256xi1>
    %189 = vector.broadcast %cst_92 : f32 to vector<8x256xf32>
    %190 = arith.select %188, %6, %189 : vector<8x256xi1>, vector<8x256xf32>
    %191 = vector.extract_strided_slice %190 {offsets = [0, 0], sizes = [8, 253], strides = [1, 1]} : vector<8x256xf32> to vector<8x253xf32>
    %c96 = arith.constant 96 : index
    %c3 = arith.constant 3 : index
    %192 = vector.load %arg18[%c96, %c3] : memref<216x256xf32, #tpu.memory_space<vmem>>, vector<8x253xf32>
    tpu.vector_store %arg18[%c96, %c3], %191 {strides = array<i32>} : memref<216x256xf32, #tpu.memory_space<vmem>>, vector<8x253xf32>,
    %cst_93 = arith.constant 0.000000e+00 : f32
    %193 = vector.broadcast %cst_93 : f32 to vector<8x3xf32>
    %c96_94 = arith.constant 96 : index
    %c0_95 = arith.constant 0 : index
    %194 = vector.load %arg18[%c96_94, %c0_95] : memref<216x256xf32, #tpu.memory_space<vmem>>, vector<8x3xf32>
    tpu.vector_store %arg18[%c96_94, %c0_95], %193 {strides = array<i32>} : memref<216x256xf32, #tpu.memory_space<vmem>>, vector<8x3xf32>,
    %c104 = arith.constant 104 : index
    %c0_96 = arith.constant 0 : index
    %195 = vector.load %arg18[%c104, %c0_96] : memref<216x256xf32, #tpu.memory_space<vmem>>, vector<8x256xf32>
    tpu.vector_store %arg18[%c104, %c0_96], %6 {strides = array<i32>} : memref<216x256xf32, #tpu.memory_space<vmem>>, vector<8x256xf32>,
    %c3_i32_97 = arith.constant 3 : i32
    %196 = vector.broadcast %c3_i32_97 : i32 to vector<1x256xi32>
    %197 = arith.subi %28, %196 : vector<1x256xi32>
    %c0_i32_98 = arith.constant 0 : i32
    %198 = vector.broadcast %c0_i32_98 : i32 to vector<1x256xi32>
    %199 = arith.cmpi sge, %197, %198 : vector<1x256xi32>
    %c3_i32_99 = arith.constant 3 : i32
    %200 = vector.broadcast %c3_i32_99 : i32 to vector<1x256xi32>
    %201 = arith.subi %28, %200 : vector<1x256xi32>
    %c16_i32_100 = arith.constant 16 : i32
    %202 = vector.broadcast %c16_i32_100 : i32 to vector<1x256xi32>
    %203 = arith.cmpi slt, %201, %202 : vector<1x256xi32>
    %204 = arith.andi %199, %203 : vector<1x256xi1>
    %cst_101 = arith.constant 0.000000e+00 : f32
    %205 = vector.shape_cast %204 : vector<1x256xi1> to vector<1x256xi1>
    %206 = vector.broadcast %205 : vector<1x256xi1> to vector<8x256xi1>
    %207 = vector.broadcast %cst_101 : f32 to vector<8x256xf32>
    %208 = arith.select %206, %6, %207 : vector<8x256xi1>, vector<8x256xf32>
    %209 = vector.extract_strided_slice %208 {offsets = [0, 3], sizes = [8, 253], strides = [1, 1]} : vector<8x256xf32> to vector<8x253xf32>
    %c112 = arith.constant 112 : index
    %c0_102 = arith.constant 0 : index
    %210 = vector.load %arg18[%c112, %c0_102] : memref<216x256xf32, #tpu.memory_space<vmem>>, vector<8x253xf32>
    tpu.vector_store %arg18[%c112, %c0_102], %209 {strides = array<i32>} : memref<216x256xf32, #tpu.memory_space<vmem>>, vector<8x253xf32>,
    %cst_103 = arith.constant 0.000000e+00 : f32
    %211 = vector.broadcast %cst_103 : f32 to vector<8x3xf32>
    %c112_104 = arith.constant 112 : index
    %c253 = arith.constant 253 : index
    %212 = vector.load %arg18[%c112_104, %c253] : memref<216x256xf32, #tpu.memory_space<vmem>>, vector<8x3xf32>
    tpu.vector_store %arg18[%c112_104, %c253], %211 {strides = array<i32>} : memref<216x256xf32, #tpu.memory_space<vmem>>, vector<8x3xf32>,
    %c-3_i32_105 = arith.constant -3 : i32
    %213 = vector.broadcast %c-3_i32_105 : i32 to vector<1x256xi32>
    %214 = arith.subi %28, %213 : vector<1x256xi32>
    %c0_i32_106 = arith.constant 0 : i32
    %215 = vector.broadcast %c0_i32_106 : i32 to vector<1x256xi32>
    %216 = arith.cmpi sge, %214, %215 : vector<1x256xi32>
    %c-3_i32_107 = arith.constant -3 : i32
    %217 = vector.broadcast %c-3_i32_107 : i32 to vector<1x256xi32>
    %218 = arith.subi %28, %217 : vector<1x256xi32>
    %c16_i32_108 = arith.constant 16 : i32
    %219 = vector.broadcast %c16_i32_108 : i32 to vector<1x256xi32>
    %220 = arith.cmpi slt, %218, %219 : vector<1x256xi32>
    %221 = arith.andi %216, %220 : vector<1x256xi1>
    %cst_109 = arith.constant 0.000000e+00 : f32
    %222 = vector.shape_cast %221 : vector<1x256xi1> to vector<1x256xi1>
    %223 = vector.broadcast %222 : vector<1x256xi1> to vector<8x256xi1>
    %224 = vector.broadcast %cst_109 : f32 to vector<8x256xf32>
    %225 = arith.select %223, %6, %224 : vector<8x256xi1>, vector<8x256xf32>
    %226 = vector.extract_strided_slice %225 {offsets = [0, 45], sizes = [8, 211], strides = [1, 1]} : vector<8x256xf32> to vector<8x211xf32>
    %c120 = arith.constant 120 : index
    %c0_110 = arith.constant 0 : index
    %227 = vector.load %arg18[%c120, %c0_110] : memref<216x256xf32, #tpu.memory_space<vmem>>, vector<8x211xf32>
    tpu.vector_store %arg18[%c120, %c0_110], %226 {strides = array<i32>} : memref<216x256xf32, #tpu.memory_space<vmem>>, vector<8x211xf32>,
    %cst_111 = arith.constant 0.000000e+00 : f32
    %228 = vector.broadcast %cst_111 : f32 to vector<8x45xf32>
    %c120_112 = arith.constant 120 : index
    %c211 = arith.constant 211 : index
    %229 = vector.load %arg18[%c120_112, %c211] : memref<216x256xf32, #tpu.memory_space<vmem>>, vector<8x45xf32>
    tpu.vector_store %arg18[%c120_112, %c211], %228 {strides = array<i32>} : memref<216x256xf32, #tpu.memory_space<vmem>>, vector<8x45xf32>,
    %230 = vector.extract_strided_slice %6 {offsets = [0, 48], sizes = [8, 208], strides = [1, 1]} : vector<8x256xf32> to vector<8x208xf32>
    %c128 = arith.constant 128 : index
    %c0_113 = arith.constant 0 : index
    %231 = vector.load %arg18[%c128, %c0_113] : memref<216x256xf32, #tpu.memory_space<vmem>>, vector<8x208xf32>
    tpu.vector_store %arg18[%c128, %c0_113], %230 {strides = array<i32>} : memref<216x256xf32, #tpu.memory_space<vmem>>, vector<8x208xf32>,
    %cst_114 = arith.constant 0.000000e+00 : f32
    %232 = vector.broadcast %cst_114 : f32 to vector<8x48xf32>
    %c128_115 = arith.constant 128 : index
    %c208 = arith.constant 208 : index
    %233 = vector.load %arg18[%c128_115, %c208] : memref<216x256xf32, #tpu.memory_space<vmem>>, vector<8x48xf32>
    tpu.vector_store %arg18[%c128_115, %c208], %232 {strides = array<i32>} : memref<216x256xf32, #tpu.memory_space<vmem>>, vector<8x48xf32>,
    %c3_i32_116 = arith.constant 3 : i32
    %234 = vector.broadcast %c3_i32_116 : i32 to vector<1x256xi32>
    %235 = arith.subi %28, %234 : vector<1x256xi32>
    %c0_i32_117 = arith.constant 0 : i32
    %236 = vector.broadcast %c0_i32_117 : i32 to vector<1x256xi32>
    %237 = arith.cmpi sge, %235, %236 : vector<1x256xi32>
    %c3_i32_118 = arith.constant 3 : i32
    %238 = vector.broadcast %c3_i32_118 : i32 to vector<1x256xi32>
    %239 = arith.subi %28, %238 : vector<1x256xi32>
    %c16_i32_119 = arith.constant 16 : i32
    %240 = vector.broadcast %c16_i32_119 : i32 to vector<1x256xi32>
    %241 = arith.cmpi slt, %239, %240 : vector<1x256xi32>
    %242 = arith.andi %237, %241 : vector<1x256xi1>
    %cst_120 = arith.constant 0.000000e+00 : f32
    %243 = vector.shape_cast %242 : vector<1x256xi1> to vector<1x256xi1>
    %244 = vector.broadcast %243 : vector<1x256xi1> to vector<8x256xi1>
    %245 = vector.broadcast %cst_120 : f32 to vector<8x256xf32>
    %246 = arith.select %244, %6, %245 : vector<8x256xi1>, vector<8x256xf32>
    %247 = vector.extract_strided_slice %246 {offsets = [0, 51], sizes = [8, 205], strides = [1, 1]} : vector<8x256xf32> to vector<8x205xf32>
    %c136 = arith.constant 136 : index
    %c0_121 = arith.constant 0 : index
    %248 = vector.load %arg18[%c136, %c0_121] : memref<216x256xf32, #tpu.memory_space<vmem>>, vector<8x205xf32>
    tpu.vector_store %arg18[%c136, %c0_121], %247 {strides = array<i32>} : memref<216x256xf32, #tpu.memory_space<vmem>>, vector<8x205xf32>,
    %cst_122 = arith.constant 0.000000e+00 : f32
    %249 = vector.broadcast %cst_122 : f32 to vector<8x51xf32>
    %c136_123 = arith.constant 136 : index
    %c205 = arith.constant 205 : index
    %250 = vector.load %arg18[%c136_123, %c205] : memref<216x256xf32, #tpu.memory_space<vmem>>, vector<8x51xf32>
    tpu.vector_store %arg18[%c136_123, %c205], %249 {strides = array<i32>} : memref<216x256xf32, #tpu.memory_space<vmem>>, vector<8x51xf32>,
    %c-5_i32 = arith.constant -5 : i32
    %251 = vector.broadcast %c-5_i32 : i32 to vector<1x256xi32>
    %252 = arith.subi %28, %251 : vector<1x256xi32>
    %c0_i32_124 = arith.constant 0 : i32
    %253 = vector.broadcast %c0_i32_124 : i32 to vector<1x256xi32>
    %254 = arith.cmpi sge, %252, %253 : vector<1x256xi32>
    %c-5_i32_125 = arith.constant -5 : i32
    %255 = vector.broadcast %c-5_i32_125 : i32 to vector<1x256xi32>
    %256 = arith.subi %28, %255 : vector<1x256xi32>
    %c16_i32_126 = arith.constant 16 : i32
    %257 = vector.broadcast %c16_i32_126 : i32 to vector<1x256xi32>
    %258 = arith.cmpi slt, %256, %257 : vector<1x256xi32>
    %259 = arith.andi %254, %258 : vector<1x256xi1>
    %cst_127 = arith.constant 0.000000e+00 : f32
    %260 = vector.shape_cast %259 : vector<1x256xi1> to vector<1x256xi1>
    %261 = vector.broadcast %260 : vector<1x256xi1> to vector<8x256xi1>
    %262 = vector.broadcast %cst_127 : f32 to vector<8x256xf32>
    %263 = arith.select %261, %6, %262 : vector<8x256xi1>, vector<8x256xf32>
    %264 = vector.extract_strided_slice %263 {offsets = [0, 0], sizes = [8, 171], strides = [1, 1]} : vector<8x256xf32> to vector<8x171xf32>
    %c144 = arith.constant 144 : index
    %c85 = arith.constant 85 : index
    %265 = vector.load %arg18[%c144, %c85] : memref<216x256xf32, #tpu.memory_space<vmem>>, vector<8x171xf32>
    tpu.vector_store %arg18[%c144, %c85], %264 {strides = array<i32>} : memref<216x256xf32, #tpu.memory_space<vmem>>, vector<8x171xf32>,
    %cst_128 = arith.constant 0.000000e+00 : f32
    %266 = vector.broadcast %cst_128 : f32 to vector<8x85xf32>
    %c144_129 = arith.constant 144 : index
    %c0_130 = arith.constant 0 : index
    %267 = vector.load %arg18[%c144_129, %c0_130] : memref<216x256xf32, #tpu.memory_space<vmem>>, vector<8x85xf32>
    tpu.vector_store %arg18[%c144_129, %c0_130], %266 {strides = array<i32>} : memref<216x256xf32, #tpu.memory_space<vmem>>, vector<8x85xf32>,
    %268 = vector.extract_strided_slice %6 {offsets = [0, 0], sizes = [8, 176], strides = [1, 1]} : vector<8x256xf32> to vector<8x176xf32>
    %c152 = arith.constant 152 : index
    %c80_131 = arith.constant 80 : index
    %269 = vector.load %arg18[%c152, %c80_131] : memref<216x256xf32, #tpu.memory_space<vmem>>, vector<8x176xf32>
    tpu.vector_store %arg18[%c152, %c80_131], %268 {strides = array<i32>} : memref<216x256xf32, #tpu.memory_space<vmem>>, vector<8x176xf32>,
    %cst_132 = arith.constant 0.000000e+00 : f32
    %270 = vector.broadcast %cst_132 : f32 to vector<8x80xf32>
    %c152_133 = arith.constant 152 : index
    %c0_134 = arith.constant 0 : index
    %271 = vector.load %arg18[%c152_133, %c0_134] : memref<216x256xf32, #tpu.memory_space<vmem>>, vector<8x80xf32>
    tpu.vector_store %arg18[%c152_133, %c0_134], %270 {strides = array<i32>} : memref<216x256xf32, #tpu.memory_space<vmem>>, vector<8x80xf32>,
    %c5_i32 = arith.constant 5 : i32
    %272 = vector.broadcast %c5_i32 : i32 to vector<1x256xi32>
    %273 = arith.subi %28, %272 : vector<1x256xi32>
    %c0_i32_135 = arith.constant 0 : i32
    %274 = vector.broadcast %c0_i32_135 : i32 to vector<1x256xi32>
    %275 = arith.cmpi sge, %273, %274 : vector<1x256xi32>
    %c5_i32_136 = arith.constant 5 : i32
    %276 = vector.broadcast %c5_i32_136 : i32 to vector<1x256xi32>
    %277 = arith.subi %28, %276 : vector<1x256xi32>
    %c16_i32_137 = arith.constant 16 : i32
    %278 = vector.broadcast %c16_i32_137 : i32 to vector<1x256xi32>
    %279 = arith.cmpi slt, %277, %278 : vector<1x256xi32>
    %280 = arith.andi %275, %279 : vector<1x256xi1>
    %cst_138 = arith.constant 0.000000e+00 : f32
    %281 = vector.shape_cast %280 : vector<1x256xi1> to vector<1x256xi1>
    %282 = vector.broadcast %281 : vector<1x256xi1> to vector<8x256xi1>
    %283 = vector.broadcast %cst_138 : f32 to vector<8x256xf32>
    %284 = arith.select %282, %6, %283 : vector<8x256xi1>, vector<8x256xf32>
    %285 = vector.extract_strided_slice %284 {offsets = [0, 0], sizes = [8, 181], strides = [1, 1]} : vector<8x256xf32> to vector<8x181xf32>
    %c160 = arith.constant 160 : index
    %c75 = arith.constant 75 : index
    %286 = vector.load %arg18[%c160, %c75] : memref<216x256xf32, #tpu.memory_space<vmem>>, vector<8x181xf32>
    tpu.vector_store %arg18[%c160, %c75], %285 {strides = array<i32>} : memref<216x256xf32, #tpu.memory_space<vmem>>, vector<8x181xf32>,
    %cst_139 = arith.constant 0.000000e+00 : f32
    %287 = vector.broadcast %cst_139 : f32 to vector<8x75xf32>
    %c160_140 = arith.constant 160 : index
    %c0_141 = arith.constant 0 : index
    %288 = vector.load %arg18[%c160_140, %c0_141] : memref<216x256xf32, #tpu.memory_space<vmem>>, vector<8x75xf32>
    tpu.vector_store %arg18[%c160_140, %c0_141], %287 {strides = array<i32>} : memref<216x256xf32, #tpu.memory_space<vmem>>, vector<8x75xf32>,
    %c-5_i32_142 = arith.constant -5 : i32
    %289 = vector.broadcast %c-5_i32_142 : i32 to vector<1x256xi32>
    %290 = arith.subi %28, %289 : vector<1x256xi32>
    %c0_i32_143 = arith.constant 0 : i32
    %291 = vector.broadcast %c0_i32_143 : i32 to vector<1x256xi32>
    %292 = arith.cmpi sge, %290, %291 : vector<1x256xi32>
    %c-5_i32_144 = arith.constant -5 : i32
    %293 = vector.broadcast %c-5_i32_144 : i32 to vector<1x256xi32>
    %294 = arith.subi %28, %293 : vector<1x256xi32>
    %c16_i32_145 = arith.constant 16 : i32
    %295 = vector.broadcast %c16_i32_145 : i32 to vector<1x256xi32>
    %296 = arith.cmpi slt, %294, %295 : vector<1x256xi32>
    %297 = arith.andi %292, %296 : vector<1x256xi1>
    %cst_146 = arith.constant 0.000000e+00 : f32
    %298 = vector.shape_cast %297 : vector<1x256xi1> to vector<1x256xi1>
    %299 = vector.broadcast %298 : vector<1x256xi1> to vector<8x256xi1>
    %300 = vector.broadcast %cst_146 : f32 to vector<8x256xf32>
    %301 = arith.select %299, %6, %300 : vector<8x256xi1>, vector<8x256xf32>
    %302 = vector.extract_strided_slice %301 {offsets = [0, 0], sizes = [8, 251], strides = [1, 1]} : vector<8x256xf32> to vector<8x251xf32>
    %c168 = arith.constant 168 : index
    %c5 = arith.constant 5 : index
    %303 = vector.load %arg18[%c168, %c5] : memref<216x256xf32, #tpu.memory_space<vmem>>, vector<8x251xf32>
    tpu.vector_store %arg18[%c168, %c5], %302 {strides = array<i32>} : memref<216x256xf32, #tpu.memory_space<vmem>>, vector<8x251xf32>,
    %cst_147 = arith.constant 0.000000e+00 : f32
    %304 = vector.broadcast %cst_147 : f32 to vector<8x5xf32>
    %c168_148 = arith.constant 168 : index
    %c0_149 = arith.constant 0 : index
    %305 = vector.load %arg18[%c168_148, %c0_149] : memref<216x256xf32, #tpu.memory_space<vmem>>, vector<8x5xf32>
    tpu.vector_store %arg18[%c168_148, %c0_149], %304 {strides = array<i32>} : memref<216x256xf32, #tpu.memory_space<vmem>>, vector<8x5xf32>,
    %c176 = arith.constant 176 : index
    %c0_150 = arith.constant 0 : index
    %306 = vector.load %arg18[%c176, %c0_150] : memref<216x256xf32, #tpu.memory_space<vmem>>, vector<8x256xf32>
    tpu.vector_store %arg18[%c176, %c0_150], %6 {strides = array<i32>} : memref<216x256xf32, #tpu.memory_space<vmem>>, vector<8x256xf32>,
    %c5_i32_151 = arith.constant 5 : i32
    %307 = vector.broadcast %c5_i32_151 : i32 to vector<1x256xi32>
    %308 = arith.subi %28, %307 : vector<1x256xi32>
    %c0_i32_152 = arith.constant 0 : i32
    %309 = vector.broadcast %c0_i32_152 : i32 to vector<1x256xi32>
    %310 = arith.cmpi sge, %308, %309 : vector<1x256xi32>
    %c5_i32_153 = arith.constant 5 : i32
    %311 = vector.broadcast %c5_i32_153 : i32 to vector<1x256xi32>
    %312 = arith.subi %28, %311 : vector<1x256xi32>
    %c16_i32_154 = arith.constant 16 : i32
    %313 = vector.broadcast %c16_i32_154 : i32 to vector<1x256xi32>
    %314 = arith.cmpi slt, %312, %313 : vector<1x256xi32>
    %315 = arith.andi %310, %314 : vector<1x256xi1>
    %cst_155 = arith.constant 0.000000e+00 : f32
    %316 = vector.shape_cast %315 : vector<1x256xi1> to vector<1x256xi1>
    %317 = vector.broadcast %316 : vector<1x256xi1> to vector<8x256xi1>
    %318 = vector.broadcast %cst_155 : f32 to vector<8x256xf32>
    %319 = arith.select %317, %6, %318 : vector<8x256xi1>, vector<8x256xf32>
    %320 = vector.extract_strided_slice %319 {offsets = [0, 5], sizes = [8, 251], strides = [1, 1]} : vector<8x256xf32> to vector<8x251xf32>
    %c184 = arith.constant 184 : index
    %c0_156 = arith.constant 0 : index
    %321 = vector.load %arg18[%c184, %c0_156] : memref<216x256xf32, #tpu.memory_space<vmem>>, vector<8x251xf32>
    tpu.vector_store %arg18[%c184, %c0_156], %320 {strides = array<i32>} : memref<216x256xf32, #tpu.memory_space<vmem>>, vector<8x251xf32>,
    %cst_157 = arith.constant 0.000000e+00 : f32
    %322 = vector.broadcast %cst_157 : f32 to vector<8x5xf32>
    %c184_158 = arith.constant 184 : index
    %c251 = arith.constant 251 : index
    %323 = vector.load %arg18[%c184_158, %c251] : memref<216x256xf32, #tpu.memory_space<vmem>>, vector<8x5xf32>
    tpu.vector_store %arg18[%c184_158, %c251], %322 {strides = array<i32>} : memref<216x256xf32, #tpu.memory_space<vmem>>, vector<8x5xf32>,
    %c-5_i32_159 = arith.constant -5 : i32
    %324 = vector.broadcast %c-5_i32_159 : i32 to vector<1x256xi32>
    %325 = arith.subi %28, %324 : vector<1x256xi32>
    %c0_i32_160 = arith.constant 0 : i32
    %326 = vector.broadcast %c0_i32_160 : i32 to vector<1x256xi32>
    %327 = arith.cmpi sge, %325, %326 : vector<1x256xi32>
    %c-5_i32_161 = arith.constant -5 : i32
    %328 = vector.broadcast %c-5_i32_161 : i32 to vector<1x256xi32>
    %329 = arith.subi %28, %328 : vector<1x256xi32>
    %c16_i32_162 = arith.constant 16 : i32
    %330 = vector.broadcast %c16_i32_162 : i32 to vector<1x256xi32>
    %331 = arith.cmpi slt, %329, %330 : vector<1x256xi32>
    %332 = arith.andi %327, %331 : vector<1x256xi1>
    %cst_163 = arith.constant 0.000000e+00 : f32
    %333 = vector.shape_cast %332 : vector<1x256xi1> to vector<1x256xi1>
    %334 = vector.broadcast %333 : vector<1x256xi1> to vector<8x256xi1>
    %335 = vector.broadcast %cst_163 : f32 to vector<8x256xf32>
    %336 = arith.select %334, %6, %335 : vector<8x256xi1>, vector<8x256xf32>
    %337 = vector.extract_strided_slice %336 {offsets = [0, 75], sizes = [8, 181], strides = [1, 1]} : vector<8x256xf32> to vector<8x181xf32>
    %c192 = arith.constant 192 : index
    %c0_164 = arith.constant 0 : index
    %338 = vector.load %arg18[%c192, %c0_164] : memref<216x256xf32, #tpu.memory_space<vmem>>, vector<8x181xf32>
    tpu.vector_store %arg18[%c192, %c0_164], %337 {strides = array<i32>} : memref<216x256xf32, #tpu.memory_space<vmem>>, vector<8x181xf32>,
    %cst_165 = arith.constant 0.000000e+00 : f32
    %339 = vector.broadcast %cst_165 : f32 to vector<8x75xf32>
    %c192_166 = arith.constant 192 : index
    %c181 = arith.constant 181 : index
    %340 = vector.load %arg18[%c192_166, %c181] : memref<216x256xf32, #tpu.memory_space<vmem>>, vector<8x75xf32>
    tpu.vector_store %arg18[%c192_166, %c181], %339 {strides = array<i32>} : memref<216x256xf32, #tpu.memory_space<vmem>>, vector<8x75xf32>,
    %341 = vector.extract_strided_slice %6 {offsets = [0, 80], sizes = [8, 176], strides = [1, 1]} : vector<8x256xf32> to vector<8x176xf32>
    %c200 = arith.constant 200 : index
    %c0_167 = arith.constant 0 : index
    %342 = vector.load %arg18[%c200, %c0_167] : memref<216x256xf32, #tpu.memory_space<vmem>>, vector<8x176xf32>
    tpu.vector_store %arg18[%c200, %c0_167], %341 {strides = array<i32>} : memref<216x256xf32, #tpu.memory_space<vmem>>, vector<8x176xf32>,
    %cst_168 = arith.constant 0.000000e+00 : f32
    %343 = vector.broadcast %cst_168 : f32 to vector<8x80xf32>
    %c200_169 = arith.constant 200 : index
    %c176_170 = arith.constant 176 : index
    %344 = vector.load %arg18[%c200_169, %c176_170] : memref<216x256xf32, #tpu.memory_space<vmem>>, vector<8x80xf32>
    tpu.vector_store %arg18[%c200_169, %c176_170], %343 {strides = array<i32>} : memref<216x256xf32, #tpu.memory_space<vmem>>, vector<8x80xf32>,
    %c5_i32_171 = arith.constant 5 : i32
    %345 = vector.broadcast %c5_i32_171 : i32 to vector<1x256xi32>
    %346 = arith.subi %28, %345 : vector<1x256xi32>
    %c0_i32_172 = arith.constant 0 : i32
    %347 = vector.broadcast %c0_i32_172 : i32 to vector<1x256xi32>
    %348 = arith.cmpi sge, %346, %347 : vector<1x256xi32>
    %c5_i32_173 = arith.constant 5 : i32
    %349 = vector.broadcast %c5_i32_173 : i32 to vector<1x256xi32>
    %350 = arith.subi %28, %349 : vector<1x256xi32>
    %c16_i32_174 = arith.constant 16 : i32
    %351 = vector.broadcast %c16_i32_174 : i32 to vector<1x256xi32>
    %352 = arith.cmpi slt, %350, %351 : vector<1x256xi32>
    %353 = arith.andi %348, %352 : vector<1x256xi1>
    %cst_175 = arith.constant 0.000000e+00 : f32
    %354 = vector.shape_cast %353 : vector<1x256xi1> to vector<1x256xi1>
    %355 = vector.broadcast %354 : vector<1x256xi1> to vector<8x256xi1>
    %356 = vector.broadcast %cst_175 : f32 to vector<8x256xf32>
    %357 = arith.select %355, %6, %356 : vector<8x256xi1>, vector<8x256xf32>
    %358 = vector.extract_strided_slice %357 {offsets = [0, 85], sizes = [8, 171], strides = [1, 1]} : vector<8x256xf32> to vector<8x171xf32>
    %c208_176 = arith.constant 208 : index
    %c0_177 = arith.constant 0 : index
    %359 = vector.load %arg18[%c208_176, %c0_177] : memref<216x256xf32, #tpu.memory_space<vmem>>, vector<8x171xf32>
    tpu.vector_store %arg18[%c208_176, %c0_177], %358 {strides = array<i32>} : memref<216x256xf32, #tpu.memory_space<vmem>>, vector<8x171xf32>,
    %cst_178 = arith.constant 0.000000e+00 : f32
    %360 = vector.broadcast %cst_178 : f32 to vector<8x85xf32>
    %c208_179 = arith.constant 208 : index
    %c171 = arith.constant 171 : index
    %361 = vector.load %arg18[%c208_179, %c171] : memref<216x256xf32, #tpu.memory_space<vmem>>, vector<8x85xf32>
    tpu.vector_store %arg18[%c208_179, %c171], %360 {strides = array<i32>} : memref<216x256xf32, #tpu.memory_space<vmem>>, vector<8x85xf32>,
    %c0_180 = arith.constant 0 : index
    %c0_181 = arith.constant 0 : index
    %362 = vector.load %arg4[%c0_180, %c0_181] : memref<8x216xf32, #tpu.memory_space<vmem>>, vector<8x216xf32>
    %c0_182 = arith.constant 0 : index
    %c0_183 = arith.constant 0 : index
    %363 = vector.load %arg18[%c0_182, %c0_183] : memref<216x256xf32, #tpu.memory_space<vmem>>, vector<216x256xf32>
    %cst_184 = arith.constant dense<0.000000e+00> : vector<8x256xf32>
    %364 = tpu.matmul %362, %363, %cst_184 {dimension_numbers = #tpu.dot_dimension_numbers<[1], [0], [0], [1], [0, 0, 1, 1], [], []>} : vector<8x216xf32>, vector<216x256xf32>, vector<8x256xf32> -> vector<8x256xf32>
    %c0_185 = arith.constant 0 : index
    %c0_186 = arith.constant 0 : index
    %365 = vector.load %arg5[%c0_185, %c0_186] : memref<8x1xf32, #tpu.memory_space<vmem>>, vector<8x1xf32>
    %366 = vector.broadcast %365 : vector<8x1xf32> to vector<8x256xf32>
    %367 = arith.addf %364, %366 : vector<8x256xf32>
    %368 = vector.extract_strided_slice %367 {offsets = [0, 0], sizes = [8, 7], strides = [1, 1]} : vector<8x256xf32> to vector<8x7xf32>
    %cst_187 = arith.constant dense<0xFF800000> : vector<8xf32>
    %369 = vector.multi_reduction <maximumf>, %368, %cst_187 [1] : vector<8x7xf32> to vector<8xf32>
    %370 = vector.shape_cast %369 : vector<8xf32> to vector<8x1xf32>
    %371 = vector.extract_strided_slice %367 {offsets = [0, 16], sizes = [8, 7], strides = [1, 1]} : vector<8x256xf32> to vector<8x7xf32>
    %cst_188 = arith.constant dense<0xFF800000> : vector<8xf32>
    %372 = vector.multi_reduction <maximumf>, %371, %cst_188 [1] : vector<8x7xf32> to vector<8xf32>
    %373 = vector.shape_cast %372 : vector<8xf32> to vector<8x1xf32>
    %374 = arith.maximumf %370, %373 : vector<8x1xf32>
    %375 = vector.extract_strided_slice %367 {offsets = [0, 32], sizes = [8, 7], strides = [1, 1]} : vector<8x256xf32> to vector<8x7xf32>
    %cst_189 = arith.constant dense<0xFF800000> : vector<8xf32>
    %376 = vector.multi_reduction <maximumf>, %375, %cst_189 [1] : vector<8x7xf32> to vector<8xf32>
    %377 = vector.shape_cast %376 : vector<8xf32> to vector<8x1xf32>
    %378 = arith.maximumf %374, %377 : vector<8x1xf32>
    %379 = vector.extract_strided_slice %367 {offsets = [0, 48], sizes = [8, 7], strides = [1, 1]} : vector<8x256xf32> to vector<8x7xf32>
    %cst_190 = arith.constant dense<0xFF800000> : vector<8xf32>
    %380 = vector.multi_reduction <maximumf>, %379, %cst_190 [1] : vector<8x7xf32> to vector<8xf32>
    %381 = vector.shape_cast %380 : vector<8xf32> to vector<8x1xf32>
    %382 = arith.maximumf %378, %381 : vector<8x1xf32>
    %383 = vector.extract_strided_slice %367 {offsets = [0, 64], sizes = [8, 7], strides = [1, 1]} : vector<8x256xf32> to vector<8x7xf32>
    %cst_191 = arith.constant dense<0xFF800000> : vector<8xf32>
    %384 = vector.multi_reduction <maximumf>, %383, %cst_191 [1] : vector<8x7xf32> to vector<8xf32>
    %385 = vector.shape_cast %384 : vector<8xf32> to vector<8x1xf32>
    %386 = arith.maximumf %382, %385 : vector<8x1xf32>
    %387 = vector.extract_strided_slice %367 {offsets = [0, 80], sizes = [8, 7], strides = [1, 1]} : vector<8x256xf32> to vector<8x7xf32>
    %cst_192 = arith.constant dense<0xFF800000> : vector<8xf32>
    %388 = vector.multi_reduction <maximumf>, %387, %cst_192 [1] : vector<8x7xf32> to vector<8xf32>
    %389 = vector.shape_cast %388 : vector<8xf32> to vector<8x1xf32>
    %390 = arith.maximumf %386, %389 : vector<8x1xf32>
    %391 = vector.extract_strided_slice %367 {offsets = [0, 96], sizes = [8, 7], strides = [1, 1]} : vector<8x256xf32> to vector<8x7xf32>
    %cst_193 = arith.constant dense<0xFF800000> : vector<8xf32>
    %392 = vector.multi_reduction <maximumf>, %391, %cst_193 [1] : vector<8x7xf32> to vector<8xf32>
    %393 = vector.shape_cast %392 : vector<8xf32> to vector<8x1xf32>
    %394 = arith.maximumf %390, %393 : vector<8x1xf32>
    %c0_194 = arith.constant 0 : index
    %c0_195 = arith.constant 0 : index
    %395 = vector.load %arg20[%c0_194, %c0_195] : memref<8x16xf32, #tpu.memory_space<vmem>>, vector<8x1xf32>
    tpu.vector_store %arg20[%c0_194, %c0_195], %394 {strides = array<i32>} : memref<8x16xf32, #tpu.memory_space<vmem>>, vector<8x1xf32>,
    %396 = vector.extract_strided_slice %367 {offsets = [0, 3], sizes = [8, 7], strides = [1, 1]} : vector<8x256xf32> to vector<8x7xf32>
    %cst_196 = arith.constant dense<0xFF800000> : vector<8xf32>
    %397 = vector.multi_reduction <maximumf>, %396, %cst_196 [1] : vector<8x7xf32> to vector<8xf32>
    %398 = vector.shape_cast %397 : vector<8xf32> to vector<8x1xf32>
    %399 = vector.extract_strided_slice %367 {offsets = [0, 19], sizes = [8, 7], strides = [1, 1]} : vector<8x256xf32> to vector<8x7xf32>
    %cst_197 = arith.constant dense<0xFF800000> : vector<8xf32>
    %400 = vector.multi_reduction <maximumf>, %399, %cst_197 [1] : vector<8x7xf32> to vector<8xf32>
    %401 = vector.shape_cast %400 : vector<8xf32> to vector<8x1xf32>
    %402 = arith.maximumf %398, %401 : vector<8x1xf32>
    %403 = vector.extract_strided_slice %367 {offsets = [0, 35], sizes = [8, 7], strides = [1, 1]} : vector<8x256xf32> to vector<8x7xf32>
    %cst_198 = arith.constant dense<0xFF800000> : vector<8xf32>
    %404 = vector.multi_reduction <maximumf>, %403, %cst_198 [1] : vector<8x7xf32> to vector<8xf32>
    %405 = vector.shape_cast %404 : vector<8xf32> to vector<8x1xf32>
    %406 = arith.maximumf %402, %405 : vector<8x1xf32>
    %407 = vector.extract_strided_slice %367 {offsets = [0, 51], sizes = [8, 7], strides = [1, 1]} : vector<8x256xf32> to vector<8x7xf32>
    %cst_199 = arith.constant dense<0xFF800000> : vector<8xf32>
    %408 = vector.multi_reduction <maximumf>, %407, %cst_199 [1] : vector<8x7xf32> to vector<8xf32>
    %409 = vector.shape_cast %408 : vector<8xf32> to vector<8x1xf32>
    %410 = arith.maximumf %406, %409 : vector<8x1xf32>
    %411 = vector.extract_strided_slice %367 {offsets = [0, 67], sizes = [8, 7], strides = [1, 1]} : vector<8x256xf32> to vector<8x7xf32>
    %cst_200 = arith.constant dense<0xFF800000> : vector<8xf32>
    %412 = vector.multi_reduction <maximumf>, %411, %cst_200 [1] : vector<8x7xf32> to vector<8xf32>
    %413 = vector.shape_cast %412 : vector<8xf32> to vector<8x1xf32>
    %414 = arith.maximumf %410, %413 : vector<8x1xf32>
    %415 = vector.extract_strided_slice %367 {offsets = [0, 83], sizes = [8, 7], strides = [1, 1]} : vector<8x256xf32> to vector<8x7xf32>
    %cst_201 = arith.constant dense<0xFF800000> : vector<8xf32>
    %416 = vector.multi_reduction <maximumf>, %415, %cst_201 [1] : vector<8x7xf32> to vector<8xf32>
    %417 = vector.shape_cast %416 : vector<8xf32> to vector<8x1xf32>
    %418 = arith.maximumf %414, %417 : vector<8x1xf32>
    %419 = vector.extract_strided_slice %367 {offsets = [0, 99], sizes = [8, 7], strides = [1, 1]} : vector<8x256xf32> to vector<8x7xf32>
    %cst_202 = arith.constant dense<0xFF800000> : vector<8xf32>
    %420 = vector.multi_reduction <maximumf>, %419, %cst_202 [1] : vector<8x7xf32> to vector<8xf32>
    %421 = vector.shape_cast %420 : vector<8xf32> to vector<8x1xf32>
    %422 = arith.maximumf %418, %421 : vector<8x1xf32>
    %c0_203 = arith.constant 0 : index
    %c1_204 = arith.constant 1 : index
    %423 = vector.load %arg20[%c0_203, %c1_204] : memref<8x16xf32, #tpu.memory_space<vmem>>, vector<8x1xf32>
    tpu.vector_store %arg20[%c0_203, %c1_204], %422 {strides = array<i32>} : memref<8x16xf32, #tpu.memory_space<vmem>>, vector<8x1xf32>,
    %424 = vector.extract_strided_slice %367 {offsets = [0, 6], sizes = [8, 7], strides = [1, 1]} : vector<8x256xf32> to vector<8x7xf32>
    %cst_205 = arith.constant dense<0xFF800000> : vector<8xf32>
    %425 = vector.multi_reduction <maximumf>, %424, %cst_205 [1] : vector<8x7xf32> to vector<8xf32>
    %426 = vector.shape_cast %425 : vector<8xf32> to vector<8x1xf32>
    %427 = vector.extract_strided_slice %367 {offsets = [0, 22], sizes = [8, 7], strides = [1, 1]} : vector<8x256xf32> to vector<8x7xf32>
    %cst_206 = arith.constant dense<0xFF800000> : vector<8xf32>
    %428 = vector.multi_reduction <maximumf>, %427, %cst_206 [1] : vector<8x7xf32> to vector<8xf32>
    %429 = vector.shape_cast %428 : vector<8xf32> to vector<8x1xf32>
    %430 = arith.maximumf %426, %429 : vector<8x1xf32>
    %431 = vector.extract_strided_slice %367 {offsets = [0, 38], sizes = [8, 7], strides = [1, 1]} : vector<8x256xf32> to vector<8x7xf32>
    %cst_207 = arith.constant dense<0xFF800000> : vector<8xf32>
    %432 = vector.multi_reduction <maximumf>, %431, %cst_207 [1] : vector<8x7xf32> to vector<8xf32>
    %433 = vector.shape_cast %432 : vector<8xf32> to vector<8x1xf32>
    %434 = arith.maximumf %430, %433 : vector<8x1xf32>
    %435 = vector.extract_strided_slice %367 {offsets = [0, 54], sizes = [8, 7], strides = [1, 1]} : vector<8x256xf32> to vector<8x7xf32>
    %cst_208 = arith.constant dense<0xFF800000> : vector<8xf32>
    %436 = vector.multi_reduction <maximumf>, %435, %cst_208 [1] : vector<8x7xf32> to vector<8xf32>
    %437 = vector.shape_cast %436 : vector<8xf32> to vector<8x1xf32>
    %438 = arith.maximumf %434, %437 : vector<8x1xf32>
    %439 = vector.extract_strided_slice %367 {offsets = [0, 70], sizes = [8, 7], strides = [1, 1]} : vector<8x256xf32> to vector<8x7xf32>
    %cst_209 = arith.constant dense<0xFF800000> : vector<8xf32>
    %440 = vector.multi_reduction <maximumf>, %439, %cst_209 [1] : vector<8x7xf32> to vector<8xf32>
    %441 = vector.shape_cast %440 : vector<8xf32> to vector<8x1xf32>
    %442 = arith.maximumf %438, %441 : vector<8x1xf32>
    %443 = vector.extract_strided_slice %367 {offsets = [0, 86], sizes = [8, 7], strides = [1, 1]} : vector<8x256xf32> to vector<8x7xf32>
    %cst_210 = arith.constant dense<0xFF800000> : vector<8xf32>
    %444 = vector.multi_reduction <maximumf>, %443, %cst_210 [1] : vector<8x7xf32> to vector<8xf32>
    %445 = vector.shape_cast %444 : vector<8xf32> to vector<8x1xf32>
    %446 = arith.maximumf %442, %445 : vector<8x1xf32>
    %447 = vector.extract_strided_slice %367 {offsets = [0, 102], sizes = [8, 7], strides = [1, 1]} : vector<8x256xf32> to vector<8x7xf32>
    %cst_211 = arith.constant dense<0xFF800000> : vector<8xf32>
    %448 = vector.multi_reduction <maximumf>, %447, %cst_211 [1] : vector<8x7xf32> to vector<8xf32>
    %449 = vector.shape_cast %448 : vector<8xf32> to vector<8x1xf32>
    %450 = arith.maximumf %446, %449 : vector<8x1xf32>
    %c0_212 = arith.constant 0 : index
    %c2 = arith.constant 2 : index
    %451 = vector.load %arg20[%c0_212, %c2] : memref<8x16xf32, #tpu.memory_space<vmem>>, vector<8x1xf32>
    tpu.vector_store %arg20[%c0_212, %c2], %450 {strides = array<i32>} : memref<8x16xf32, #tpu.memory_space<vmem>>, vector<8x1xf32>,
    %452 = vector.extract_strided_slice %367 {offsets = [0, 9], sizes = [8, 7], strides = [1, 1]} : vector<8x256xf32> to vector<8x7xf32>
    %cst_213 = arith.constant dense<0xFF800000> : vector<8xf32>
    %453 = vector.multi_reduction <maximumf>, %452, %cst_213 [1] : vector<8x7xf32> to vector<8xf32>
    %454 = vector.shape_cast %453 : vector<8xf32> to vector<8x1xf32>
    %455 = vector.extract_strided_slice %367 {offsets = [0, 25], sizes = [8, 7], strides = [1, 1]} : vector<8x256xf32> to vector<8x7xf32>
    %cst_214 = arith.constant dense<0xFF800000> : vector<8xf32>
    %456 = vector.multi_reduction <maximumf>, %455, %cst_214 [1] : vector<8x7xf32> to vector<8xf32>
    %457 = vector.shape_cast %456 : vector<8xf32> to vector<8x1xf32>
    %458 = arith.maximumf %454, %457 : vector<8x1xf32>
    %459 = vector.extract_strided_slice %367 {offsets = [0, 41], sizes = [8, 7], strides = [1, 1]} : vector<8x256xf32> to vector<8x7xf32>
    %cst_215 = arith.constant dense<0xFF800000> : vector<8xf32>
    %460 = vector.multi_reduction <maximumf>, %459, %cst_215 [1] : vector<8x7xf32> to vector<8xf32>
    %461 = vector.shape_cast %460 : vector<8xf32> to vector<8x1xf32>
    %462 = arith.maximumf %458, %461 : vector<8x1xf32>
    %463 = vector.extract_strided_slice %367 {offsets = [0, 57], sizes = [8, 7], strides = [1, 1]} : vector<8x256xf32> to vector<8x7xf32>
    %cst_216 = arith.constant dense<0xFF800000> : vector<8xf32>
    %464 = vector.multi_reduction <maximumf>, %463, %cst_216 [1] : vector<8x7xf32> to vector<8xf32>
    %465 = vector.shape_cast %464 : vector<8xf32> to vector<8x1xf32>
    %466 = arith.maximumf %462, %465 : vector<8x1xf32>
    %467 = vector.extract_strided_slice %367 {offsets = [0, 73], sizes = [8, 7], strides = [1, 1]} : vector<8x256xf32> to vector<8x7xf32>
    %cst_217 = arith.constant dense<0xFF800000> : vector<8xf32>
    %468 = vector.multi_reduction <maximumf>, %467, %cst_217 [1] : vector<8x7xf32> to vector<8xf32>
    %469 = vector.shape_cast %468 : vector<8xf32> to vector<8x1xf32>
    %470 = arith.maximumf %466, %469 : vector<8x1xf32>
    %471 = vector.extract_strided_slice %367 {offsets = [0, 89], sizes = [8, 7], strides = [1, 1]} : vector<8x256xf32> to vector<8x7xf32>
    %cst_218 = arith.constant dense<0xFF800000> : vector<8xf32>
    %472 = vector.multi_reduction <maximumf>, %471, %cst_218 [1] : vector<8x7xf32> to vector<8xf32>
    %473 = vector.shape_cast %472 : vector<8xf32> to vector<8x1xf32>
    %474 = arith.maximumf %470, %473 : vector<8x1xf32>
    %475 = vector.extract_strided_slice %367 {offsets = [0, 105], sizes = [8, 7], strides = [1, 1]} : vector<8x256xf32> to vector<8x7xf32>
    %cst_219 = arith.constant dense<0xFF800000> : vector<8xf32>
    %476 = vector.multi_reduction <maximumf>, %475, %cst_219 [1] : vector<8x7xf32> to vector<8xf32>
    %477 = vector.shape_cast %476 : vector<8xf32> to vector<8x1xf32>
    %478 = arith.maximumf %474, %477 : vector<8x1xf32>
    %c0_220 = arith.constant 0 : index
    %c3_221 = arith.constant 3 : index
    %479 = vector.load %arg20[%c0_220, %c3_221] : memref<8x16xf32, #tpu.memory_space<vmem>>, vector<8x1xf32>
    tpu.vector_store %arg20[%c0_220, %c3_221], %478 {strides = array<i32>} : memref<8x16xf32, #tpu.memory_space<vmem>>, vector<8x1xf32>,
    %480 = vector.extract_strided_slice %367 {offsets = [0, 48], sizes = [8, 7], strides = [1, 1]} : vector<8x256xf32> to vector<8x7xf32>
    %cst_222 = arith.constant dense<0xFF800000> : vector<8xf32>
    %481 = vector.multi_reduction <maximumf>, %480, %cst_222 [1] : vector<8x7xf32> to vector<8xf32>
    %482 = vector.shape_cast %481 : vector<8xf32> to vector<8x1xf32>
    %483 = vector.extract_strided_slice %367 {offsets = [0, 64], sizes = [8, 7], strides = [1, 1]} : vector<8x256xf32> to vector<8x7xf32>
    %cst_223 = arith.constant dense<0xFF800000> : vector<8xf32>
    %484 = vector.multi_reduction <maximumf>, %483, %cst_223 [1] : vector<8x7xf32> to vector<8xf32>
    %485 = vector.shape_cast %484 : vector<8xf32> to vector<8x1xf32>
    %486 = arith.maximumf %482, %485 : vector<8x1xf32>
    %487 = vector.extract_strided_slice %367 {offsets = [0, 80], sizes = [8, 7], strides = [1, 1]} : vector<8x256xf32> to vector<8x7xf32>
    %cst_224 = arith.constant dense<0xFF800000> : vector<8xf32>
    %488 = vector.multi_reduction <maximumf>, %487, %cst_224 [1] : vector<8x7xf32> to vector<8xf32>
    %489 = vector.shape_cast %488 : vector<8xf32> to vector<8x1xf32>
    %490 = arith.maximumf %486, %489 : vector<8x1xf32>
    %491 = vector.extract_strided_slice %367 {offsets = [0, 96], sizes = [8, 7], strides = [1, 1]} : vector<8x256xf32> to vector<8x7xf32>
    %cst_225 = arith.constant dense<0xFF800000> : vector<8xf32>
    %492 = vector.multi_reduction <maximumf>, %491, %cst_225 [1] : vector<8x7xf32> to vector<8xf32>
    %493 = vector.shape_cast %492 : vector<8xf32> to vector<8x1xf32>
    %494 = arith.maximumf %490, %493 : vector<8x1xf32>
    %495 = vector.extract_strided_slice %367 {offsets = [0, 112], sizes = [8, 7], strides = [1, 1]} : vector<8x256xf32> to vector<8x7xf32>
    %cst_226 = arith.constant dense<0xFF800000> : vector<8xf32>
    %496 = vector.multi_reduction <maximumf>, %495, %cst_226 [1] : vector<8x7xf32> to vector<8xf32>
    %497 = vector.shape_cast %496 : vector<8xf32> to vector<8x1xf32>
    %498 = arith.maximumf %494, %497 : vector<8x1xf32>
    %499 = vector.extract_strided_slice %367 {offsets = [0, 128], sizes = [8, 7], strides = [1, 1]} : vector<8x256xf32> to vector<8x7xf32>
    %cst_227 = arith.constant dense<0xFF800000> : vector<8xf32>
    %500 = vector.multi_reduction <maximumf>, %499, %cst_227 [1] : vector<8x7xf32> to vector<8xf32>
    %501 = vector.shape_cast %500 : vector<8xf32> to vector<8x1xf32>
    %502 = arith.maximumf %498, %501 : vector<8x1xf32>
    %503 = vector.extract_strided_slice %367 {offsets = [0, 144], sizes = [8, 7], strides = [1, 1]} : vector<8x256xf32> to vector<8x7xf32>
    %cst_228 = arith.constant dense<0xFF800000> : vector<8xf32>
    %504 = vector.multi_reduction <maximumf>, %503, %cst_228 [1] : vector<8x7xf32> to vector<8xf32>
    %505 = vector.shape_cast %504 : vector<8xf32> to vector<8x1xf32>
    %506 = arith.maximumf %502, %505 : vector<8x1xf32>
    %c0_229 = arith.constant 0 : index
    %c4 = arith.constant 4 : index
    %507 = vector.load %arg20[%c0_229, %c4] : memref<8x16xf32, #tpu.memory_space<vmem>>, vector<8x1xf32>
    tpu.vector_store %arg20[%c0_229, %c4], %506 {strides = array<i32>} : memref<8x16xf32, #tpu.memory_space<vmem>>, vector<8x1xf32>,
    %508 = vector.extract_strided_slice %367 {offsets = [0, 51], sizes = [8, 7], strides = [1, 1]} : vector<8x256xf32> to vector<8x7xf32>
    %cst_230 = arith.constant dense<0xFF800000> : vector<8xf32>
    %509 = vector.multi_reduction <maximumf>, %508, %cst_230 [1] : vector<8x7xf32> to vector<8xf32>
    %510 = vector.shape_cast %509 : vector<8xf32> to vector<8x1xf32>
    %511 = vector.extract_strided_slice %367 {offsets = [0, 67], sizes = [8, 7], strides = [1, 1]} : vector<8x256xf32> to vector<8x7xf32>
    %cst_231 = arith.constant dense<0xFF800000> : vector<8xf32>
    %512 = vector.multi_reduction <maximumf>, %511, %cst_231 [1] : vector<8x7xf32> to vector<8xf32>
    %513 = vector.shape_cast %512 : vector<8xf32> to vector<8x1xf32>
    %514 = arith.maximumf %510, %513 : vector<8x1xf32>
    %515 = vector.extract_strided_slice %367 {offsets = [0, 83], sizes = [8, 7], strides = [1, 1]} : vector<8x256xf32> to vector<8x7xf32>
    %cst_232 = arith.constant dense<0xFF800000> : vector<8xf32>
    %516 = vector.multi_reduction <maximumf>, %515, %cst_232 [1] : vector<8x7xf32> to vector<8xf32>
    %517 = vector.shape_cast %516 : vector<8xf32> to vector<8x1xf32>
    %518 = arith.maximumf %514, %517 : vector<8x1xf32>
    %519 = vector.extract_strided_slice %367 {offsets = [0, 99], sizes = [8, 7], strides = [1, 1]} : vector<8x256xf32> to vector<8x7xf32>
    %cst_233 = arith.constant dense<0xFF800000> : vector<8xf32>
    %520 = vector.multi_reduction <maximumf>, %519, %cst_233 [1] : vector<8x7xf32> to vector<8xf32>
    %521 = vector.shape_cast %520 : vector<8xf32> to vector<8x1xf32>
    %522 = arith.maximumf %518, %521 : vector<8x1xf32>
    %523 = vector.extract_strided_slice %367 {offsets = [0, 115], sizes = [8, 7], strides = [1, 1]} : vector<8x256xf32> to vector<8x7xf32>
    %cst_234 = arith.constant dense<0xFF800000> : vector<8xf32>
    %524 = vector.multi_reduction <maximumf>, %523, %cst_234 [1] : vector<8x7xf32> to vector<8xf32>
    %525 = vector.shape_cast %524 : vector<8xf32> to vector<8x1xf32>
    %526 = arith.maximumf %522, %525 : vector<8x1xf32>
    %527 = vector.extract_strided_slice %367 {offsets = [0, 131], sizes = [8, 7], strides = [1, 1]} : vector<8x256xf32> to vector<8x7xf32>
    %cst_235 = arith.constant dense<0xFF800000> : vector<8xf32>
    %528 = vector.multi_reduction <maximumf>, %527, %cst_235 [1] : vector<8x7xf32> to vector<8xf32>
    %529 = vector.shape_cast %528 : vector<8xf32> to vector<8x1xf32>
    %530 = arith.maximumf %526, %529 : vector<8x1xf32>
    %531 = vector.extract_strided_slice %367 {offsets = [0, 147], sizes = [8, 7], strides = [1, 1]} : vector<8x256xf32> to vector<8x7xf32>
    %cst_236 = arith.constant dense<0xFF800000> : vector<8xf32>
    %532 = vector.multi_reduction <maximumf>, %531, %cst_236 [1] : vector<8x7xf32> to vector<8xf32>
    %533 = vector.shape_cast %532 : vector<8xf32> to vector<8x1xf32>
    %534 = arith.maximumf %530, %533 : vector<8x1xf32>
    %c0_237 = arith.constant 0 : index
    %c5_238 = arith.constant 5 : index
    %535 = vector.load %arg20[%c0_237, %c5_238] : memref<8x16xf32, #tpu.memory_space<vmem>>, vector<8x1xf32>
    tpu.vector_store %arg20[%c0_237, %c5_238], %534 {strides = array<i32>} : memref<8x16xf32, #tpu.memory_space<vmem>>, vector<8x1xf32>,
    %536 = vector.extract_strided_slice %367 {offsets = [0, 54], sizes = [8, 7], strides = [1, 1]} : vector<8x256xf32> to vector<8x7xf32>
    %cst_239 = arith.constant dense<0xFF800000> : vector<8xf32>
    %537 = vector.multi_reduction <maximumf>, %536, %cst_239 [1] : vector<8x7xf32> to vector<8xf32>
    %538 = vector.shape_cast %537 : vector<8xf32> to vector<8x1xf32>
    %539 = vector.extract_strided_slice %367 {offsets = [0, 70], sizes = [8, 7], strides = [1, 1]} : vector<8x256xf32> to vector<8x7xf32>
    %cst_240 = arith.constant dense<0xFF800000> : vector<8xf32>
    %540 = vector.multi_reduction <maximumf>, %539, %cst_240 [1] : vector<8x7xf32> to vector<8xf32>
    %541 = vector.shape_cast %540 : vector<8xf32> to vector<8x1xf32>
    %542 = arith.maximumf %538, %541 : vector<8x1xf32>
    %543 = vector.extract_strided_slice %367 {offsets = [0, 86], sizes = [8, 7], strides = [1, 1]} : vector<8x256xf32> to vector<8x7xf32>
    %cst_241 = arith.constant dense<0xFF800000> : vector<8xf32>
    %544 = vector.multi_reduction <maximumf>, %543, %cst_241 [1] : vector<8x7xf32> to vector<8xf32>
    %545 = vector.shape_cast %544 : vector<8xf32> to vector<8x1xf32>
    %546 = arith.maximumf %542, %545 : vector<8x1xf32>
    %547 = vector.extract_strided_slice %367 {offsets = [0, 102], sizes = [8, 7], strides = [1, 1]} : vector<8x256xf32> to vector<8x7xf32>
    %cst_242 = arith.constant dense<0xFF800000> : vector<8xf32>
    %548 = vector.multi_reduction <maximumf>, %547, %cst_242 [1] : vector<8x7xf32> to vector<8xf32>
    %549 = vector.shape_cast %548 : vector<8xf32> to vector<8x1xf32>
    %550 = arith.maximumf %546, %549 : vector<8x1xf32>
    %551 = vector.extract_strided_slice %367 {offsets = [0, 118], sizes = [8, 7], strides = [1, 1]} : vector<8x256xf32> to vector<8x7xf32>
    %cst_243 = arith.constant dense<0xFF800000> : vector<8xf32>
    %552 = vector.multi_reduction <maximumf>, %551, %cst_243 [1] : vector<8x7xf32> to vector<8xf32>
    %553 = vector.shape_cast %552 : vector<8xf32> to vector<8x1xf32>
    %554 = arith.maximumf %550, %553 : vector<8x1xf32>
    %555 = vector.extract_strided_slice %367 {offsets = [0, 134], sizes = [8, 7], strides = [1, 1]} : vector<8x256xf32> to vector<8x7xf32>
    %cst_244 = arith.constant dense<0xFF800000> : vector<8xf32>
    %556 = vector.multi_reduction <maximumf>, %555, %cst_244 [1] : vector<8x7xf32> to vector<8xf32>
    %557 = vector.shape_cast %556 : vector<8xf32> to vector<8x1xf32>
    %558 = arith.maximumf %554, %557 : vector<8x1xf32>
    %559 = vector.extract_strided_slice %367 {offsets = [0, 150], sizes = [8, 7], strides = [1, 1]} : vector<8x256xf32> to vector<8x7xf32>
    %cst_245 = arith.constant dense<0xFF800000> : vector<8xf32>
    %560 = vector.multi_reduction <maximumf>, %559, %cst_245 [1] : vector<8x7xf32> to vector<8xf32>
    %561 = vector.shape_cast %560 : vector<8xf32> to vector<8x1xf32>
    %562 = arith.maximumf %558, %561 : vector<8x1xf32>
    %c0_246 = arith.constant 0 : index
    %c6 = arith.constant 6 : index
    %563 = vector.load %arg20[%c0_246, %c6] : memref<8x16xf32, #tpu.memory_space<vmem>>, vector<8x1xf32>
    tpu.vector_store %arg20[%c0_246, %c6], %562 {strides = array<i32>} : memref<8x16xf32, #tpu.memory_space<vmem>>, vector<8x1xf32>,
    %564 = vector.extract_strided_slice %367 {offsets = [0, 57], sizes = [8, 7], strides = [1, 1]} : vector<8x256xf32> to vector<8x7xf32>
    %cst_247 = arith.constant dense<0xFF800000> : vector<8xf32>
    %565 = vector.multi_reduction <maximumf>, %564, %cst_247 [1] : vector<8x7xf32> to vector<8xf32>
    %566 = vector.shape_cast %565 : vector<8xf32> to vector<8x1xf32>
    %567 = vector.extract_strided_slice %367 {offsets = [0, 73], sizes = [8, 7], strides = [1, 1]} : vector<8x256xf32> to vector<8x7xf32>
    %cst_248 = arith.constant dense<0xFF800000> : vector<8xf32>
    %568 = vector.multi_reduction <maximumf>, %567, %cst_248 [1] : vector<8x7xf32> to vector<8xf32>
    %569 = vector.shape_cast %568 : vector<8xf32> to vector<8x1xf32>
    %570 = arith.maximumf %566, %569 : vector<8x1xf32>
    %571 = vector.extract_strided_slice %367 {offsets = [0, 89], sizes = [8, 7], strides = [1, 1]} : vector<8x256xf32> to vector<8x7xf32>
    %cst_249 = arith.constant dense<0xFF800000> : vector<8xf32>
    %572 = vector.multi_reduction <maximumf>, %571, %cst_249 [1] : vector<8x7xf32> to vector<8xf32>
    %573 = vector.shape_cast %572 : vector<8xf32> to vector<8x1xf32>
    %574 = arith.maximumf %570, %573 : vector<8x1xf32>
    %575 = vector.extract_strided_slice %367 {offsets = [0, 105], sizes = [8, 7], strides = [1, 1]} : vector<8x256xf32> to vector<8x7xf32>
    %cst_250 = arith.constant dense<0xFF800000> : vector<8xf32>
    %576 = vector.multi_reduction <maximumf>, %575, %cst_250 [1] : vector<8x7xf32> to vector<8xf32>
    %577 = vector.shape_cast %576 : vector<8xf32> to vector<8x1xf32>
    %578 = arith.maximumf %574, %577 : vector<8x1xf32>
    %579 = vector.extract_strided_slice %367 {offsets = [0, 121], sizes = [8, 7], strides = [1, 1]} : vector<8x256xf32> to vector<8x7xf32>
    %cst_251 = arith.constant dense<0xFF800000> : vector<8xf32>
    %580 = vector.multi_reduction <maximumf>, %579, %cst_251 [1] : vector<8x7xf32> to vector<8xf32>
    %581 = vector.shape_cast %580 : vector<8xf32> to vector<8x1xf32>
    %582 = arith.maximumf %578, %581 : vector<8x1xf32>
    %583 = vector.extract_strided_slice %367 {offsets = [0, 137], sizes = [8, 7], strides = [1, 1]} : vector<8x256xf32> to vector<8x7xf32>
    %cst_252 = arith.constant dense<0xFF800000> : vector<8xf32>
    %584 = vector.multi_reduction <maximumf>, %583, %cst_252 [1] : vector<8x7xf32> to vector<8xf32>
    %585 = vector.shape_cast %584 : vector<8xf32> to vector<8x1xf32>
    %586 = arith.maximumf %582, %585 : vector<8x1xf32>
    %587 = vector.extract_strided_slice %367 {offsets = [0, 153], sizes = [8, 7], strides = [1, 1]} : vector<8x256xf32> to vector<8x7xf32>
    %cst_253 = arith.constant dense<0xFF800000> : vector<8xf32>
    %588 = vector.multi_reduction <maximumf>, %587, %cst_253 [1] : vector<8x7xf32> to vector<8xf32>
    %589 = vector.shape_cast %588 : vector<8xf32> to vector<8x1xf32>
    %590 = arith.maximumf %586, %589 : vector<8x1xf32>
    %c0_254 = arith.constant 0 : index
    %c7 = arith.constant 7 : index
    %591 = vector.load %arg20[%c0_254, %c7] : memref<8x16xf32, #tpu.memory_space<vmem>>, vector<8x1xf32>
    tpu.vector_store %arg20[%c0_254, %c7], %590 {strides = array<i32>} : memref<8x16xf32, #tpu.memory_space<vmem>>, vector<8x1xf32>,
    %592 = vector.extract_strided_slice %367 {offsets = [0, 96], sizes = [8, 7], strides = [1, 1]} : vector<8x256xf32> to vector<8x7xf32>
    %cst_255 = arith.constant dense<0xFF800000> : vector<8xf32>
    %593 = vector.multi_reduction <maximumf>, %592, %cst_255 [1] : vector<8x7xf32> to vector<8xf32>
    %594 = vector.shape_cast %593 : vector<8xf32> to vector<8x1xf32>
    %595 = vector.extract_strided_slice %367 {offsets = [0, 112], sizes = [8, 7], strides = [1, 1]} : vector<8x256xf32> to vector<8x7xf32>
    %cst_256 = arith.constant dense<0xFF800000> : vector<8xf32>
    %596 = vector.multi_reduction <maximumf>, %595, %cst_256 [1] : vector<8x7xf32> to vector<8xf32>
    %597 = vector.shape_cast %596 : vector<8xf32> to vector<8x1xf32>
    %598 = arith.maximumf %594, %597 : vector<8x1xf32>
    %599 = vector.extract_strided_slice %367 {offsets = [0, 128], sizes = [8, 7], strides = [1, 1]} : vector<8x256xf32> to vector<8x7xf32>
    %cst_257 = arith.constant dense<0xFF800000> : vector<8xf32>
    %600 = vector.multi_reduction <maximumf>, %599, %cst_257 [1] : vector<8x7xf32> to vector<8xf32>
    %601 = vector.shape_cast %600 : vector<8xf32> to vector<8x1xf32>
    %602 = arith.maximumf %598, %601 : vector<8x1xf32>
    %603 = vector.extract_strided_slice %367 {offsets = [0, 144], sizes = [8, 7], strides = [1, 1]} : vector<8x256xf32> to vector<8x7xf32>
    %cst_258 = arith.constant dense<0xFF800000> : vector<8xf32>
    %604 = vector.multi_reduction <maximumf>, %603, %cst_258 [1] : vector<8x7xf32> to vector<8xf32>
    %605 = vector.shape_cast %604 : vector<8xf32> to vector<8x1xf32>
    %606 = arith.maximumf %602, %605 : vector<8x1xf32>
    %607 = vector.extract_strided_slice %367 {offsets = [0, 160], sizes = [8, 7], strides = [1, 1]} : vector<8x256xf32> to vector<8x7xf32>
    %cst_259 = arith.constant dense<0xFF800000> : vector<8xf32>
    %608 = vector.multi_reduction <maximumf>, %607, %cst_259 [1] : vector<8x7xf32> to vector<8xf32>
    %609 = vector.shape_cast %608 : vector<8xf32> to vector<8x1xf32>
    %610 = arith.maximumf %606, %609 : vector<8x1xf32>
    %611 = vector.extract_strided_slice %367 {offsets = [0, 176], sizes = [8, 7], strides = [1, 1]} : vector<8x256xf32> to vector<8x7xf32>
    %cst_260 = arith.constant dense<0xFF800000> : vector<8xf32>
    %612 = vector.multi_reduction <maximumf>, %611, %cst_260 [1] : vector<8x7xf32> to vector<8xf32>
    %613 = vector.shape_cast %612 : vector<8xf32> to vector<8x1xf32>
    %614 = arith.maximumf %610, %613 : vector<8x1xf32>
    %615 = vector.extract_strided_slice %367 {offsets = [0, 192], sizes = [8, 7], strides = [1, 1]} : vector<8x256xf32> to vector<8x7xf32>
    %cst_261 = arith.constant dense<0xFF800000> : vector<8xf32>
    %616 = vector.multi_reduction <maximumf>, %615, %cst_261 [1] : vector<8x7xf32> to vector<8xf32>
    %617 = vector.shape_cast %616 : vector<8xf32> to vector<8x1xf32>
    %618 = arith.maximumf %614, %617 : vector<8x1xf32>
    %c0_262 = arith.constant 0 : index
    %c8_263 = arith.constant 8 : index
    %619 = vector.load %arg20[%c0_262, %c8_263] : memref<8x16xf32, #tpu.memory_space<vmem>>, vector<8x1xf32>
    tpu.vector_store %arg20[%c0_262, %c8_263], %618 {strides = array<i32>} : memref<8x16xf32, #tpu.memory_space<vmem>>, vector<8x1xf32>,
    %620 = vector.extract_strided_slice %367 {offsets = [0, 99], sizes = [8, 7], strides = [1, 1]} : vector<8x256xf32> to vector<8x7xf32>
    %cst_264 = arith.constant dense<0xFF800000> : vector<8xf32>
    %621 = vector.multi_reduction <maximumf>, %620, %cst_264 [1] : vector<8x7xf32> to vector<8xf32>
    %622 = vector.shape_cast %621 : vector<8xf32> to vector<8x1xf32>
    %623 = vector.extract_strided_slice %367 {offsets = [0, 115], sizes = [8, 7], strides = [1, 1]} : vector<8x256xf32> to vector<8x7xf32>
    %cst_265 = arith.constant dense<0xFF800000> : vector<8xf32>
    %624 = vector.multi_reduction <maximumf>, %623, %cst_265 [1] : vector<8x7xf32> to vector<8xf32>
    %625 = vector.shape_cast %624 : vector<8xf32> to vector<8x1xf32>
    %626 = arith.maximumf %622, %625 : vector<8x1xf32>
    %627 = vector.extract_strided_slice %367 {offsets = [0, 131], sizes = [8, 7], strides = [1, 1]} : vector<8x256xf32> to vector<8x7xf32>
    %cst_266 = arith.constant dense<0xFF800000> : vector<8xf32>
    %628 = vector.multi_reduction <maximumf>, %627, %cst_266 [1] : vector<8x7xf32> to vector<8xf32>
    %629 = vector.shape_cast %628 : vector<8xf32> to vector<8x1xf32>
    %630 = arith.maximumf %626, %629 : vector<8x1xf32>
    %631 = vector.extract_strided_slice %367 {offsets = [0, 147], sizes = [8, 7], strides = [1, 1]} : vector<8x256xf32> to vector<8x7xf32>
    %cst_267 = arith.constant dense<0xFF800000> : vector<8xf32>
    %632 = vector.multi_reduction <maximumf>, %631, %cst_267 [1] : vector<8x7xf32> to vector<8xf32>
    %633 = vector.shape_cast %632 : vector<8xf32> to vector<8x1xf32>
    %634 = arith.maximumf %630, %633 : vector<8x1xf32>
    %635 = vector.extract_strided_slice %367 {offsets = [0, 163], sizes = [8, 7], strides = [1, 1]} : vector<8x256xf32> to vector<8x7xf32>
    %cst_268 = arith.constant dense<0xFF800000> : vector<8xf32>
    %636 = vector.multi_reduction <maximumf>, %635, %cst_268 [1] : vector<8x7xf32> to vector<8xf32>
    %637 = vector.shape_cast %636 : vector<8xf32> to vector<8x1xf32>
    %638 = arith.maximumf %634, %637 : vector<8x1xf32>
    %639 = vector.extract_strided_slice %367 {offsets = [0, 179], sizes = [8, 7], strides = [1, 1]} : vector<8x256xf32> to vector<8x7xf32>
    %cst_269 = arith.constant dense<0xFF800000> : vector<8xf32>
    %640 = vector.multi_reduction <maximumf>, %639, %cst_269 [1] : vector<8x7xf32> to vector<8xf32>
    %641 = vector.shape_cast %640 : vector<8xf32> to vector<8x1xf32>
    %642 = arith.maximumf %638, %641 : vector<8x1xf32>
    %643 = vector.extract_strided_slice %367 {offsets = [0, 195], sizes = [8, 7], strides = [1, 1]} : vector<8x256xf32> to vector<8x7xf32>
    %cst_270 = arith.constant dense<0xFF800000> : vector<8xf32>
    %644 = vector.multi_reduction <maximumf>, %643, %cst_270 [1] : vector<8x7xf32> to vector<8xf32>
    %645 = vector.shape_cast %644 : vector<8xf32> to vector<8x1xf32>
    %646 = arith.maximumf %642, %645 : vector<8x1xf32>
    %c0_271 = arith.constant 0 : index
    %c9 = arith.constant 9 : index
    %647 = vector.load %arg20[%c0_271, %c9] : memref<8x16xf32, #tpu.memory_space<vmem>>, vector<8x1xf32>
    tpu.vector_store %arg20[%c0_271, %c9], %646 {strides = array<i32>} : memref<8x16xf32, #tpu.memory_space<vmem>>, vector<8x1xf32>,
    %648 = vector.extract_strided_slice %367 {offsets = [0, 102], sizes = [8, 7], strides = [1, 1]} : vector<8x256xf32> to vector<8x7xf32>
    %cst_272 = arith.constant dense<0xFF800000> : vector<8xf32>
    %649 = vector.multi_reduction <maximumf>, %648, %cst_272 [1] : vector<8x7xf32> to vector<8xf32>
    %650 = vector.shape_cast %649 : vector<8xf32> to vector<8x1xf32>
    %651 = vector.extract_strided_slice %367 {offsets = [0, 118], sizes = [8, 7], strides = [1, 1]} : vector<8x256xf32> to vector<8x7xf32>
    %cst_273 = arith.constant dense<0xFF800000> : vector<8xf32>
    %652 = vector.multi_reduction <maximumf>, %651, %cst_273 [1] : vector<8x7xf32> to vector<8xf32>
    %653 = vector.shape_cast %652 : vector<8xf32> to vector<8x1xf32>
    %654 = arith.maximumf %650, %653 : vector<8x1xf32>
    %655 = vector.extract_strided_slice %367 {offsets = [0, 134], sizes = [8, 7], strides = [1, 1]} : vector<8x256xf32> to vector<8x7xf32>
    %cst_274 = arith.constant dense<0xFF800000> : vector<8xf32>
    %656 = vector.multi_reduction <maximumf>, %655, %cst_274 [1] : vector<8x7xf32> to vector<8xf32>
    %657 = vector.shape_cast %656 : vector<8xf32> to vector<8x1xf32>
    %658 = arith.maximumf %654, %657 : vector<8x1xf32>
    %659 = vector.extract_strided_slice %367 {offsets = [0, 150], sizes = [8, 7], strides = [1, 1]} : vector<8x256xf32> to vector<8x7xf32>
    %cst_275 = arith.constant dense<0xFF800000> : vector<8xf32>
    %660 = vector.multi_reduction <maximumf>, %659, %cst_275 [1] : vector<8x7xf32> to vector<8xf32>
    %661 = vector.shape_cast %660 : vector<8xf32> to vector<8x1xf32>
    %662 = arith.maximumf %658, %661 : vector<8x1xf32>
    %663 = vector.extract_strided_slice %367 {offsets = [0, 166], sizes = [8, 7], strides = [1, 1]} : vector<8x256xf32> to vector<8x7xf32>
    %cst_276 = arith.constant dense<0xFF800000> : vector<8xf32>
    %664 = vector.multi_reduction <maximumf>, %663, %cst_276 [1] : vector<8x7xf32> to vector<8xf32>
    %665 = vector.shape_cast %664 : vector<8xf32> to vector<8x1xf32>
    %666 = arith.maximumf %662, %665 : vector<8x1xf32>
    %667 = vector.extract_strided_slice %367 {offsets = [0, 182], sizes = [8, 7], strides = [1, 1]} : vector<8x256xf32> to vector<8x7xf32>
    %cst_277 = arith.constant dense<0xFF800000> : vector<8xf32>
    %668 = vector.multi_reduction <maximumf>, %667, %cst_277 [1] : vector<8x7xf32> to vector<8xf32>
    %669 = vector.shape_cast %668 : vector<8xf32> to vector<8x1xf32>
    %670 = arith.maximumf %666, %669 : vector<8x1xf32>
    %671 = vector.extract_strided_slice %367 {offsets = [0, 198], sizes = [8, 7], strides = [1, 1]} : vector<8x256xf32> to vector<8x7xf32>
    %cst_278 = arith.constant dense<0xFF800000> : vector<8xf32>
    %672 = vector.multi_reduction <maximumf>, %671, %cst_278 [1] : vector<8x7xf32> to vector<8xf32>
    %673 = vector.shape_cast %672 : vector<8xf32> to vector<8x1xf32>
    %674 = arith.maximumf %670, %673 : vector<8x1xf32>
    %c0_279 = arith.constant 0 : index
    %c10 = arith.constant 10 : index
    %675 = vector.load %arg20[%c0_279, %c10] : memref<8x16xf32, #tpu.memory_space<vmem>>, vector<8x1xf32>
    tpu.vector_store %arg20[%c0_279, %c10], %674 {strides = array<i32>} : memref<8x16xf32, #tpu.memory_space<vmem>>, vector<8x1xf32>,
    %676 = vector.extract_strided_slice %367 {offsets = [0, 105], sizes = [8, 7], strides = [1, 1]} : vector<8x256xf32> to vector<8x7xf32>
    %cst_280 = arith.constant dense<0xFF800000> : vector<8xf32>
    %677 = vector.multi_reduction <maximumf>, %676, %cst_280 [1] : vector<8x7xf32> to vector<8xf32>
    %678 = vector.shape_cast %677 : vector<8xf32> to vector<8x1xf32>
    %679 = vector.extract_strided_slice %367 {offsets = [0, 121], sizes = [8, 7], strides = [1, 1]} : vector<8x256xf32> to vector<8x7xf32>
    %cst_281 = arith.constant dense<0xFF800000> : vector<8xf32>
    %680 = vector.multi_reduction <maximumf>, %679, %cst_281 [1] : vector<8x7xf32> to vector<8xf32>
    %681 = vector.shape_cast %680 : vector<8xf32> to vector<8x1xf32>
    %682 = arith.maximumf %678, %681 : vector<8x1xf32>
    %683 = vector.extract_strided_slice %367 {offsets = [0, 137], sizes = [8, 7], strides = [1, 1]} : vector<8x256xf32> to vector<8x7xf32>
    %cst_282 = arith.constant dense<0xFF800000> : vector<8xf32>
    %684 = vector.multi_reduction <maximumf>, %683, %cst_282 [1] : vector<8x7xf32> to vector<8xf32>
    %685 = vector.shape_cast %684 : vector<8xf32> to vector<8x1xf32>
    %686 = arith.maximumf %682, %685 : vector<8x1xf32>
    %687 = vector.extract_strided_slice %367 {offsets = [0, 153], sizes = [8, 7], strides = [1, 1]} : vector<8x256xf32> to vector<8x7xf32>
    %cst_283 = arith.constant dense<0xFF800000> : vector<8xf32>
    %688 = vector.multi_reduction <maximumf>, %687, %cst_283 [1] : vector<8x7xf32> to vector<8xf32>
    %689 = vector.shape_cast %688 : vector<8xf32> to vector<8x1xf32>
    %690 = arith.maximumf %686, %689 : vector<8x1xf32>
    %691 = vector.extract_strided_slice %367 {offsets = [0, 169], sizes = [8, 7], strides = [1, 1]} : vector<8x256xf32> to vector<8x7xf32>
    %cst_284 = arith.constant dense<0xFF800000> : vector<8xf32>
    %692 = vector.multi_reduction <maximumf>, %691, %cst_284 [1] : vector<8x7xf32> to vector<8xf32>
    %693 = vector.shape_cast %692 : vector<8xf32> to vector<8x1xf32>
    %694 = arith.maximumf %690, %693 : vector<8x1xf32>
    %695 = vector.extract_strided_slice %367 {offsets = [0, 185], sizes = [8, 7], strides = [1, 1]} : vector<8x256xf32> to vector<8x7xf32>
    %cst_285 = arith.constant dense<0xFF800000> : vector<8xf32>
    %696 = vector.multi_reduction <maximumf>, %695, %cst_285 [1] : vector<8x7xf32> to vector<8xf32>
    %697 = vector.shape_cast %696 : vector<8xf32> to vector<8x1xf32>
    %698 = arith.maximumf %694, %697 : vector<8x1xf32>
    %699 = vector.extract_strided_slice %367 {offsets = [0, 201], sizes = [8, 7], strides = [1, 1]} : vector<8x256xf32> to vector<8x7xf32>
    %cst_286 = arith.constant dense<0xFF800000> : vector<8xf32>
    %700 = vector.multi_reduction <maximumf>, %699, %cst_286 [1] : vector<8x7xf32> to vector<8xf32>
    %701 = vector.shape_cast %700 : vector<8xf32> to vector<8x1xf32>
    %702 = arith.maximumf %698, %701 : vector<8x1xf32>
    %c0_287 = arith.constant 0 : index
    %c11 = arith.constant 11 : index
    %703 = vector.load %arg20[%c0_287, %c11] : memref<8x16xf32, #tpu.memory_space<vmem>>, vector<8x1xf32>
    tpu.vector_store %arg20[%c0_287, %c11], %702 {strides = array<i32>} : memref<8x16xf32, #tpu.memory_space<vmem>>, vector<8x1xf32>,
    %704 = vector.extract_strided_slice %367 {offsets = [0, 144], sizes = [8, 7], strides = [1, 1]} : vector<8x256xf32> to vector<8x7xf32>
    %cst_288 = arith.constant dense<0xFF800000> : vector<8xf32>
    %705 = vector.multi_reduction <maximumf>, %704, %cst_288 [1] : vector<8x7xf32> to vector<8xf32>
    %706 = vector.shape_cast %705 : vector<8xf32> to vector<8x1xf32>
    %707 = vector.extract_strided_slice %367 {offsets = [0, 160], sizes = [8, 7], strides = [1, 1]} : vector<8x256xf32> to vector<8x7xf32>
    %cst_289 = arith.constant dense<0xFF800000> : vector<8xf32>
    %708 = vector.multi_reduction <maximumf>, %707, %cst_289 [1] : vector<8x7xf32> to vector<8xf32>
    %709 = vector.shape_cast %708 : vector<8xf32> to vector<8x1xf32>
    %710 = arith.maximumf %706, %709 : vector<8x1xf32>
    %711 = vector.extract_strided_slice %367 {offsets = [0, 176], sizes = [8, 7], strides = [1, 1]} : vector<8x256xf32> to vector<8x7xf32>
    %cst_290 = arith.constant dense<0xFF800000> : vector<8xf32>
    %712 = vector.multi_reduction <maximumf>, %711, %cst_290 [1] : vector<8x7xf32> to vector<8xf32>
    %713 = vector.shape_cast %712 : vector<8xf32> to vector<8x1xf32>
    %714 = arith.maximumf %710, %713 : vector<8x1xf32>
    %715 = vector.extract_strided_slice %367 {offsets = [0, 192], sizes = [8, 7], strides = [1, 1]} : vector<8x256xf32> to vector<8x7xf32>
    %cst_291 = arith.constant dense<0xFF800000> : vector<8xf32>
    %716 = vector.multi_reduction <maximumf>, %715, %cst_291 [1] : vector<8x7xf32> to vector<8xf32>
    %717 = vector.shape_cast %716 : vector<8xf32> to vector<8x1xf32>
    %718 = arith.maximumf %714, %717 : vector<8x1xf32>
    %719 = vector.extract_strided_slice %367 {offsets = [0, 208], sizes = [8, 7], strides = [1, 1]} : vector<8x256xf32> to vector<8x7xf32>
    %cst_292 = arith.constant dense<0xFF800000> : vector<8xf32>
    %720 = vector.multi_reduction <maximumf>, %719, %cst_292 [1] : vector<8x7xf32> to vector<8xf32>
    %721 = vector.shape_cast %720 : vector<8xf32> to vector<8x1xf32>
    %722 = arith.maximumf %718, %721 : vector<8x1xf32>
    %723 = vector.extract_strided_slice %367 {offsets = [0, 224], sizes = [8, 7], strides = [1, 1]} : vector<8x256xf32> to vector<8x7xf32>
    %cst_293 = arith.constant dense<0xFF800000> : vector<8xf32>
    %724 = vector.multi_reduction <maximumf>, %723, %cst_293 [1] : vector<8x7xf32> to vector<8xf32>
    %725 = vector.shape_cast %724 : vector<8xf32> to vector<8x1xf32>
    %726 = arith.maximumf %722, %725 : vector<8x1xf32>
    %727 = vector.extract_strided_slice %367 {offsets = [0, 240], sizes = [8, 7], strides = [1, 1]} : vector<8x256xf32> to vector<8x7xf32>
    %cst_294 = arith.constant dense<0xFF800000> : vector<8xf32>
    %728 = vector.multi_reduction <maximumf>, %727, %cst_294 [1] : vector<8x7xf32> to vector<8xf32>
    %729 = vector.shape_cast %728 : vector<8xf32> to vector<8x1xf32>
    %730 = arith.maximumf %726, %729 : vector<8x1xf32>
    %c0_295 = arith.constant 0 : index
    %c12 = arith.constant 12 : index
    %731 = vector.load %arg20[%c0_295, %c12] : memref<8x16xf32, #tpu.memory_space<vmem>>, vector<8x1xf32>
    tpu.vector_store %arg20[%c0_295, %c12], %730 {strides = array<i32>} : memref<8x16xf32, #tpu.memory_space<vmem>>, vector<8x1xf32>,
    %732 = vector.extract_strided_slice %367 {offsets = [0, 147], sizes = [8, 7], strides = [1, 1]} : vector<8x256xf32> to vector<8x7xf32>
    %cst_296 = arith.constant dense<0xFF800000> : vector<8xf32>
    %733 = vector.multi_reduction <maximumf>, %732, %cst_296 [1] : vector<8x7xf32> to vector<8xf32>
    %734 = vector.shape_cast %733 : vector<8xf32> to vector<8x1xf32>
    %735 = vector.extract_strided_slice %367 {offsets = [0, 163], sizes = [8, 7], strides = [1, 1]} : vector<8x256xf32> to vector<8x7xf32>
    %cst_297 = arith.constant dense<0xFF800000> : vector<8xf32>
    %736 = vector.multi_reduction <maximumf>, %735, %cst_297 [1] : vector<8x7xf32> to vector<8xf32>
    %737 = vector.shape_cast %736 : vector<8xf32> to vector<8x1xf32>
    %738 = arith.maximumf %734, %737 : vector<8x1xf32>
    %739 = vector.extract_strided_slice %367 {offsets = [0, 179], sizes = [8, 7], strides = [1, 1]} : vector<8x256xf32> to vector<8x7xf32>
    %cst_298 = arith.constant dense<0xFF800000> : vector<8xf32>
    %740 = vector.multi_reduction <maximumf>, %739, %cst_298 [1] : vector<8x7xf32> to vector<8xf32>
    %741 = vector.shape_cast %740 : vector<8xf32> to vector<8x1xf32>
    %742 = arith.maximumf %738, %741 : vector<8x1xf32>
    %743 = vector.extract_strided_slice %367 {offsets = [0, 195], sizes = [8, 7], strides = [1, 1]} : vector<8x256xf32> to vector<8x7xf32>
    %cst_299 = arith.constant dense<0xFF800000> : vector<8xf32>
    %744 = vector.multi_reduction <maximumf>, %743, %cst_299 [1] : vector<8x7xf32> to vector<8xf32>
    %745 = vector.shape_cast %744 : vector<8xf32> to vector<8x1xf32>
    %746 = arith.maximumf %742, %745 : vector<8x1xf32>
    %747 = vector.extract_strided_slice %367 {offsets = [0, 211], sizes = [8, 7], strides = [1, 1]} : vector<8x256xf32> to vector<8x7xf32>
    %cst_300 = arith.constant dense<0xFF800000> : vector<8xf32>
    %748 = vector.multi_reduction <maximumf>, %747, %cst_300 [1] : vector<8x7xf32> to vector<8xf32>
    %749 = vector.shape_cast %748 : vector<8xf32> to vector<8x1xf32>
    %750 = arith.maximumf %746, %749 : vector<8x1xf32>
    %751 = vector.extract_strided_slice %367 {offsets = [0, 227], sizes = [8, 7], strides = [1, 1]} : vector<8x256xf32> to vector<8x7xf32>
    %cst_301 = arith.constant dense<0xFF800000> : vector<8xf32>
    %752 = vector.multi_reduction <maximumf>, %751, %cst_301 [1] : vector<8x7xf32> to vector<8xf32>
    %753 = vector.shape_cast %752 : vector<8xf32> to vector<8x1xf32>
    %754 = arith.maximumf %750, %753 : vector<8x1xf32>
    %755 = vector.extract_strided_slice %367 {offsets = [0, 243], sizes = [8, 7], strides = [1, 1]} : vector<8x256xf32> to vector<8x7xf32>
    %cst_302 = arith.constant dense<0xFF800000> : vector<8xf32>
    %756 = vector.multi_reduction <maximumf>, %755, %cst_302 [1] : vector<8x7xf32> to vector<8xf32>
    %757 = vector.shape_cast %756 : vector<8xf32> to vector<8x1xf32>
    %758 = arith.maximumf %754, %757 : vector<8x1xf32>
    %c0_303 = arith.constant 0 : index
    %c13 = arith.constant 13 : index
    %759 = vector.load %arg20[%c0_303, %c13] : memref<8x16xf32, #tpu.memory_space<vmem>>, vector<8x1xf32>
    tpu.vector_store %arg20[%c0_303, %c13], %758 {strides = array<i32>} : memref<8x16xf32, #tpu.memory_space<vmem>>, vector<8x1xf32>,
    %760 = vector.extract_strided_slice %367 {offsets = [0, 150], sizes = [8, 7], strides = [1, 1]} : vector<8x256xf32> to vector<8x7xf32>
    %cst_304 = arith.constant dense<0xFF800000> : vector<8xf32>
    %761 = vector.multi_reduction <maximumf>, %760, %cst_304 [1] : vector<8x7xf32> to vector<8xf32>
    %762 = vector.shape_cast %761 : vector<8xf32> to vector<8x1xf32>
    %763 = vector.extract_strided_slice %367 {offsets = [0, 166], sizes = [8, 7], strides = [1, 1]} : vector<8x256xf32> to vector<8x7xf32>
    %cst_305 = arith.constant dense<0xFF800000> : vector<8xf32>
    %764 = vector.multi_reduction <maximumf>, %763, %cst_305 [1] : vector<8x7xf32> to vector<8xf32>
    %765 = vector.shape_cast %764 : vector<8xf32> to vector<8x1xf32>
    %766 = arith.maximumf %762, %765 : vector<8x1xf32>
    %767 = vector.extract_strided_slice %367 {offsets = [0, 182], sizes = [8, 7], strides = [1, 1]} : vector<8x256xf32> to vector<8x7xf32>
    %cst_306 = arith.constant dense<0xFF800000> : vector<8xf32>
    %768 = vector.multi_reduction <maximumf>, %767, %cst_306 [1] : vector<8x7xf32> to vector<8xf32>
    %769 = vector.shape_cast %768 : vector<8xf32> to vector<8x1xf32>
    %770 = arith.maximumf %766, %769 : vector<8x1xf32>
    %771 = vector.extract_strided_slice %367 {offsets = [0, 198], sizes = [8, 7], strides = [1, 1]} : vector<8x256xf32> to vector<8x7xf32>
    %cst_307 = arith.constant dense<0xFF800000> : vector<8xf32>
    %772 = vector.multi_reduction <maximumf>, %771, %cst_307 [1] : vector<8x7xf32> to vector<8xf32>
    %773 = vector.shape_cast %772 : vector<8xf32> to vector<8x1xf32>
    %774 = arith.maximumf %770, %773 : vector<8x1xf32>
    %775 = vector.extract_strided_slice %367 {offsets = [0, 214], sizes = [8, 7], strides = [1, 1]} : vector<8x256xf32> to vector<8x7xf32>
    %cst_308 = arith.constant dense<0xFF800000> : vector<8xf32>
    %776 = vector.multi_reduction <maximumf>, %775, %cst_308 [1] : vector<8x7xf32> to vector<8xf32>
    %777 = vector.shape_cast %776 : vector<8xf32> to vector<8x1xf32>
    %778 = arith.maximumf %774, %777 : vector<8x1xf32>
    %779 = vector.extract_strided_slice %367 {offsets = [0, 230], sizes = [8, 7], strides = [1, 1]} : vector<8x256xf32> to vector<8x7xf32>
    %cst_309 = arith.constant dense<0xFF800000> : vector<8xf32>
    %780 = vector.multi_reduction <maximumf>, %779, %cst_309 [1] : vector<8x7xf32> to vector<8xf32>
    %781 = vector.shape_cast %780 : vector<8xf32> to vector<8x1xf32>
    %782 = arith.maximumf %778, %781 : vector<8x1xf32>
    %783 = vector.extract_strided_slice %367 {offsets = [0, 246], sizes = [8, 7], strides = [1, 1]} : vector<8x256xf32> to vector<8x7xf32>
    %cst_310 = arith.constant dense<0xFF800000> : vector<8xf32>
    %784 = vector.multi_reduction <maximumf>, %783, %cst_310 [1] : vector<8x7xf32> to vector<8xf32>
    %785 = vector.shape_cast %784 : vector<8xf32> to vector<8x1xf32>
    %786 = arith.maximumf %782, %785 : vector<8x1xf32>
    %c0_311 = arith.constant 0 : index
    %c14 = arith.constant 14 : index
    %787 = vector.load %arg20[%c0_311, %c14] : memref<8x16xf32, #tpu.memory_space<vmem>>, vector<8x1xf32>
    tpu.vector_store %arg20[%c0_311, %c14], %786 {strides = array<i32>} : memref<8x16xf32, #tpu.memory_space<vmem>>, vector<8x1xf32>,
    %788 = vector.extract_strided_slice %367 {offsets = [0, 153], sizes = [8, 7], strides = [1, 1]} : vector<8x256xf32> to vector<8x7xf32>
    %cst_312 = arith.constant dense<0xFF800000> : vector<8xf32>
    %789 = vector.multi_reduction <maximumf>, %788, %cst_312 [1] : vector<8x7xf32> to vector<8xf32>
    %790 = vector.shape_cast %789 : vector<8xf32> to vector<8x1xf32>
    %791 = vector.extract_strided_slice %367 {offsets = [0, 169], sizes = [8, 7], strides = [1, 1]} : vector<8x256xf32> to vector<8x7xf32>
    %cst_313 = arith.constant dense<0xFF800000> : vector<8xf32>
    %792 = vector.multi_reduction <maximumf>, %791, %cst_313 [1] : vector<8x7xf32> to vector<8xf32>
    %793 = vector.shape_cast %792 : vector<8xf32> to vector<8x1xf32>
    %794 = arith.maximumf %790, %793 : vector<8x1xf32>
    %795 = vector.extract_strided_slice %367 {offsets = [0, 185], sizes = [8, 7], strides = [1, 1]} : vector<8x256xf32> to vector<8x7xf32>
    %cst_314 = arith.constant dense<0xFF800000> : vector<8xf32>
    %796 = vector.multi_reduction <maximumf>, %795, %cst_314 [1] : vector<8x7xf32> to vector<8xf32>
    %797 = vector.shape_cast %796 : vector<8xf32> to vector<8x1xf32>
    %798 = arith.maximumf %794, %797 : vector<8x1xf32>
    %799 = vector.extract_strided_slice %367 {offsets = [0, 201], sizes = [8, 7], strides = [1, 1]} : vector<8x256xf32> to vector<8x7xf32>
    %cst_315 = arith.constant dense<0xFF800000> : vector<8xf32>
    %800 = vector.multi_reduction <maximumf>, %799, %cst_315 [1] : vector<8x7xf32> to vector<8xf32>
    %801 = vector.shape_cast %800 : vector<8xf32> to vector<8x1xf32>
    %802 = arith.maximumf %798, %801 : vector<8x1xf32>
    %803 = vector.extract_strided_slice %367 {offsets = [0, 217], sizes = [8, 7], strides = [1, 1]} : vector<8x256xf32> to vector<8x7xf32>
    %cst_316 = arith.constant dense<0xFF800000> : vector<8xf32>
    %804 = vector.multi_reduction <maximumf>, %803, %cst_316 [1] : vector<8x7xf32> to vector<8xf32>
    %805 = vector.shape_cast %804 : vector<8xf32> to vector<8x1xf32>
    %806 = arith.maximumf %802, %805 : vector<8x1xf32>
    %807 = vector.extract_strided_slice %367 {offsets = [0, 233], sizes = [8, 7], strides = [1, 1]} : vector<8x256xf32> to vector<8x7xf32>
    %cst_317 = arith.constant dense<0xFF800000> : vector<8xf32>
    %808 = vector.multi_reduction <maximumf>, %807, %cst_317 [1] : vector<8x7xf32> to vector<8xf32>
    %809 = vector.shape_cast %808 : vector<8xf32> to vector<8x1xf32>
    %810 = arith.maximumf %806, %809 : vector<8x1xf32>
    %811 = vector.extract_strided_slice %367 {offsets = [0, 249], sizes = [8, 7], strides = [1, 1]} : vector<8x256xf32> to vector<8x7xf32>
    %cst_318 = arith.constant dense<0xFF800000> : vector<8xf32>
    %812 = vector.multi_reduction <maximumf>, %811, %cst_318 [1] : vector<8x7xf32> to vector<8xf32>
    %813 = vector.shape_cast %812 : vector<8xf32> to vector<8x1xf32>
    %814 = arith.maximumf %810, %813 : vector<8x1xf32>
    %c0_319 = arith.constant 0 : index
    %c15_320 = arith.constant 15 : index
    %815 = vector.load %arg20[%c0_319, %c15_320] : memref<8x16xf32, #tpu.memory_space<vmem>>, vector<8x1xf32>
    tpu.vector_store %arg20[%c0_319, %c15_320], %814 {strides = array<i32>} : memref<8x16xf32, #tpu.memory_space<vmem>>, vector<8x1xf32>,
    %c0_321 = arith.constant 0 : index
    %c0_322 = arith.constant 0 : index
    %816 = vector.load %arg20[%c0_321, %c0_322] : memref<8x16xf32, #tpu.memory_space<vmem>>, vector<8x16xf32>
    %817 = tpu.iota {dimensions = array<i32: 1>} : vector<1x16xi32>
    %c4_i32 = arith.constant 4 : i32
    %c0_i32_323 = arith.constant 0 : i32
    %818 = arith.cmpi eq, %c4_i32, %c0_i32_323 : i32
    %c1_i32_324 = arith.constant 1 : i32
    %819 = arith.select %818, %c1_i32_324, %c4_i32 : i32
    %820 = vector.broadcast %819 : i32 to vector<1x16xi32>
    %821 = arith.remsi %817, %820 : vector<1x16xi32>
    %c0_i32_325 = arith.constant 0 : i32
    %822 = vector.broadcast %c0_i32_325 : i32 to vector<1x16xi32>
    %823 = arith.cmpi ne, %821, %822 : vector<1x16xi32>
    %c0_i32_326 = arith.constant 0 : i32
    %824 = vector.broadcast %c0_i32_326 : i32 to vector<1x16xi32>
    %825 = arith.cmpi slt, %821, %824 : vector<1x16xi32>
    %c0_i32_327 = arith.constant 0 : i32
    %826 = arith.cmpi slt, %819, %c0_i32_327 : i32
    %827 = vector.broadcast %826 : i1 to vector<1x16xi1>
    %828 = vector.broadcast %827 : vector<1x16xi1> to vector<1x16xi1>
    %829 = arith.xori %825, %828 : vector<1x16xi1>
    %830 = arith.andi %829, %823 : vector<1x16xi1>
    %831 = vector.broadcast %819 : i32 to vector<1x16xi32>
    %832 = arith.addi %821, %831 : vector<1x16xi32>
    %833 = arith.select %830, %832, %821 : vector<1x16xi1>, vector<1x16xi32>
    %c-1_i32_328 = arith.constant -1 : i32
    %834 = vector.broadcast %c-1_i32_328 : i32 to vector<1x16xi32>
    %835 = arith.subi %833, %834 : vector<1x16xi32>
    %c0_i32_329 = arith.constant 0 : i32
    %836 = vector.broadcast %c0_i32_329 : i32 to vector<1x16xi32>
    %837 = arith.cmpi sge, %835, %836 : vector<1x16xi32>
    %c-1_i32_330 = arith.constant -1 : i32
    %838 = vector.broadcast %c-1_i32_330 : i32 to vector<1x16xi32>
    %839 = arith.subi %833, %838 : vector<1x16xi32>
    %c4_i32_331 = arith.constant 4 : i32
    %840 = vector.broadcast %c4_i32_331 : i32 to vector<1x16xi32>
    %841 = arith.cmpi slt, %839, %840 : vector<1x16xi32>
    %842 = arith.andi %837, %841 : vector<1x16xi1>
    %cst_332 = arith.constant 0.000000e+00 : f32
    %843 = vector.shape_cast %842 : vector<1x16xi1> to vector<1x16xi1>
    %844 = vector.broadcast %843 : vector<1x16xi1> to vector<8x16xi1>
    %845 = vector.broadcast %cst_332 : f32 to vector<8x16xf32>
    %846 = arith.select %844, %816, %845 : vector<8x16xi1>, vector<8x16xf32>
    %847 = vector.extract_strided_slice %846 {offsets = [0, 0], sizes = [8, 11], strides = [1, 1]} : vector<8x16xf32> to vector<8x11xf32>
    %c0_333 = arith.constant 0 : index
    %c5_334 = arith.constant 5 : index
    %848 = vector.load %arg19[%c0_333, %c5_334] : memref<72x16xf32, #tpu.memory_space<vmem>>, vector<8x11xf32>
    tpu.vector_store %arg19[%c0_333, %c5_334], %847 {strides = array<i32>} : memref<72x16xf32, #tpu.memory_space<vmem>>, vector<8x11xf32>,
    %cst_335 = arith.constant 0.000000e+00 : f32
    %849 = vector.broadcast %cst_335 : f32 to vector<8x5xf32>
    %c0_336 = arith.constant 0 : index
    %c0_337 = arith.constant 0 : index
    %850 = vector.load %arg19[%c0_336, %c0_337] : memref<72x16xf32, #tpu.memory_space<vmem>>, vector<8x5xf32>
    tpu.vector_store %arg19[%c0_336, %c0_337], %849 {strides = array<i32>} : memref<72x16xf32, #tpu.memory_space<vmem>>, vector<8x5xf32>,
    %851 = vector.extract_strided_slice %816 {offsets = [0, 0], sizes = [8, 12], strides = [1, 1]} : vector<8x16xf32> to vector<8x12xf32>
    %c8_338 = arith.constant 8 : index
    %c4_339 = arith.constant 4 : index
    %852 = vector.load %arg19[%c8_338, %c4_339] : memref<72x16xf32, #tpu.memory_space<vmem>>, vector<8x12xf32>
    tpu.vector_store %arg19[%c8_338, %c4_339], %851 {strides = array<i32>} : memref<72x16xf32, #tpu.memory_space<vmem>>, vector<8x12xf32>,
    %cst_340 = arith.constant 0.000000e+00 : f32
    %853 = vector.broadcast %cst_340 : f32 to vector<8x4xf32>
    %c8_341 = arith.constant 8 : index
    %c0_342 = arith.constant 0 : index
    %854 = vector.load %arg19[%c8_341, %c0_342] : memref<72x16xf32, #tpu.memory_space<vmem>>, vector<8x4xf32>
    tpu.vector_store %arg19[%c8_341, %c0_342], %853 {strides = array<i32>} : memref<72x16xf32, #tpu.memory_space<vmem>>, vector<8x4xf32>,
    %c1_i32_343 = arith.constant 1 : i32
    %855 = vector.broadcast %c1_i32_343 : i32 to vector<1x16xi32>
    %856 = arith.subi %833, %855 : vector<1x16xi32>
    %c0_i32_344 = arith.constant 0 : i32
    %857 = vector.broadcast %c0_i32_344 : i32 to vector<1x16xi32>
    %858 = arith.cmpi sge, %856, %857 : vector<1x16xi32>
    %c1_i32_345 = arith.constant 1 : i32
    %859 = vector.broadcast %c1_i32_345 : i32 to vector<1x16xi32>
    %860 = arith.subi %833, %859 : vector<1x16xi32>
    %c4_i32_346 = arith.constant 4 : i32
    %861 = vector.broadcast %c4_i32_346 : i32 to vector<1x16xi32>
    %862 = arith.cmpi slt, %860, %861 : vector<1x16xi32>
    %863 = arith.andi %858, %862 : vector<1x16xi1>
    %cst_347 = arith.constant 0.000000e+00 : f32
    %864 = vector.shape_cast %863 : vector<1x16xi1> to vector<1x16xi1>
    %865 = vector.broadcast %864 : vector<1x16xi1> to vector<8x16xi1>
    %866 = vector.broadcast %cst_347 : f32 to vector<8x16xf32>
    %867 = arith.select %865, %816, %866 : vector<8x16xi1>, vector<8x16xf32>
    %868 = vector.extract_strided_slice %867 {offsets = [0, 0], sizes = [8, 13], strides = [1, 1]} : vector<8x16xf32> to vector<8x13xf32>
    %c16_348 = arith.constant 16 : index
    %c3_349 = arith.constant 3 : index
    %869 = vector.load %arg19[%c16_348, %c3_349] : memref<72x16xf32, #tpu.memory_space<vmem>>, vector<8x13xf32>
    tpu.vector_store %arg19[%c16_348, %c3_349], %868 {strides = array<i32>} : memref<72x16xf32, #tpu.memory_space<vmem>>, vector<8x13xf32>,
    %cst_350 = arith.constant 0.000000e+00 : f32
    %870 = vector.broadcast %cst_350 : f32 to vector<8x3xf32>
    %c16_351 = arith.constant 16 : index
    %c0_352 = arith.constant 0 : index
    %871 = vector.load %arg19[%c16_351, %c0_352] : memref<72x16xf32, #tpu.memory_space<vmem>>, vector<8x3xf32>
    tpu.vector_store %arg19[%c16_351, %c0_352], %870 {strides = array<i32>} : memref<72x16xf32, #tpu.memory_space<vmem>>, vector<8x3xf32>,
    %c-1_i32_353 = arith.constant -1 : i32
    %872 = vector.broadcast %c-1_i32_353 : i32 to vector<1x16xi32>
    %873 = arith.subi %833, %872 : vector<1x16xi32>
    %c0_i32_354 = arith.constant 0 : i32
    %874 = vector.broadcast %c0_i32_354 : i32 to vector<1x16xi32>
    %875 = arith.cmpi sge, %873, %874 : vector<1x16xi32>
    %c-1_i32_355 = arith.constant -1 : i32
    %876 = vector.broadcast %c-1_i32_355 : i32 to vector<1x16xi32>
    %877 = arith.subi %833, %876 : vector<1x16xi32>
    %c4_i32_356 = arith.constant 4 : i32
    %878 = vector.broadcast %c4_i32_356 : i32 to vector<1x16xi32>
    %879 = arith.cmpi slt, %877, %878 : vector<1x16xi32>
    %880 = arith.andi %875, %879 : vector<1x16xi1>
    %cst_357 = arith.constant 0.000000e+00 : f32
    %881 = vector.shape_cast %880 : vector<1x16xi1> to vector<1x16xi1>
    %882 = vector.broadcast %881 : vector<1x16xi1> to vector<8x16xi1>
    %883 = vector.broadcast %cst_357 : f32 to vector<8x16xf32>
    %884 = arith.select %882, %816, %883 : vector<8x16xi1>, vector<8x16xf32>
    %885 = vector.extract_strided_slice %884 {offsets = [0, 0], sizes = [8, 15], strides = [1, 1]} : vector<8x16xf32> to vector<8x15xf32>
    %c24_358 = arith.constant 24 : index
    %c1_359 = arith.constant 1 : index
    %886 = vector.load %arg19[%c24_358, %c1_359] : memref<72x16xf32, #tpu.memory_space<vmem>>, vector<8x15xf32>
    tpu.vector_store %arg19[%c24_358, %c1_359], %885 {strides = array<i32>} : memref<72x16xf32, #tpu.memory_space<vmem>>, vector<8x15xf32>,
    %cst_360 = arith.constant 0.000000e+00 : f32
    %887 = vector.broadcast %cst_360 : f32 to vector<8x1xf32>
    %c24_361 = arith.constant 24 : index
    %c0_362 = arith.constant 0 : index
    %888 = vector.load %arg19[%c24_361, %c0_362] : memref<72x16xf32, #tpu.memory_space<vmem>>, vector<8x1xf32>
    tpu.vector_store %arg19[%c24_361, %c0_362], %887 {strides = array<i32>} : memref<72x16xf32, #tpu.memory_space<vmem>>, vector<8x1xf32>,
    %c32_363 = arith.constant 32 : index
    %c0_364 = arith.constant 0 : index
    %889 = vector.load %arg19[%c32_363, %c0_364] : memref<72x16xf32, #tpu.memory_space<vmem>>, vector<8x16xf32>
    tpu.vector_store %arg19[%c32_363, %c0_364], %816 {strides = array<i32>} : memref<72x16xf32, #tpu.memory_space<vmem>>, vector<8x16xf32>,
    %c1_i32_365 = arith.constant 1 : i32
    %890 = vector.broadcast %c1_i32_365 : i32 to vector<1x16xi32>
    %891 = arith.subi %833, %890 : vector<1x16xi32>
    %c0_i32_366 = arith.constant 0 : i32
    %892 = vector.broadcast %c0_i32_366 : i32 to vector<1x16xi32>
    %893 = arith.cmpi sge, %891, %892 : vector<1x16xi32>
    %c1_i32_367 = arith.constant 1 : i32
    %894 = vector.broadcast %c1_i32_367 : i32 to vector<1x16xi32>
    %895 = arith.subi %833, %894 : vector<1x16xi32>
    %c4_i32_368 = arith.constant 4 : i32
    %896 = vector.broadcast %c4_i32_368 : i32 to vector<1x16xi32>
    %897 = arith.cmpi slt, %895, %896 : vector<1x16xi32>
    %898 = arith.andi %893, %897 : vector<1x16xi1>
    %cst_369 = arith.constant 0.000000e+00 : f32
    %899 = vector.shape_cast %898 : vector<1x16xi1> to vector<1x16xi1>
    %900 = vector.broadcast %899 : vector<1x16xi1> to vector<8x16xi1>
    %901 = vector.broadcast %cst_369 : f32 to vector<8x16xf32>
    %902 = arith.select %900, %816, %901 : vector<8x16xi1>, vector<8x16xf32>
    %903 = vector.extract_strided_slice %902 {offsets = [0, 1], sizes = [8, 15], strides = [1, 1]} : vector<8x16xf32> to vector<8x15xf32>
    %c40_370 = arith.constant 40 : index
    %c0_371 = arith.constant 0 : index
    %904 = vector.load %arg19[%c40_370, %c0_371] : memref<72x16xf32, #tpu.memory_space<vmem>>, vector<8x15xf32>
    tpu.vector_store %arg19[%c40_370, %c0_371], %903 {strides = array<i32>} : memref<72x16xf32, #tpu.memory_space<vmem>>, vector<8x15xf32>,
    %cst_372 = arith.constant 0.000000e+00 : f32
    %905 = vector.broadcast %cst_372 : f32 to vector<8x1xf32>
    %c40_373 = arith.constant 40 : index
    %c15_374 = arith.constant 15 : index
    %906 = vector.load %arg19[%c40_373, %c15_374] : memref<72x16xf32, #tpu.memory_space<vmem>>, vector<8x1xf32>
    tpu.vector_store %arg19[%c40_373, %c15_374], %905 {strides = array<i32>} : memref<72x16xf32, #tpu.memory_space<vmem>>, vector<8x1xf32>,
    %c-1_i32_375 = arith.constant -1 : i32
    %907 = vector.broadcast %c-1_i32_375 : i32 to vector<1x16xi32>
    %908 = arith.subi %833, %907 : vector<1x16xi32>
    %c0_i32_376 = arith.constant 0 : i32
    %909 = vector.broadcast %c0_i32_376 : i32 to vector<1x16xi32>
    %910 = arith.cmpi sge, %908, %909 : vector<1x16xi32>
    %c-1_i32_377 = arith.constant -1 : i32
    %911 = vector.broadcast %c-1_i32_377 : i32 to vector<1x16xi32>
    %912 = arith.subi %833, %911 : vector<1x16xi32>
    %c4_i32_378 = arith.constant 4 : i32
    %913 = vector.broadcast %c4_i32_378 : i32 to vector<1x16xi32>
    %914 = arith.cmpi slt, %912, %913 : vector<1x16xi32>
    %915 = arith.andi %910, %914 : vector<1x16xi1>
    %cst_379 = arith.constant 0.000000e+00 : f32
    %916 = vector.shape_cast %915 : vector<1x16xi1> to vector<1x16xi1>
    %917 = vector.broadcast %916 : vector<1x16xi1> to vector<8x16xi1>
    %918 = vector.broadcast %cst_379 : f32 to vector<8x16xf32>
    %919 = arith.select %917, %816, %918 : vector<8x16xi1>, vector<8x16xf32>
    %920 = vector.extract_strided_slice %919 {offsets = [0, 3], sizes = [8, 13], strides = [1, 1]} : vector<8x16xf32> to vector<8x13xf32>
    %c48_380 = arith.constant 48 : index
    %c0_381 = arith.constant 0 : index
    %921 = vector.load %arg19[%c48_380, %c0_381] : memref<72x16xf32, #tpu.memory_space<vmem>>, vector<8x13xf32>
    tpu.vector_store %arg19[%c48_380, %c0_381], %920 {strides = array<i32>} : memref<72x16xf32, #tpu.memory_space<vmem>>, vector<8x13xf32>,
    %cst_382 = arith.constant 0.000000e+00 : f32
    %922 = vector.broadcast %cst_382 : f32 to vector<8x3xf32>
    %c48_383 = arith.constant 48 : index
    %c13_384 = arith.constant 13 : index
    %923 = vector.load %arg19[%c48_383, %c13_384] : memref<72x16xf32, #tpu.memory_space<vmem>>, vector<8x3xf32>
    tpu.vector_store %arg19[%c48_383, %c13_384], %922 {strides = array<i32>} : memref<72x16xf32, #tpu.memory_space<vmem>>, vector<8x3xf32>,
    %924 = vector.extract_strided_slice %816 {offsets = [0, 4], sizes = [8, 12], strides = [1, 1]} : vector<8x16xf32> to vector<8x12xf32>
    %c56_385 = arith.constant 56 : index
    %c0_386 = arith.constant 0 : index
    %925 = vector.load %arg19[%c56_385, %c0_386] : memref<72x16xf32, #tpu.memory_space<vmem>>, vector<8x12xf32>
    tpu.vector_store %arg19[%c56_385, %c0_386], %924 {strides = array<i32>} : memref<72x16xf32, #tpu.memory_space<vmem>>, vector<8x12xf32>,
    %cst_387 = arith.constant 0.000000e+00 : f32
    %926 = vector.broadcast %cst_387 : f32 to vector<8x4xf32>
    %c56_388 = arith.constant 56 : index
    %c12_389 = arith.constant 12 : index
    %927 = vector.load %arg19[%c56_388, %c12_389] : memref<72x16xf32, #tpu.memory_space<vmem>>, vector<8x4xf32>
    tpu.vector_store %arg19[%c56_388, %c12_389], %926 {strides = array<i32>} : memref<72x16xf32, #tpu.memory_space<vmem>>, vector<8x4xf32>,
    %c1_i32_390 = arith.constant 1 : i32
    %928 = vector.broadcast %c1_i32_390 : i32 to vector<1x16xi32>
    %929 = arith.subi %833, %928 : vector<1x16xi32>
    %c0_i32_391 = arith.constant 0 : i32
    %930 = vector.broadcast %c0_i32_391 : i32 to vector<1x16xi32>
    %931 = arith.cmpi sge, %929, %930 : vector<1x16xi32>
    %c1_i32_392 = arith.constant 1 : i32
    %932 = vector.broadcast %c1_i32_392 : i32 to vector<1x16xi32>
    %933 = arith.subi %833, %932 : vector<1x16xi32>
    %c4_i32_393 = arith.constant 4 : i32
    %934 = vector.broadcast %c4_i32_393 : i32 to vector<1x16xi32>
    %935 = arith.cmpi slt, %933, %934 : vector<1x16xi32>
    %936 = arith.andi %931, %935 : vector<1x16xi1>
    %cst_394 = arith.constant 0.000000e+00 : f32
    %937 = vector.shape_cast %936 : vector<1x16xi1> to vector<1x16xi1>
    %938 = vector.broadcast %937 : vector<1x16xi1> to vector<8x16xi1>
    %939 = vector.broadcast %cst_394 : f32 to vector<8x16xf32>
    %940 = arith.select %938, %816, %939 : vector<8x16xi1>, vector<8x16xf32>
    %941 = vector.extract_strided_slice %940 {offsets = [0, 5], sizes = [8, 11], strides = [1, 1]} : vector<8x16xf32> to vector<8x11xf32>
    %c64_395 = arith.constant 64 : index
    %c0_396 = arith.constant 0 : index
    %942 = vector.load %arg19[%c64_395, %c0_396] : memref<72x16xf32, #tpu.memory_space<vmem>>, vector<8x11xf32>
    tpu.vector_store %arg19[%c64_395, %c0_396], %941 {strides = array<i32>} : memref<72x16xf32, #tpu.memory_space<vmem>>, vector<8x11xf32>,
    %cst_397 = arith.constant 0.000000e+00 : f32
    %943 = vector.broadcast %cst_397 : f32 to vector<8x5xf32>
    %c64_398 = arith.constant 64 : index
    %c11_399 = arith.constant 11 : index
    %944 = vector.load %arg19[%c64_398, %c11_399] : memref<72x16xf32, #tpu.memory_space<vmem>>, vector<8x5xf32>
    tpu.vector_store %arg19[%c64_398, %c11_399], %943 {strides = array<i32>} : memref<72x16xf32, #tpu.memory_space<vmem>>, vector<8x5xf32>,
    %c0_400 = arith.constant 0 : index
    %c0_401 = arith.constant 0 : index
    %945 = vector.load %arg8[%c0_400, %c0_401] : memref<8x72xf32, #tpu.memory_space<vmem>>, vector<8x72xf32>
    %c0_402 = arith.constant 0 : index
    %c0_403 = arith.constant 0 : index
    %946 = vector.load %arg19[%c0_402, %c0_403] : memref<72x16xf32, #tpu.memory_space<vmem>>, vector<72x16xf32>
    %cst_404 = arith.constant dense<0.000000e+00> : vector<8x16xf32>
    %947 = tpu.matmul %945, %946, %cst_404 {dimension_numbers = #tpu.dot_dimension_numbers<[1], [0], [0], [1], [0, 0, 1, 1], [], []>} : vector<8x72xf32>, vector<72x16xf32>, vector<8x16xf32> -> vector<8x16xf32>
    %c0_405 = arith.constant 0 : index
    %c0_406 = arith.constant 0 : index
    %948 = vector.load %arg9[%c0_405, %c0_406] : memref<8x1xf32, #tpu.memory_space<vmem>>, vector<8x1xf32>
    %949 = vector.broadcast %948 : vector<8x1xf32> to vector<8x16xf32>
    %950 = arith.addf %947, %949 : vector<8x16xf32>
    %cst_407 = arith.constant 0.000000e+00 : f32
    %951 = vector.broadcast %cst_407 : f32 to vector<8x16xf32>
    %952 = arith.maximumf %950, %951 : vector<8x16xf32>
    %c-1_i32_408 = arith.constant -1 : i32
    %953 = vector.broadcast %c-1_i32_408 : i32 to vector<1x16xi32>
    %954 = arith.subi %833, %953 : vector<1x16xi32>
    %c0_i32_409 = arith.constant 0 : i32
    %955 = vector.broadcast %c0_i32_409 : i32 to vector<1x16xi32>
    %956 = arith.cmpi sge, %954, %955 : vector<1x16xi32>
    %c-1_i32_410 = arith.constant -1 : i32
    %957 = vector.broadcast %c-1_i32_410 : i32 to vector<1x16xi32>
    %958 = arith.subi %833, %957 : vector<1x16xi32>
    %c4_i32_411 = arith.constant 4 : i32
    %959 = vector.broadcast %c4_i32_411 : i32 to vector<1x16xi32>
    %960 = arith.cmpi slt, %958, %959 : vector<1x16xi32>
    %961 = arith.andi %956, %960 : vector<1x16xi1>
    %cst_412 = arith.constant 0.000000e+00 : f32
    %962 = vector.shape_cast %961 : vector<1x16xi1> to vector<1x16xi1>
    %963 = vector.broadcast %962 : vector<1x16xi1> to vector<8x16xi1>
    %964 = vector.broadcast %cst_412 : f32 to vector<8x16xf32>
    %965 = arith.select %963, %952, %964 : vector<8x16xi1>, vector<8x16xf32>
    %966 = vector.extract_strided_slice %965 {offsets = [0, 0], sizes = [8, 11], strides = [1, 1]} : vector<8x16xf32> to vector<8x11xf32>
    %c0_413 = arith.constant 0 : index
    %c5_414 = arith.constant 5 : index
    %967 = vector.load %arg19[%c0_413, %c5_414] : memref<72x16xf32, #tpu.memory_space<vmem>>, vector<8x11xf32>
    tpu.vector_store %arg19[%c0_413, %c5_414], %966 {strides = array<i32>} : memref<72x16xf32, #tpu.memory_space<vmem>>, vector<8x11xf32>,
    %cst_415 = arith.constant 0.000000e+00 : f32
    %968 = vector.broadcast %cst_415 : f32 to vector<8x5xf32>
    %c0_416 = arith.constant 0 : index
    %c0_417 = arith.constant 0 : index
    %969 = vector.load %arg19[%c0_416, %c0_417] : memref<72x16xf32, #tpu.memory_space<vmem>>, vector<8x5xf32>
    tpu.vector_store %arg19[%c0_416, %c0_417], %968 {strides = array<i32>} : memref<72x16xf32, #tpu.memory_space<vmem>>, vector<8x5xf32>,
    %970 = vector.extract_strided_slice %952 {offsets = [0, 0], sizes = [8, 12], strides = [1, 1]} : vector<8x16xf32> to vector<8x12xf32>
    %c8_418 = arith.constant 8 : index
    %c4_419 = arith.constant 4 : index
    %971 = vector.load %arg19[%c8_418, %c4_419] : memref<72x16xf32, #tpu.memory_space<vmem>>, vector<8x12xf32>
    tpu.vector_store %arg19[%c8_418, %c4_419], %970 {strides = array<i32>} : memref<72x16xf32, #tpu.memory_space<vmem>>, vector<8x12xf32>,
    %cst_420 = arith.constant 0.000000e+00 : f32
    %972 = vector.broadcast %cst_420 : f32 to vector<8x4xf32>
    %c8_421 = arith.constant 8 : index
    %c0_422 = arith.constant 0 : index
    %973 = vector.load %arg19[%c8_421, %c0_422] : memref<72x16xf32, #tpu.memory_space<vmem>>, vector<8x4xf32>
    tpu.vector_store %arg19[%c8_421, %c0_422], %972 {strides = array<i32>} : memref<72x16xf32, #tpu.memory_space<vmem>>, vector<8x4xf32>,
    %c1_i32_423 = arith.constant 1 : i32
    %974 = vector.broadcast %c1_i32_423 : i32 to vector<1x16xi32>
    %975 = arith.subi %833, %974 : vector<1x16xi32>
    %c0_i32_424 = arith.constant 0 : i32
    %976 = vector.broadcast %c0_i32_424 : i32 to vector<1x16xi32>
    %977 = arith.cmpi sge, %975, %976 : vector<1x16xi32>
    %c1_i32_425 = arith.constant 1 : i32
    %978 = vector.broadcast %c1_i32_425 : i32 to vector<1x16xi32>
    %979 = arith.subi %833, %978 : vector<1x16xi32>
    %c4_i32_426 = arith.constant 4 : i32
    %980 = vector.broadcast %c4_i32_426 : i32 to vector<1x16xi32>
    %981 = arith.cmpi slt, %979, %980 : vector<1x16xi32>
    %982 = arith.andi %977, %981 : vector<1x16xi1>
    %cst_427 = arith.constant 0.000000e+00 : f32
    %983 = vector.shape_cast %982 : vector<1x16xi1> to vector<1x16xi1>
    %984 = vector.broadcast %983 : vector<1x16xi1> to vector<8x16xi1>
    %985 = vector.broadcast %cst_427 : f32 to vector<8x16xf32>
    %986 = arith.select %984, %952, %985 : vector<8x16xi1>, vector<8x16xf32>
    %987 = vector.extract_strided_slice %986 {offsets = [0, 0], sizes = [8, 13], strides = [1, 1]} : vector<8x16xf32> to vector<8x13xf32>
    %c16_428 = arith.constant 16 : index
    %c3_429 = arith.constant 3 : index
    %988 = vector.load %arg19[%c16_428, %c3_429] : memref<72x16xf32, #tpu.memory_space<vmem>>, vector<8x13xf32>
    tpu.vector_store %arg19[%c16_428, %c3_429], %987 {strides = array<i32>} : memref<72x16xf32, #tpu.memory_space<vmem>>, vector<8x13xf32>,
    %cst_430 = arith.constant 0.000000e+00 : f32
    %989 = vector.broadcast %cst_430 : f32 to vector<8x3xf32>
    %c16_431 = arith.constant 16 : index
    %c0_432 = arith.constant 0 : index
    %990 = vector.load %arg19[%c16_431, %c0_432] : memref<72x16xf32, #tpu.memory_space<vmem>>, vector<8x3xf32>
    tpu.vector_store %arg19[%c16_431, %c0_432], %989 {strides = array<i32>} : memref<72x16xf32, #tpu.memory_space<vmem>>, vector<8x3xf32>,
    %c-1_i32_433 = arith.constant -1 : i32
    %991 = vector.broadcast %c-1_i32_433 : i32 to vector<1x16xi32>
    %992 = arith.subi %833, %991 : vector<1x16xi32>
    %c0_i32_434 = arith.constant 0 : i32
    %993 = vector.broadcast %c0_i32_434 : i32 to vector<1x16xi32>
    %994 = arith.cmpi sge, %992, %993 : vector<1x16xi32>
    %c-1_i32_435 = arith.constant -1 : i32
    %995 = vector.broadcast %c-1_i32_435 : i32 to vector<1x16xi32>
    %996 = arith.subi %833, %995 : vector<1x16xi32>
    %c4_i32_436 = arith.constant 4 : i32
    %997 = vector.broadcast %c4_i32_436 : i32 to vector<1x16xi32>
    %998 = arith.cmpi slt, %996, %997 : vector<1x16xi32>
    %999 = arith.andi %994, %998 : vector<1x16xi1>
    %cst_437 = arith.constant 0.000000e+00 : f32
    %1000 = vector.shape_cast %999 : vector<1x16xi1> to vector<1x16xi1>
    %1001 = vector.broadcast %1000 : vector<1x16xi1> to vector<8x16xi1>
    %1002 = vector.broadcast %cst_437 : f32 to vector<8x16xf32>
    %1003 = arith.select %1001, %952, %1002 : vector<8x16xi1>, vector<8x16xf32>
    %1004 = vector.extract_strided_slice %1003 {offsets = [0, 0], sizes = [8, 15], strides = [1, 1]} : vector<8x16xf32> to vector<8x15xf32>
    %c24_438 = arith.constant 24 : index
    %c1_439 = arith.constant 1 : index
    %1005 = vector.load %arg19[%c24_438, %c1_439] : memref<72x16xf32, #tpu.memory_space<vmem>>, vector<8x15xf32>
    tpu.vector_store %arg19[%c24_438, %c1_439], %1004 {strides = array<i32>} : memref<72x16xf32, #tpu.memory_space<vmem>>, vector<8x15xf32>,
    %cst_440 = arith.constant 0.000000e+00 : f32
    %1006 = vector.broadcast %cst_440 : f32 to vector<8x1xf32>
    %c24_441 = arith.constant 24 : index
    %c0_442 = arith.constant 0 : index
    %1007 = vector.load %arg19[%c24_441, %c0_442] : memref<72x16xf32, #tpu.memory_space<vmem>>, vector<8x1xf32>
    tpu.vector_store %arg19[%c24_441, %c0_442], %1006 {strides = array<i32>} : memref<72x16xf32, #tpu.memory_space<vmem>>, vector<8x1xf32>,
    %c32_443 = arith.constant 32 : index
    %c0_444 = arith.constant 0 : index
    %1008 = vector.load %arg19[%c32_443, %c0_444] : memref<72x16xf32, #tpu.memory_space<vmem>>, vector<8x16xf32>
    tpu.vector_store %arg19[%c32_443, %c0_444], %952 {strides = array<i32>} : memref<72x16xf32, #tpu.memory_space<vmem>>, vector<8x16xf32>,
    %c1_i32_445 = arith.constant 1 : i32
    %1009 = vector.broadcast %c1_i32_445 : i32 to vector<1x16xi32>
    %1010 = arith.subi %833, %1009 : vector<1x16xi32>
    %c0_i32_446 = arith.constant 0 : i32
    %1011 = vector.broadcast %c0_i32_446 : i32 to vector<1x16xi32>
    %1012 = arith.cmpi sge, %1010, %1011 : vector<1x16xi32>
    %c1_i32_447 = arith.constant 1 : i32
    %1013 = vector.broadcast %c1_i32_447 : i32 to vector<1x16xi32>
    %1014 = arith.subi %833, %1013 : vector<1x16xi32>
    %c4_i32_448 = arith.constant 4 : i32
    %1015 = vector.broadcast %c4_i32_448 : i32 to vector<1x16xi32>
    %1016 = arith.cmpi slt, %1014, %1015 : vector<1x16xi32>
    %1017 = arith.andi %1012, %1016 : vector<1x16xi1>
    %cst_449 = arith.constant 0.000000e+00 : f32
    %1018 = vector.shape_cast %1017 : vector<1x16xi1> to vector<1x16xi1>
    %1019 = vector.broadcast %1018 : vector<1x16xi1> to vector<8x16xi1>
    %1020 = vector.broadcast %cst_449 : f32 to vector<8x16xf32>
    %1021 = arith.select %1019, %952, %1020 : vector<8x16xi1>, vector<8x16xf32>
    %1022 = vector.extract_strided_slice %1021 {offsets = [0, 1], sizes = [8, 15], strides = [1, 1]} : vector<8x16xf32> to vector<8x15xf32>
    %c40_450 = arith.constant 40 : index
    %c0_451 = arith.constant 0 : index
    %1023 = vector.load %arg19[%c40_450, %c0_451] : memref<72x16xf32, #tpu.memory_space<vmem>>, vector<8x15xf32>
    tpu.vector_store %arg19[%c40_450, %c0_451], %1022 {strides = array<i32>} : memref<72x16xf32, #tpu.memory_space<vmem>>, vector<8x15xf32>,
    %cst_452 = arith.constant 0.000000e+00 : f32
    %1024 = vector.broadcast %cst_452 : f32 to vector<8x1xf32>
    %c40_453 = arith.constant 40 : index
    %c15_454 = arith.constant 15 : index
    %1025 = vector.load %arg19[%c40_453, %c15_454] : memref<72x16xf32, #tpu.memory_space<vmem>>, vector<8x1xf32>
    tpu.vector_store %arg19[%c40_453, %c15_454], %1024 {strides = array<i32>} : memref<72x16xf32, #tpu.memory_space<vmem>>, vector<8x1xf32>,
    %c-1_i32_455 = arith.constant -1 : i32
    %1026 = vector.broadcast %c-1_i32_455 : i32 to vector<1x16xi32>
    %1027 = arith.subi %833, %1026 : vector<1x16xi32>
    %c0_i32_456 = arith.constant 0 : i32
    %1028 = vector.broadcast %c0_i32_456 : i32 to vector<1x16xi32>
    %1029 = arith.cmpi sge, %1027, %1028 : vector<1x16xi32>
    %c-1_i32_457 = arith.constant -1 : i32
    %1030 = vector.broadcast %c-1_i32_457 : i32 to vector<1x16xi32>
    %1031 = arith.subi %833, %1030 : vector<1x16xi32>
    %c4_i32_458 = arith.constant 4 : i32
    %1032 = vector.broadcast %c4_i32_458 : i32 to vector<1x16xi32>
    %1033 = arith.cmpi slt, %1031, %1032 : vector<1x16xi32>
    %1034 = arith.andi %1029, %1033 : vector<1x16xi1>
    %cst_459 = arith.constant 0.000000e+00 : f32
    %1035 = vector.shape_cast %1034 : vector<1x16xi1> to vector<1x16xi1>
    %1036 = vector.broadcast %1035 : vector<1x16xi1> to vector<8x16xi1>
    %1037 = vector.broadcast %cst_459 : f32 to vector<8x16xf32>
    %1038 = arith.select %1036, %952, %1037 : vector<8x16xi1>, vector<8x16xf32>
    %1039 = vector.extract_strided_slice %1038 {offsets = [0, 3], sizes = [8, 13], strides = [1, 1]} : vector<8x16xf32> to vector<8x13xf32>
    %c48_460 = arith.constant 48 : index
    %c0_461 = arith.constant 0 : index
    %1040 = vector.load %arg19[%c48_460, %c0_461] : memref<72x16xf32, #tpu.memory_space<vmem>>, vector<8x13xf32>
    tpu.vector_store %arg19[%c48_460, %c0_461], %1039 {strides = array<i32>} : memref<72x16xf32, #tpu.memory_space<vmem>>, vector<8x13xf32>,
    %cst_462 = arith.constant 0.000000e+00 : f32
    %1041 = vector.broadcast %cst_462 : f32 to vector<8x3xf32>
    %c48_463 = arith.constant 48 : index
    %c13_464 = arith.constant 13 : index
    %1042 = vector.load %arg19[%c48_463, %c13_464] : memref<72x16xf32, #tpu.memory_space<vmem>>, vector<8x3xf32>
    tpu.vector_store %arg19[%c48_463, %c13_464], %1041 {strides = array<i32>} : memref<72x16xf32, #tpu.memory_space<vmem>>, vector<8x3xf32>,
    %1043 = vector.extract_strided_slice %952 {offsets = [0, 4], sizes = [8, 12], strides = [1, 1]} : vector<8x16xf32> to vector<8x12xf32>
    %c56_465 = arith.constant 56 : index
    %c0_466 = arith.constant 0 : index
    %1044 = vector.load %arg19[%c56_465, %c0_466] : memref<72x16xf32, #tpu.memory_space<vmem>>, vector<8x12xf32>
    tpu.vector_store %arg19[%c56_465, %c0_466], %1043 {strides = array<i32>} : memref<72x16xf32, #tpu.memory_space<vmem>>, vector<8x12xf32>,
    %cst_467 = arith.constant 0.000000e+00 : f32
    %1045 = vector.broadcast %cst_467 : f32 to vector<8x4xf32>
    %c56_468 = arith.constant 56 : index
    %c12_469 = arith.constant 12 : index
    %1046 = vector.load %arg19[%c56_468, %c12_469] : memref<72x16xf32, #tpu.memory_space<vmem>>, vector<8x4xf32>
    tpu.vector_store %arg19[%c56_468, %c12_469], %1045 {strides = array<i32>} : memref<72x16xf32, #tpu.memory_space<vmem>>, vector<8x4xf32>,
    %c1_i32_470 = arith.constant 1 : i32
    %1047 = vector.broadcast %c1_i32_470 : i32 to vector<1x16xi32>
    %1048 = arith.subi %833, %1047 : vector<1x16xi32>
    %c0_i32_471 = arith.constant 0 : i32
    %1049 = vector.broadcast %c0_i32_471 : i32 to vector<1x16xi32>
    %1050 = arith.cmpi sge, %1048, %1049 : vector<1x16xi32>
    %c1_i32_472 = arith.constant 1 : i32
    %1051 = vector.broadcast %c1_i32_472 : i32 to vector<1x16xi32>
    %1052 = arith.subi %833, %1051 : vector<1x16xi32>
    %c4_i32_473 = arith.constant 4 : i32
    %1053 = vector.broadcast %c4_i32_473 : i32 to vector<1x16xi32>
    %1054 = arith.cmpi slt, %1052, %1053 : vector<1x16xi32>
    %1055 = arith.andi %1050, %1054 : vector<1x16xi1>
    %cst_474 = arith.constant 0.000000e+00 : f32
    %1056 = vector.shape_cast %1055 : vector<1x16xi1> to vector<1x16xi1>
    %1057 = vector.broadcast %1056 : vector<1x16xi1> to vector<8x16xi1>
    %1058 = vector.broadcast %cst_474 : f32 to vector<8x16xf32>
    %1059 = arith.select %1057, %952, %1058 : vector<8x16xi1>, vector<8x16xf32>
    %1060 = vector.extract_strided_slice %1059 {offsets = [0, 5], sizes = [8, 11], strides = [1, 1]} : vector<8x16xf32> to vector<8x11xf32>
    %c64_475 = arith.constant 64 : index
    %c0_476 = arith.constant 0 : index
    %1061 = vector.load %arg19[%c64_475, %c0_476] : memref<72x16xf32, #tpu.memory_space<vmem>>, vector<8x11xf32>
    tpu.vector_store %arg19[%c64_475, %c0_476], %1060 {strides = array<i32>} : memref<72x16xf32, #tpu.memory_space<vmem>>, vector<8x11xf32>,
    %cst_477 = arith.constant 0.000000e+00 : f32
    %1062 = vector.broadcast %cst_477 : f32 to vector<8x5xf32>
    %c64_478 = arith.constant 64 : index
    %c11_479 = arith.constant 11 : index
    %1063 = vector.load %arg19[%c64_478, %c11_479] : memref<72x16xf32, #tpu.memory_space<vmem>>, vector<8x5xf32>
    tpu.vector_store %arg19[%c64_478, %c11_479], %1062 {strides = array<i32>} : memref<72x16xf32, #tpu.memory_space<vmem>>, vector<8x5xf32>,
    %c0_480 = arith.constant 0 : index
    %c0_481 = arith.constant 0 : index
    %1064 = vector.load %arg10[%c0_480, %c0_481] : memref<8x72xf32, #tpu.memory_space<vmem>>, vector<8x72xf32>
    %c0_482 = arith.constant 0 : index
    %c0_483 = arith.constant 0 : index
    %1065 = vector.load %arg19[%c0_482, %c0_483] : memref<72x16xf32, #tpu.memory_space<vmem>>, vector<72x16xf32>
    %cst_484 = arith.constant dense<0.000000e+00> : vector<8x16xf32>
    %1066 = tpu.matmul %1064, %1065, %cst_484 {dimension_numbers = #tpu.dot_dimension_numbers<[1], [0], [0], [1], [0, 0, 1, 1], [], []>} : vector<8x72xf32>, vector<72x16xf32>, vector<8x16xf32> -> vector<8x16xf32>
    %c0_485 = arith.constant 0 : index
    %c0_486 = arith.constant 0 : index
    %1067 = vector.load %arg11[%c0_485, %c0_486] : memref<8x1xf32, #tpu.memory_space<vmem>>, vector<8x1xf32>
    %1068 = vector.broadcast %1067 : vector<8x1xf32> to vector<8x16xf32>
    %1069 = arith.addf %1066, %1068 : vector<8x16xf32>
    %cst_487 = arith.constant 0.000000e+00 : f32
    %1070 = vector.broadcast %cst_487 : f32 to vector<8x16xf32>
    %1071 = arith.maximumf %1069, %1070 : vector<8x16xf32>
    %c-1_i32_488 = arith.constant -1 : i32
    %1072 = vector.broadcast %c-1_i32_488 : i32 to vector<1x16xi32>
    %1073 = arith.subi %833, %1072 : vector<1x16xi32>
    %c0_i32_489 = arith.constant 0 : i32
    %1074 = vector.broadcast %c0_i32_489 : i32 to vector<1x16xi32>
    %1075 = arith.cmpi sge, %1073, %1074 : vector<1x16xi32>
    %c-1_i32_490 = arith.constant -1 : i32
    %1076 = vector.broadcast %c-1_i32_490 : i32 to vector<1x16xi32>
    %1077 = arith.subi %833, %1076 : vector<1x16xi32>
    %c4_i32_491 = arith.constant 4 : i32
    %1078 = vector.broadcast %c4_i32_491 : i32 to vector<1x16xi32>
    %1079 = arith.cmpi slt, %1077, %1078 : vector<1x16xi32>
    %1080 = arith.andi %1075, %1079 : vector<1x16xi1>
    %cst_492 = arith.constant 0.000000e+00 : f32
    %1081 = vector.shape_cast %1080 : vector<1x16xi1> to vector<1x16xi1>
    %1082 = vector.broadcast %1081 : vector<1x16xi1> to vector<8x16xi1>
    %1083 = vector.broadcast %cst_492 : f32 to vector<8x16xf32>
    %1084 = arith.select %1082, %1071, %1083 : vector<8x16xi1>, vector<8x16xf32>
    %1085 = vector.extract_strided_slice %1084 {offsets = [0, 0], sizes = [8, 11], strides = [1, 1]} : vector<8x16xf32> to vector<8x11xf32>
    %c0_493 = arith.constant 0 : index
    %c5_494 = arith.constant 5 : index
    %1086 = vector.load %arg19[%c0_493, %c5_494] : memref<72x16xf32, #tpu.memory_space<vmem>>, vector<8x11xf32>
    tpu.vector_store %arg19[%c0_493, %c5_494], %1085 {strides = array<i32>} : memref<72x16xf32, #tpu.memory_space<vmem>>, vector<8x11xf32>,
    %cst_495 = arith.constant 0.000000e+00 : f32
    %1087 = vector.broadcast %cst_495 : f32 to vector<8x5xf32>
    %c0_496 = arith.constant 0 : index
    %c0_497 = arith.constant 0 : index
    %1088 = vector.load %arg19[%c0_496, %c0_497] : memref<72x16xf32, #tpu.memory_space<vmem>>, vector<8x5xf32>
    tpu.vector_store %arg19[%c0_496, %c0_497], %1087 {strides = array<i32>} : memref<72x16xf32, #tpu.memory_space<vmem>>, vector<8x5xf32>,
    %1089 = vector.extract_strided_slice %1071 {offsets = [0, 0], sizes = [8, 12], strides = [1, 1]} : vector<8x16xf32> to vector<8x12xf32>
    %c8_498 = arith.constant 8 : index
    %c4_499 = arith.constant 4 : index
    %1090 = vector.load %arg19[%c8_498, %c4_499] : memref<72x16xf32, #tpu.memory_space<vmem>>, vector<8x12xf32>
    tpu.vector_store %arg19[%c8_498, %c4_499], %1089 {strides = array<i32>} : memref<72x16xf32, #tpu.memory_space<vmem>>, vector<8x12xf32>,
    %cst_500 = arith.constant 0.000000e+00 : f32
    %1091 = vector.broadcast %cst_500 : f32 to vector<8x4xf32>
    %c8_501 = arith.constant 8 : index
    %c0_502 = arith.constant 0 : index
    %1092 = vector.load %arg19[%c8_501, %c0_502] : memref<72x16xf32, #tpu.memory_space<vmem>>, vector<8x4xf32>
    tpu.vector_store %arg19[%c8_501, %c0_502], %1091 {strides = array<i32>} : memref<72x16xf32, #tpu.memory_space<vmem>>, vector<8x4xf32>,
    %c1_i32_503 = arith.constant 1 : i32
    %1093 = vector.broadcast %c1_i32_503 : i32 to vector<1x16xi32>
    %1094 = arith.subi %833, %1093 : vector<1x16xi32>
    %c0_i32_504 = arith.constant 0 : i32
    %1095 = vector.broadcast %c0_i32_504 : i32 to vector<1x16xi32>
    %1096 = arith.cmpi sge, %1094, %1095 : vector<1x16xi32>
    %c1_i32_505 = arith.constant 1 : i32
    %1097 = vector.broadcast %c1_i32_505 : i32 to vector<1x16xi32>
    %1098 = arith.subi %833, %1097 : vector<1x16xi32>
    %c4_i32_506 = arith.constant 4 : i32
    %1099 = vector.broadcast %c4_i32_506 : i32 to vector<1x16xi32>
    %1100 = arith.cmpi slt, %1098, %1099 : vector<1x16xi32>
    %1101 = arith.andi %1096, %1100 : vector<1x16xi1>
    %cst_507 = arith.constant 0.000000e+00 : f32
    %1102 = vector.shape_cast %1101 : vector<1x16xi1> to vector<1x16xi1>
    %1103 = vector.broadcast %1102 : vector<1x16xi1> to vector<8x16xi1>
    %1104 = vector.broadcast %cst_507 : f32 to vector<8x16xf32>
    %1105 = arith.select %1103, %1071, %1104 : vector<8x16xi1>, vector<8x16xf32>
    %1106 = vector.extract_strided_slice %1105 {offsets = [0, 0], sizes = [8, 13], strides = [1, 1]} : vector<8x16xf32> to vector<8x13xf32>
    %c16_508 = arith.constant 16 : index
    %c3_509 = arith.constant 3 : index
    %1107 = vector.load %arg19[%c16_508, %c3_509] : memref<72x16xf32, #tpu.memory_space<vmem>>, vector<8x13xf32>
    tpu.vector_store %arg19[%c16_508, %c3_509], %1106 {strides = array<i32>} : memref<72x16xf32, #tpu.memory_space<vmem>>, vector<8x13xf32>,
    %cst_510 = arith.constant 0.000000e+00 : f32
    %1108 = vector.broadcast %cst_510 : f32 to vector<8x3xf32>
    %c16_511 = arith.constant 16 : index
    %c0_512 = arith.constant 0 : index
    %1109 = vector.load %arg19[%c16_511, %c0_512] : memref<72x16xf32, #tpu.memory_space<vmem>>, vector<8x3xf32>
    tpu.vector_store %arg19[%c16_511, %c0_512], %1108 {strides = array<i32>} : memref<72x16xf32, #tpu.memory_space<vmem>>, vector<8x3xf32>,
    %c-1_i32_513 = arith.constant -1 : i32
    %1110 = vector.broadcast %c-1_i32_513 : i32 to vector<1x16xi32>
    %1111 = arith.subi %833, %1110 : vector<1x16xi32>
    %c0_i32_514 = arith.constant 0 : i32
    %1112 = vector.broadcast %c0_i32_514 : i32 to vector<1x16xi32>
    %1113 = arith.cmpi sge, %1111, %1112 : vector<1x16xi32>
    %c-1_i32_515 = arith.constant -1 : i32
    %1114 = vector.broadcast %c-1_i32_515 : i32 to vector<1x16xi32>
    %1115 = arith.subi %833, %1114 : vector<1x16xi32>
    %c4_i32_516 = arith.constant 4 : i32
    %1116 = vector.broadcast %c4_i32_516 : i32 to vector<1x16xi32>
    %1117 = arith.cmpi slt, %1115, %1116 : vector<1x16xi32>
    %1118 = arith.andi %1113, %1117 : vector<1x16xi1>
    %cst_517 = arith.constant 0.000000e+00 : f32
    %1119 = vector.shape_cast %1118 : vector<1x16xi1> to vector<1x16xi1>
    %1120 = vector.broadcast %1119 : vector<1x16xi1> to vector<8x16xi1>
    %1121 = vector.broadcast %cst_517 : f32 to vector<8x16xf32>
    %1122 = arith.select %1120, %1071, %1121 : vector<8x16xi1>, vector<8x16xf32>
    %1123 = vector.extract_strided_slice %1122 {offsets = [0, 0], sizes = [8, 15], strides = [1, 1]} : vector<8x16xf32> to vector<8x15xf32>
    %c24_518 = arith.constant 24 : index
    %c1_519 = arith.constant 1 : index
    %1124 = vector.load %arg19[%c24_518, %c1_519] : memref<72x16xf32, #tpu.memory_space<vmem>>, vector<8x15xf32>
    tpu.vector_store %arg19[%c24_518, %c1_519], %1123 {strides = array<i32>} : memref<72x16xf32, #tpu.memory_space<vmem>>, vector<8x15xf32>,
    %cst_520 = arith.constant 0.000000e+00 : f32
    %1125 = vector.broadcast %cst_520 : f32 to vector<8x1xf32>
    %c24_521 = arith.constant 24 : index
    %c0_522 = arith.constant 0 : index
    %1126 = vector.load %arg19[%c24_521, %c0_522] : memref<72x16xf32, #tpu.memory_space<vmem>>, vector<8x1xf32>
    tpu.vector_store %arg19[%c24_521, %c0_522], %1125 {strides = array<i32>} : memref<72x16xf32, #tpu.memory_space<vmem>>, vector<8x1xf32>,
    %c32_523 = arith.constant 32 : index
    %c0_524 = arith.constant 0 : index
    %1127 = vector.load %arg19[%c32_523, %c0_524] : memref<72x16xf32, #tpu.memory_space<vmem>>, vector<8x16xf32>
    tpu.vector_store %arg19[%c32_523, %c0_524], %1071 {strides = array<i32>} : memref<72x16xf32, #tpu.memory_space<vmem>>, vector<8x16xf32>,
    %c1_i32_525 = arith.constant 1 : i32
    %1128 = vector.broadcast %c1_i32_525 : i32 to vector<1x16xi32>
    %1129 = arith.subi %833, %1128 : vector<1x16xi32>
    %c0_i32_526 = arith.constant 0 : i32
    %1130 = vector.broadcast %c0_i32_526 : i32 to vector<1x16xi32>
    %1131 = arith.cmpi sge, %1129, %1130 : vector<1x16xi32>
    %c1_i32_527 = arith.constant 1 : i32
    %1132 = vector.broadcast %c1_i32_527 : i32 to vector<1x16xi32>
    %1133 = arith.subi %833, %1132 : vector<1x16xi32>
    %c4_i32_528 = arith.constant 4 : i32
    %1134 = vector.broadcast %c4_i32_528 : i32 to vector<1x16xi32>
    %1135 = arith.cmpi slt, %1133, %1134 : vector<1x16xi32>
    %1136 = arith.andi %1131, %1135 : vector<1x16xi1>
    %cst_529 = arith.constant 0.000000e+00 : f32
    %1137 = vector.shape_cast %1136 : vector<1x16xi1> to vector<1x16xi1>
    %1138 = vector.broadcast %1137 : vector<1x16xi1> to vector<8x16xi1>
    %1139 = vector.broadcast %cst_529 : f32 to vector<8x16xf32>
    %1140 = arith.select %1138, %1071, %1139 : vector<8x16xi1>, vector<8x16xf32>
    %1141 = vector.extract_strided_slice %1140 {offsets = [0, 1], sizes = [8, 15], strides = [1, 1]} : vector<8x16xf32> to vector<8x15xf32>
    %c40_530 = arith.constant 40 : index
    %c0_531 = arith.constant 0 : index
    %1142 = vector.load %arg19[%c40_530, %c0_531] : memref<72x16xf32, #tpu.memory_space<vmem>>, vector<8x15xf32>
    tpu.vector_store %arg19[%c40_530, %c0_531], %1141 {strides = array<i32>} : memref<72x16xf32, #tpu.memory_space<vmem>>, vector<8x15xf32>,
    %cst_532 = arith.constant 0.000000e+00 : f32
    %1143 = vector.broadcast %cst_532 : f32 to vector<8x1xf32>
    %c40_533 = arith.constant 40 : index
    %c15_534 = arith.constant 15 : index
    %1144 = vector.load %arg19[%c40_533, %c15_534] : memref<72x16xf32, #tpu.memory_space<vmem>>, vector<8x1xf32>
    tpu.vector_store %arg19[%c40_533, %c15_534], %1143 {strides = array<i32>} : memref<72x16xf32, #tpu.memory_space<vmem>>, vector<8x1xf32>,
    %c-1_i32_535 = arith.constant -1 : i32
    %1145 = vector.broadcast %c-1_i32_535 : i32 to vector<1x16xi32>
    %1146 = arith.subi %833, %1145 : vector<1x16xi32>
    %c0_i32_536 = arith.constant 0 : i32
    %1147 = vector.broadcast %c0_i32_536 : i32 to vector<1x16xi32>
    %1148 = arith.cmpi sge, %1146, %1147 : vector<1x16xi32>
    %c-1_i32_537 = arith.constant -1 : i32
    %1149 = vector.broadcast %c-1_i32_537 : i32 to vector<1x16xi32>
    %1150 = arith.subi %833, %1149 : vector<1x16xi32>
    %c4_i32_538 = arith.constant 4 : i32
    %1151 = vector.broadcast %c4_i32_538 : i32 to vector<1x16xi32>
    %1152 = arith.cmpi slt, %1150, %1151 : vector<1x16xi32>
    %1153 = arith.andi %1148, %1152 : vector<1x16xi1>
    %cst_539 = arith.constant 0.000000e+00 : f32
    %1154 = vector.shape_cast %1153 : vector<1x16xi1> to vector<1x16xi1>
    %1155 = vector.broadcast %1154 : vector<1x16xi1> to vector<8x16xi1>
    %1156 = vector.broadcast %cst_539 : f32 to vector<8x16xf32>
    %1157 = arith.select %1155, %1071, %1156 : vector<8x16xi1>, vector<8x16xf32>
    %1158 = vector.extract_strided_slice %1157 {offsets = [0, 3], sizes = [8, 13], strides = [1, 1]} : vector<8x16xf32> to vector<8x13xf32>
    %c48_540 = arith.constant 48 : index
    %c0_541 = arith.constant 0 : index
    %1159 = vector.load %arg19[%c48_540, %c0_541] : memref<72x16xf32, #tpu.memory_space<vmem>>, vector<8x13xf32>
    tpu.vector_store %arg19[%c48_540, %c0_541], %1158 {strides = array<i32>} : memref<72x16xf32, #tpu.memory_space<vmem>>, vector<8x13xf32>,
    %cst_542 = arith.constant 0.000000e+00 : f32
    %1160 = vector.broadcast %cst_542 : f32 to vector<8x3xf32>
    %c48_543 = arith.constant 48 : index
    %c13_544 = arith.constant 13 : index
    %1161 = vector.load %arg19[%c48_543, %c13_544] : memref<72x16xf32, #tpu.memory_space<vmem>>, vector<8x3xf32>
    tpu.vector_store %arg19[%c48_543, %c13_544], %1160 {strides = array<i32>} : memref<72x16xf32, #tpu.memory_space<vmem>>, vector<8x3xf32>,
    %1162 = vector.extract_strided_slice %1071 {offsets = [0, 4], sizes = [8, 12], strides = [1, 1]} : vector<8x16xf32> to vector<8x12xf32>
    %c56_545 = arith.constant 56 : index
    %c0_546 = arith.constant 0 : index
    %1163 = vector.load %arg19[%c56_545, %c0_546] : memref<72x16xf32, #tpu.memory_space<vmem>>, vector<8x12xf32>
    tpu.vector_store %arg19[%c56_545, %c0_546], %1162 {strides = array<i32>} : memref<72x16xf32, #tpu.memory_space<vmem>>, vector<8x12xf32>,
    %cst_547 = arith.constant 0.000000e+00 : f32
    %1164 = vector.broadcast %cst_547 : f32 to vector<8x4xf32>
    %c56_548 = arith.constant 56 : index
    %c12_549 = arith.constant 12 : index
    %1165 = vector.load %arg19[%c56_548, %c12_549] : memref<72x16xf32, #tpu.memory_space<vmem>>, vector<8x4xf32>
    tpu.vector_store %arg19[%c56_548, %c12_549], %1164 {strides = array<i32>} : memref<72x16xf32, #tpu.memory_space<vmem>>, vector<8x4xf32>,
    %c1_i32_550 = arith.constant 1 : i32
    %1166 = vector.broadcast %c1_i32_550 : i32 to vector<1x16xi32>
    %1167 = arith.subi %833, %1166 : vector<1x16xi32>
    %c0_i32_551 = arith.constant 0 : i32
    %1168 = vector.broadcast %c0_i32_551 : i32 to vector<1x16xi32>
    %1169 = arith.cmpi sge, %1167, %1168 : vector<1x16xi32>
    %c1_i32_552 = arith.constant 1 : i32
    %1170 = vector.broadcast %c1_i32_552 : i32 to vector<1x16xi32>
    %1171 = arith.subi %833, %1170 : vector<1x16xi32>
    %c4_i32_553 = arith.constant 4 : i32
    %1172 = vector.broadcast %c4_i32_553 : i32 to vector<1x16xi32>
    %1173 = arith.cmpi slt, %1171, %1172 : vector<1x16xi32>
    %1174 = arith.andi %1169, %1173 : vector<1x16xi1>
    %cst_554 = arith.constant 0.000000e+00 : f32
    %1175 = vector.shape_cast %1174 : vector<1x16xi1> to vector<1x16xi1>
    %1176 = vector.broadcast %1175 : vector<1x16xi1> to vector<8x16xi1>
    %1177 = vector.broadcast %cst_554 : f32 to vector<8x16xf32>
    %1178 = arith.select %1176, %1071, %1177 : vector<8x16xi1>, vector<8x16xf32>
    %1179 = vector.extract_strided_slice %1178 {offsets = [0, 5], sizes = [8, 11], strides = [1, 1]} : vector<8x16xf32> to vector<8x11xf32>
    %c64_555 = arith.constant 64 : index
    %c0_556 = arith.constant 0 : index
    %1180 = vector.load %arg19[%c64_555, %c0_556] : memref<72x16xf32, #tpu.memory_space<vmem>>, vector<8x11xf32>
    tpu.vector_store %arg19[%c64_555, %c0_556], %1179 {strides = array<i32>} : memref<72x16xf32, #tpu.memory_space<vmem>>, vector<8x11xf32>,
    %cst_557 = arith.constant 0.000000e+00 : f32
    %1181 = vector.broadcast %cst_557 : f32 to vector<8x5xf32>
    %c64_558 = arith.constant 64 : index
    %c11_559 = arith.constant 11 : index
    %1182 = vector.load %arg19[%c64_558, %c11_559] : memref<72x16xf32, #tpu.memory_space<vmem>>, vector<8x5xf32>
    tpu.vector_store %arg19[%c64_558, %c11_559], %1181 {strides = array<i32>} : memref<72x16xf32, #tpu.memory_space<vmem>>, vector<8x5xf32>,
    %c0_560 = arith.constant 0 : index
    %c0_561 = arith.constant 0 : index
    %1183 = vector.load %arg12[%c0_560, %c0_561] : memref<8x72xf32, #tpu.memory_space<vmem>>, vector<8x72xf32>
    %c0_562 = arith.constant 0 : index
    %c0_563 = arith.constant 0 : index
    %1184 = vector.load %arg19[%c0_562, %c0_563] : memref<72x16xf32, #tpu.memory_space<vmem>>, vector<72x16xf32>
    %cst_564 = arith.constant dense<0.000000e+00> : vector<8x16xf32>
    %1185 = tpu.matmul %1183, %1184, %cst_564 {dimension_numbers = #tpu.dot_dimension_numbers<[1], [0], [0], [1], [0, 0, 1, 1], [], []>} : vector<8x72xf32>, vector<72x16xf32>, vector<8x16xf32> -> vector<8x16xf32>
    %c0_565 = arith.constant 0 : index
    %c0_566 = arith.constant 0 : index
    %1186 = vector.load %arg13[%c0_565, %c0_566] : memref<8x1xf32, #tpu.memory_space<vmem>>, vector<8x1xf32>
    %1187 = vector.broadcast %1186 : vector<8x1xf32> to vector<8x16xf32>
    %1188 = arith.addf %1185, %1187 : vector<8x16xf32>
    %c0_567 = arith.constant 0 : index
    %c0_568 = arith.constant 0 : index
    %1189 = vector.load %arg14[%c0_567, %c0_568] : memref<16x256xf32, #tpu.memory_space<vmem>>, vector<16x256xf32>
    %cst_569 = arith.constant dense<0.000000e+00> : vector<8x256xf32>
    %1190 = tpu.matmul %1188, %1189, %cst_569 {dimension_numbers = #tpu.dot_dimension_numbers<[1], [0], [0], [1], [0, 0, 1, 1], [], []>} : vector<8x16xf32>, vector<16x256xf32>, vector<8x256xf32> -> vector<8x256xf32>
    %c0_570 = arith.constant 0 : index
    %c0_571 = arith.constant 0 : index
    %1191 = vector.load %arg15[%c0_570, %c0_571] : memref<32x8xf32, #tpu.memory_space<vmem>>, vector<32x8xf32>
    %1192 = arith.addf %1190, %11 : vector<8x256xf32>
    %cst_572 = arith.constant dense<0.000000e+00> : vector<32x256xf32>
    %1193 = tpu.matmul %1191, %1192, %cst_572 {dimension_numbers = #tpu.dot_dimension_numbers<[1], [0], [0], [1], [0, 0, 1, 1], [], []>} : vector<32x8xf32>, vector<8x256xf32>, vector<32x256xf32> -> vector<32x256xf32>
    %c0_573 = arith.constant 0 : index
    %c0_574 = arith.constant 0 : index
    %1194 = vector.load %arg16[%c0_573, %c0_574] : memref<32x1xf32, #tpu.memory_space<vmem>>, vector<32x1xf32>
    %1195 = vector.broadcast %1194 : vector<32x1xf32> to vector<32x256xf32>
    %1196 = arith.addf %1193, %1195 : vector<32x256xf32>
    %1197 = arith.negf %1196 : vector<32x256xf32>
    %1198 = math.exp %1197 : vector<32x256xf32>
    %cst_575 = arith.constant 1.000000e+00 : f32
    %1199 = vector.broadcast %cst_575 : f32 to vector<32x256xf32>
    %1200 = arith.addf %1199, %1198 : vector<32x256xf32>
    %1201 = arith.divf %1199, %1200 : vector<32x256xf32>
    %1202 = arith.mulf %1, %1201 : vector<32x256xf32>
    %c0_576 = arith.constant 0 : index
    %c0_577 = arith.constant 0 : index
    %c0_578 = arith.constant 0 : index
    %1203 = vector.load %arg17[%c0_576, %c0_577, %c0_578] : memref<1x32x256xf32, #tpu.memory_space<vmem>>, vector<1x32x256xf32>
    %1204 = vector.shape_cast %1203 : vector<1x32x256xf32> to vector<32x256xf32>
    %1205 = vector.shape_cast %1202 : vector<32x256xf32> to vector<1x32x256xf32>
    tpu.vector_store %arg17[%c0_576, %c0_577, %c0_578], %1205 {strides = array<i32>} : memref<1x32x256xf32, #tpu.memory_space<vmem>>, vector<1x32x256xf32>,
    return
  }
  func.func @transform_0(%arg0: i32) -> (i32, i32, i32) {
    %c0_i32 = arith.constant 0 : i32
    %c0_i32_0 = arith.constant 0 : i32
    %c0_i32_1 = arith.constant 0 : i32
    return %arg0, %c0_i32, %c0_i32_0 : i32, i32, i32
  }
  func.func @transform_1(%arg0: i32) -> (i32, i32) {
    %c0_i32 = arith.constant 0 : i32
    %c0_i32_0 = arith.constant 0 : i32
    %c0_i32_1 = arith.constant 0 : i32
    return %c0_i32, %c0_i32_0 : i32, i32
  }
  func.func @transform_2(%arg0: i32) -> (i32, i32) {
    %c0_i32 = arith.constant 0 : i32
    %c0_i32_0 = arith.constant 0 : i32
    %c0_i32_1 = arith.constant 0 : i32
    return %c0_i32, %c0_i32_0 : i32, i32
  }
  func.func @transform_3(%arg0: i32) -> (i32, i32) {
    %c0_i32 = arith.constant 0 : i32
    %c0_i32_0 = arith.constant 0 : i32
    %c0_i32_1 = arith.constant 0 : i32
    return %c0_i32, %c0_i32_0 : i32, i32
  }
  func.func @transform_4(%arg0: i32) -> (i32, i32) {
    %c0_i32 = arith.constant 0 : i32
    %c0_i32_0 = arith.constant 0 : i32
    %c0_i32_1 = arith.constant 0 : i32
    return %c0_i32, %c0_i32_0 : i32, i32
  }
  func.func @transform_5(%arg0: i32) -> (i32, i32) {
    %c0_i32 = arith.constant 0 : i32
    %c0_i32_0 = arith.constant 0 : i32
    %c0_i32_1 = arith.constant 0 : i32
    return %c0_i32, %c0_i32_0 : i32, i32
  }
  func.func @transform_6(%arg0: i32) -> (i32, i32) {
    %c0_i32 = arith.constant 0 : i32
    %c0_i32_0 = arith.constant 0 : i32
    %c0_i32_1 = arith.constant 0 : i32
    return %c0_i32, %c0_i32_0 : i32, i32
  }
  func.func @transform_7(%arg0: i32) -> (i32, i32) {
    %c0_i32 = arith.constant 0 : i32
    %c0_i32_0 = arith.constant 0 : i32
    %c0_i32_1 = arith.constant 0 : i32
    return %c0_i32, %c0_i32_0 : i32, i32
  }
  func.func @transform_8(%arg0: i32) -> (i32, i32) {
    %c0_i32 = arith.constant 0 : i32
    %c0_i32_0 = arith.constant 0 : i32
    %c0_i32_1 = arith.constant 0 : i32
    return %c0_i32, %c0_i32_0 : i32, i32
  }
  func.func @transform_9(%arg0: i32) -> (i32, i32) {
    %c0_i32 = arith.constant 0 : i32
    %c0_i32_0 = arith.constant 0 : i32
    %c0_i32_1 = arith.constant 0 : i32
    return %c0_i32, %c0_i32_0 : i32, i32
  }
  func.func @transform_10(%arg0: i32) -> (i32, i32) {
    %c0_i32 = arith.constant 0 : i32
    %c0_i32_0 = arith.constant 0 : i32
    %c0_i32_1 = arith.constant 0 : i32
    return %c0_i32, %c0_i32_0 : i32, i32
  }
  func.func @transform_11(%arg0: i32) -> (i32, i32) {
    %c0_i32 = arith.constant 0 : i32
    %c0_i32_0 = arith.constant 0 : i32
    %c0_i32_1 = arith.constant 0 : i32
    return %c0_i32, %c0_i32_0 : i32, i32
  }
  func.func @transform_12(%arg0: i32) -> (i32, i32) {
    %c0_i32 = arith.constant 0 : i32
    %c0_i32_0 = arith.constant 0 : i32
    %c0_i32_1 = arith.constant 0 : i32
    return %c0_i32, %c0_i32_0 : i32, i32
  }
  func.func @transform_13(%arg0: i32) -> (i32, i32) {
    %c0_i32 = arith.constant 0 : i32
    %c0_i32_0 = arith.constant 0 : i32
    %c0_i32_1 = arith.constant 0 : i32
    return %c0_i32, %c0_i32_0 : i32, i32
  }
  func.func @transform_14(%arg0: i32) -> (i32, i32) {
    %c0_i32 = arith.constant 0 : i32
    %c0_i32_0 = arith.constant 0 : i32
    %c0_i32_1 = arith.constant 0 : i32
    return %c0_i32, %c0_i32_0 : i32, i32
  }
  func.func @transform_15(%arg0: i32) -> (i32, i32) {
    %c0_i32 = arith.constant 0 : i32
    %c0_i32_0 = arith.constant 0 : i32
    %c0_i32_1 = arith.constant 0 : i32
    return %c0_i32, %c0_i32_0 : i32, i32
  }
  func.func @transform_16(%arg0: i32) -> (i32, i32, i32) {
    %c0_i32 = arith.constant 0 : i32
    %c0_i32_0 = arith.constant 0 : i32
    %c0_i32_1 = arith.constant 0 : i32
    return %arg0, %c0_i32, %c0_i32_0 : i32, i32, i32
  }
}

</mosaic_0001>

<bundles_post_ra>
// kernel: esa_forward.1
= control target key start
LH: loop header
LB: loop body
LE: loop exit
PB: predicated region body
PF: predicated region fallthrough
CT: control target
= control target key end

     0   :  { %s2797_s21 = smov 0   ;;  %s3479_s0 = inlined_call_operand.vmem [shape: f32[2,32,256], index: 0, kind: input, shape index: {}]   ;;  %s3480_s1 = inlined_call_operand.vmem [shape: f32[8,32], index: 1, kind: input, shape index: {}]   ;;  %s3481_s2 = inlined_call_operand.vmem [shape: f32[8,1], index: 2, kind: input, shape index: {}]   ;;  %s3482_s3 = inlined_call_operand.vmem [shape: f32[8,216], index: 3, kind: input, shape index: {}]   ;;  %s3483_s4 = inlined_call_operand.vmem [shape: f32[8,1], index: 4, kind: input, shape index: {}]   ;;  %s3484_s5 = inlined_call_operand.vmem [shape: f32[8,8], index: 5, kind: input, shape index: {}]   ;;  %s3485_s6 = inlined_call_operand.vmem [shape: f32[8,1], index: 6, kind: input, shape index: {}]   ;;  %s3486_s7 = inlined_call_operand.vmem [shape: f32[8,72], index: 7, kind: input, shape index: {}]   ;;  %s3487_s8 = inlined_call_operand.vmem [shape: f32[8,1], index: 8, kind: input, shape index: {}]   ;;  %s3488_s9 = inlined_call_operand.vmem [shape: f32[8,72], index: 9, kind: input, shape index: {}]   ;;  %s3489_s10 = inlined_call_operand.vmem [shape: f32[8,1], index: 10, kind: input, shape index: {}]   ;;  %s3490_s11 = inlined_call_operand.vmem [shape: f32[8,72], index: 11, kind: input, shape index: {}]   ;;  %s3491_s12 = inlined_call_operand.vmem [shape: f32[8,1], index: 12, kind: input, shape index: {}]   ;;  %s3492_s13 = inlined_call_operand.vmem [shape: f32[16,256], index: 13, kind: input, shape index: {}]   ;;  %s3493_s14 = inlined_call_operand.vmem [shape: f32[32,8], index: 14, kind: input, shape index: {}]   ;;  %s3494_s15 = inlined_call_operand.vmem [shape: f32[32,1], index: 15, kind: input, shape index: {}]   ;;  %s3495_s16 = inlined_call_operand.vmem [shape: f32[2,32,256], index: 16, kind: output, shape index: {}]  }
   0x1   :  { %3510 = sst [smem:[#allocation5_spill]] %s3479_s0 }
   0x2 LB: > { %s2355_s22 = sadd.s32 4294967295, %s2682_s21   ;;  %p2359_p0 = scmp.ge.s32.totalorder %s2682_s21, 1  ;;  %s2682_s21 = sphi %s2797_s21, %s26_s21  }
   0x3   : > { %p462_p1 = scmp.lt.s32.totalorder %s2682_s21, 3 }
   0x5   : > { %p463_p2 = pnand %p2359_p0, %p462_p1 }
   0x6   : > { %p512_p3 = scmp.lt.s32.totalorder (!%p463_p2), %s2355_s22, 1  ;;  %v531_v0 = vld [vmem:[%s3481_s2] sm:$0xff] (!%p463_p2)  ;;  %v2684_v1 = vmov (!%p463_p2), 0.0   ;;  %v2685_v2 = vmov (!%p463_p2), 0   ;;  %s3511_s28 = sld [smem:[#allocation5_spill]] (!%p463_p2)  ;;  %vm537_vm0 = vcmask (!%p463_p2), 261120   ;;  %v694_v16 = vlaneseq (!%p463_p2) }
   0x7   : > { %466 = sbr.rel (%p463_p2) target bundleno = 2510 (0x9ce), region = 84  ;;  %605 = vmatprep.mubr.f32.mxu0 (!%p463_p2), %v2684_v1  ;;  %2634 = vset.pattern.permute.xlu0 (!%p463_p2), %v2685_v2  ;;  %v530_v15 = vld [vmem:[%s3480_s1] sm:$0xff] (!%p463_p2)  ;;  %s2686_s17 = smov (!%p463_p2), 112   ;;  %v1098_v50 = vld [vmem:[%s3482_s3 + $0x8] sm:$0xff] (!%p463_p2)  ;;  %vm1159_vm13 = vcmask (!%p463_p2), 719872   ;;  %vm759_vm14 = vcmask (!%p463_p2), 1047680  }
   0x8   : > { %534 = vperm.xlu0 (!%p463_p2), %2634, %v531_v0   ;;  %2635 = vset.pattern.permute.xlu1 (!%p463_p2), %v2685_v2  ;;  %v2831_v17 = vand.u32 (!%p463_p2), 127, %v694_v16  ;;  %s2687_s18 = smov (!%p463_p2), 16   ;;  %s2688_s19 = smov (!%p463_p2), 48   ;;  %v1153_v51 = vld [vmem:[%s3483_s4] sm:$0xff] (!%p463_p2)  ;;  %vm3500_vm15 = vcmask (!%p463_p2), 130048  }
   0x9   : > { %s2689_s20 = smov (!%p463_p2), 17   ;;  %s2690_s23 = smov (!%p463_p2), 15   ;;  %2378 = vmatprep.mubr.msk.f32.mxu1 (!%p463_p2), %vm1159_vm13, %v1098_v50  ;;  %vm913_vm13 = vcmask (!%p463_p2), 367616  }
   0xa   : > { %v2834_v18 = vand.u32 (!%p463_p2), 15, %v2831_v17  ;;  %s2691_s24 = smov (!%p463_p2), 1   ;;  %s2692_s26 = smov (!%p463_p2), 127   ;;  %v696_v30 = vadd.s32 (!%p463_p2), 128, %v2831_v17 }
   0xb   : > { %s2693_s27 = smov (!%p463_p2), 113   ;;  %s2695_s30 = smov (!%p463_p2), 51  }
   0xc   : > { %v2366_v20 = vadd.s32 (!%p463_p2), 1, %v2834_v18  ;;  %v2368_v25 = vadd.s32 (!%p463_p2), 4294967295, %v2834_v18  ;;  %v2372_v28 = vadd.s32 (!%p463_p2), 4294967293, %v2834_v18  ;;  %v2370_v29 = vadd.s32 (!%p463_p2), 3, %v2834_v18  ;;  %s2696_s0 = smov (!%p463_p2), 3  }
   0xd   : > { %v708_v33 = vand.u32 (!%p463_p2), 15, %v696_v30  ;;  %v2374_v42 = vadd.s32 (!%p463_p2), 5, %v2834_v18  ;;  %v2376_v44 = vadd.s32 (!%p463_p2), 4294967291, %v2834_v18 }
   0xe   : > { %s3555_s22 = smov (!%p512_p3, %s2355_s22), 1  ;;  %vm725_vm1 = vcmp.lt.s32.totalorder %v2366_v20, 16  ;;  %vm765_vm2 = vcmp.ge.s32.totalorder %v2368_v25, 0  ;;  %vm895_vm3 = vcmp.ge.s32.totalorder %v2372_v28, 0  ;;  %vm857_vm4 = vcmp.lt.s32.totalorder %v2370_v29, 16 }
   0xf   : > { %s3496_s25 = sshll.u32 %s3555_s22, 6  ;;  %v2367_v34 = vadd.s32 1, %v708_v33  ;;  %v2369_v35 = vadd.s32 4294967295, %v708_v33  ;;  %v2371_v38 = vadd.s32 3, %v708_v33  ;;  %v2373_v39 = vadd.s32 4294967293, %v708_v33 }
  0x10   : > { %s2817_s29 = scalar_lea.vmem %s3511_s28, %s3496_s25  ;;  %s2694_s28 = smov 45   ;;  %v2375_v43 = vadd.s32 5, %v708_v33  ;;  %vm987_vm9 = vcmp.lt.s32.totalorder %v2374_v42, 16  ;;  %v2377_v45 = vadd.s32 4294967291, %v708_v33  ;;  %vm1017_vm11 = vcmp.ge.s32.totalorder %v2376_v44, 0 }
  0x11   : > { %v523_v3 = vld [vmem:[%s2817_s29 + $0x8] sm:$0xff]  ;;  %v525_v4 = vld [vmem:[%s2817_s29 + $0x18] sm:$0xff]  ;;  %v522_v5 = vld [vmem:[%s2817_s29] sm:$0xff]  ;;  %vm726_vm5 = vcmp.lt.s32.totalorder %v2367_v34, 16  ;;  %vm766_vm6 = vcmp.ge.s32.totalorder %v2369_v35, 0  ;;  %s2699_s25 = smov 83  }
  0x12   : > { %v2494_v6 = vpack.c.bf16 %v525_v4, %v523_v3  ;;  %v524_v7 = vld [vmem:[%s2817_s29 + $0x10] sm:$0xff]  ;;  %v527_v8 = vld [vmem:[%s2817_s29 + $0x28] sm:$0xff]  ;;  %v529_v9 = vld [vmem:[%s2817_s29 + $0x38] sm:$0xff]  ;;  %vm858_vm7 = vcmp.lt.s32.totalorder %v2371_v38, 16  ;;  %vm896_vm8 = vcmp.ge.s32.totalorder %v2373_v39, 0  ;;  %vm988_vm10 = vcmp.lt.s32.totalorder %v2375_v43, 16 }
  0x13   : > { %v2496_v10 = vpack.c.bf16 %v524_v7, %v522_v5  ;;  %v2498_v11 = vpack.c.bf16 %v529_v9, %v527_v8  ;;  %v526_v12 = vld [vmem:[%s2817_s29 + $0x20] sm:$0xff]  ;;  %v528_v13 = vld [vmem:[%s2817_s29 + $0x30] sm:$0xff]  ;;  %vm1018_vm12 = vcmp.ge.s32.totalorder %v2377_v45, 0 }
  0x14   : > { %2495 = vmatprep.subr.bf16.mxu0 %v2494_v6  ;;  %v2500_v14 = vpack.c.bf16 %v528_v13, %v526_v12 }
  0x15   : > { %2497 = vmatpush1.bf16.msra.mxu0 %v2496_v10 }
  0x16   : > { %2499 = vmatprep.subr.bf16.mxu0 %v2498_v11 }
  0x19   : > { %2501 = vmatpush1.bf16.msra.mxu0 %v2500_v14 }
  0x1c   : > { %2364 = vmatmul.mubr.msk.f32.vlgmr.msra.gmra.mrb[0].mxu0 %vm537_vm0, %v530_v15  ;;  %vm889_vm0 = vcmask 1047936  }
  0x1d   : > { %687 = vmatprep.mubr.f32.mxu0 %v2684_v1 }
  0x87   : > { %v535_v19 = vpop.permute.xlu0 %534 }
  0xef   : > { %v607_v21 = vpop.f32.mrb[0].mxu0 }
  0xf0   : > { %v2837_v22 = vadd.f32 %v607_v21, %v535_v19  ;;  %v609_v23 = vpop.f32.mrb[1].mxu0 }
  0xf1   : > { %v2839_v24 = vadd.f32 %v609_v23, %v535_v19 }
  0xf2   : > { %829 = vrot.lane.b32.xlu0 %v2837_v22, %s2686_s17  ;;  %751 = vrot.lane.b32.xlu1 %v2837_v22, %s2687_s18  ;;  %v733_v26 = vsel %vm725_vm1, %v2837_v22, 0.0  ;;  %v775_v27 = vsel %vm765_vm2, %v2837_v22, 0.0  ;;  %v905_v31 = vsel %vm895_vm3, %v2837_v22, 0.0  ;;  %v865_v32 = vsel %vm857_vm4, %v2837_v22, 0.0 }
  0xf3   : > { %623 = vmatprep.subr.mxu0 %v2839_v24  ;;  %v734_v36 = vsel %vm726_vm5, %v2839_v24, 0.0  ;;  %v776_v37 = vsel %vm766_vm6, %v2839_v24, 0.0  ;;  %v866_v40 = vsel %vm858_vm7, %v2839_v24, 0.0  ;;  %v906_v41 = vsel %vm896_vm8, %v2839_v24, 0.0 }
  0xf4   : > { %624 = vmatpush1.msra.mxu0 %v2837_v22  ;;  %v995_v46 = vsel %vm987_vm9, %v2837_v22, 0.0  ;;  %v996_v47 = vsel %vm988_vm10, %v2839_v24, 0.0  ;;  %v1027_v48 = vsel %vm1017_vm11, %v2837_v22, 0.0  ;;  %v1028_v49 = vsel %vm1018_vm12, %v2839_v24, 0.0 }
  0xf5   : > { %vm745_vm1 = vcmask 1047688   ;;  %vm741_vm2 = vcmask 138240   ;;  %vm885_vm3 = vcmask 392192   ;;  %vm787_vm4 = vcmask 1047672  }
  0xf6   : > { %881 = vrot.lane.b32.xlu1 %v2837_v22, %s2688_s19  ;;  %737 = vrot.lane.b32.xlu0 %v733_v26, %s2689_s20  ;;  %vm3498_vm5 = vcmask 121856   ;;  %vm799_vm6 = vcmask 1047560   ;;  %vm3501_vm7 = vcmask 7168   ;;  %vm833_vm8 = vcmask 916480  }
  0xf7   : > { %vm839_vm9 = vcmask 1048448   ;;  %vm917_vm10 = vcmask 1047912   ;;  %vm877_vm11 = vcmask 1047960   ;;  %vm873_vm12 = vcmask 416768  }
  0xfa   : > { %779 = vrot.lane.b32.xlu1 %v775_v27, %s2690_s23  ;;  %753 = vrot.lane.b32.xlu0 %v2839_v24, %s2687_s18  ;;  %s2697_s18 = smov 111  }
  0xfe   : > { %791 = vrot.lane.b32.xlu1 %v733_v26, %s2691_s24  ;;  %805 = vrot.lane.b32.xlu0 %v775_v27, %s2692_s26 }
 0x102   : > { %817 = vrot.lane.b32.xlu1 %v733_v26, %s2693_s27  ;;  %831 = vrot.lane.b32.xlu0 %v2839_v24, %s2686_s17  ;;  %s2698_s17 = smov 125  }
 0x106   : > { %909 = vrot.lane.b32.xlu1 %v905_v31, %s2694_s28  ;;  %869 = vrot.lane.b32.xlu0 %v865_v32, %s2695_s30 }
 0x10a   : > { %921 = vrot.lane.b32.xlu1 %v865_v32, %s2696_s0  ;;  %841 = vrot.lane.b32.xlu0 %v775_v27, %s2697_s18 }
 0x10e   : > { %935 = vrot.lane.b32.xlu1 %v905_v31, %s2698_s17  ;;  %883 = vrot.lane.b32.xlu0 %v2839_v24, %s2688_s19  ;;  %s2700_s19 = smov 77  }
 0x112   : > { %739 = vrot.lane.b32.xlu1 %v734_v36, %s2689_s20  ;;  %781 = vrot.lane.b32.xlu0 %v776_v37, %s2690_s23  ;;  %s2701_s20 = smov 80   ;;  %s2702_s23 = smov 85  }
 0x116   : > { %807 = vrot.lane.b32.xlu1 %v776_v37, %s2692_s26  ;;  %793 = vrot.lane.b32.xlu0 %v734_v36, %s2691_s24 }
 0x11a   : > { %819 = vrot.lane.b32.xlu1 %v734_v36, %s2693_s27  ;;  %947 = vrot.lane.b32.xlu0 %v865_v32, %s2699_s25  ;;  %s2704_s27 = smov 5  }
 0x11e   : > { %843 = vrot.lane.b32.xlu1 %v776_v37, %s2697_s18  ;;  %971 = vrot.lane.b32.xlu0 %v905_v31, %s2700_s19 }
 0x122   : > { %871 = vrot.lane.b32.xlu1 %v866_v40, %s2695_s30  ;;  %911 = vrot.lane.b32.xlu0 %v906_v41, %s2694_s28  ;;  %s2705_s28 = smov 123   ;;  %s2706_s30 = smov 53  }
 0x126   : > { %961 = vrot.lane.b32.xlu1 %v2839_v24, %s2701_s20  ;;  %923 = vrot.lane.b32.xlu0 %v866_v40, %s2696_s0 }
 0x12a   : > { %959 = vrot.lane.b32.xlu1 %v2837_v22, %s2701_s20  ;;  %949 = vrot.lane.b32.xlu0 %v866_v40, %s2699_s25  ;;  %s2703_s25 = smov 75   ;;  %s2707_s20 = smov 43  }
 0x12e   : > { %937 = vrot.lane.b32.xlu1 %v906_v41, %s2698_s17  ;;  %973 = vrot.lane.b32.xlu0 %v906_v41, %s2700_s19  ;;  %s2708_s19 = smov 4  }
 0x132   : > { %999 = vrot.lane.b32.xlu1 %v995_v46, %s2702_s23  ;;  %1001 = vrot.lane.b32.xlu0 %v996_v47, %s2702_s23 }
 0x136   : > { %1031 = vrot.lane.b32.xlu1 %v1027_v48, %s2703_s25  ;;  %1033 = vrot.lane.b32.xlu0 %v1028_v49, %s2703_s25  ;;  %s2710_s25 = smov 124  }
 0x13a   : > { %1043 = vrot.lane.b32.xlu1 %v995_v46, %s2704_s27  ;;  %1045 = vrot.lane.b32.xlu0 %v996_v47, %s2704_s27 }
 0x13e   : > { %1059 = vrot.lane.b32.xlu1 %v1028_v49, %s2705_s28  ;;  %1057 = vrot.lane.b32.xlu0 %v1027_v48, %s2705_s28 }
 0x142   : > { %1071 = vrot.lane.b32.xlu1 %v996_v47, %s2706_s30  ;;  %1069 = vrot.lane.b32.xlu0 %v995_v46, %s2706_s30 }
 0x146   : > { %1087 = vrot.lane.b32.xlu1 %v1028_v49, %s2707_s20  ;;  %1085 = vrot.lane.b32.xlu0 %v1027_v48, %s2707_s20 }
 0x14a   : > { %1156 = vperm.xlu1 %2635, %v1153_v51  }
 0x164   : > { %v830_v52 = vpop.permute.xlu0 %829  ;;  %v752_v53 = vpop.permute.xlu1 %751 }
 0x165   : > { %760 = vst.msk [vmem:[#allocation2 + $0x10] sm:$0xff] %vm759_vm14, %v752_v53  ;;  %vm929_vm14 = vcmask 1047576  }
 0x166   : > { %762 = vst.msk [vmem:[#allocation2 + $0x10] sm:$0xff] %vm3500_vm15, %v2684_v1 }
 0x168   : > { %v882_v54 = vpop.permute.xlu1 %881  ;;  %v738_v55 = vpop.permute.xlu0 %737 }
 0x169   : > { %890 = vst.msk [vmem:[#allocation2 + $0xa0] sm:$0xff] %vm889_vm0, %v882_v54 }
 0x16a   : > { %746 = vst.msk [vmem:[#allocation2] sm:$0xff] %vm745_vm1, %v738_v55  ;;  %vm3497_vm1 = vcmask 23552  }
 0x16b   : > { %892 = vst.msk [vmem:[#allocation2 + $0xa0] sm:$0xff] %vm885_vm3, %v2684_v1 }
 0x16c   : > { %748 = vst.msk [vmem:[#allocation2] sm:$0xff] %vm741_vm2, %v2684_v1  ;;  %v780_v56 = vpop.permute.xlu1 %779  ;;  %v754_v57 = vpop.permute.xlu0 %753 }
 0x16d   : > { %788 = vst.msk [vmem:[#allocation2 + $0x20] sm:$0xff] %vm787_vm4, %v780_v56  ;;  %v756_v58 = vsel %vm3500_vm15, %v752_v53, %v754_v57  ;;  %v1101_v9 = vld [vmem:[#allocation2 + $0x10] sm:$0xff]  ;;  %vm809_vm4 = vcmask 1039360   ;;  %vm1324_vm15 = vcmask 630320  }
 0x16e   : > { %790 = vst.msk [vmem:[#allocation2 + $0x20] sm:$0xff] %vm3498_vm5, %v2684_v1 }
 0x170   : > { %v792_v59 = vpop.permute.xlu1 %791  ;;  %v806_v60 = vpop.permute.xlu0 %805 }
 0x171   : > { %800 = vst.msk [vmem:[#allocation2 + $0x30] sm:$0xff] %vm799_vm6, %v792_v59  ;;  %vm815_vm6 = vcmask 1048568  }
 0x172   : > { %802 = vst.msk [vmem:[#allocation2 + $0x30] sm:$0xff] %vm3501_vm7, %v2684_v1  ;;  %v1119_v50 = vld [vmem:[#allocation2 + $0xa0] sm:$0xff] }
 0x173   : > { %v1099_v8 = vld [vmem:[#allocation2] sm:$0xff] }
 0x174   : > { %v818_v61 = vpop.permute.xlu1 %817  ;;  %v832_v62 = vpop.permute.xlu0 %831  ;;  %v2504_v14 = vpack.c.bf16 %v1101_v9, %v1099_v8 }
 0x175   : > { %v2911_v63 = vsel %vm833_vm8, %v830_v52, %v832_v62  ;;  %838 = vst.msk [vmem:[#allocation2 + $0x78] sm:$0xff] %vm833_vm8, %v832_v62  ;;  %v1103_v16 = vld [vmem:[#allocation2 + $0x20] sm:$0xff]  ;;  %vm851_vm8 = vcmask 1048440  }
 0x176   : > { %840 = vst.msk [vmem:[#allocation2 + $0x78] sm:$0xff] %vm839_vm9, %v2684_v1  ;;  %vm963_vm9 = vcmask 654336  }
 0x178   : > { %v2914_v0 = vpop.permute.xlu1 %909  ;;  %v2916_v2 = vpop.permute.xlu0 %869 }
 0x179   : > { %918 = vst.msk [vmem:[#allocation2 + $0xb0] sm:$0xff] %vm917_vm10, %v2914_v0  ;;  %v1105_v18 = vld [vmem:[#allocation2 + $0x30] sm:$0xff]  ;;  %vm969_vm10 = vcmask 1048192  }
 0x17a   : > { %878 = vst.msk [vmem:[#allocation2 + $0x90] sm:$0xff] %vm877_vm11, %v2916_v2  ;;  %v2508_v25 = vpack.c.bf16 %v1105_v18, %v1103_v16  ;;  %vm951_vm11 = vcmask 678912  }
 0x17b   : > { %880 = vst.msk [vmem:[#allocation2 + $0x90] sm:$0xff] %vm873_vm12, %v2684_v1 }
 0x17c   : > { %920 = vst.msk [vmem:[#allocation2 + $0xb0] sm:$0xff] %vm913_vm13, %v2684_v1  ;;  %v2924_v3 = vpop.permute.xlu1 %921  ;;  %v842_v4 = vpop.permute.xlu0 %841 }
 0x17d   : > { %930 = vst.msk [vmem:[#allocation2 + $0xc0] sm:$0xff] %vm929_vm14, %v2924_v3  ;;  %v1114_v36 = vld [vmem:[#allocation2 + $0x78] sm:$0xff]  ;;  %vm975_vm14 = vcmask 629760  }
 0x17e   : > { %932 = vst.msk [vmem:[#allocation2 + $0xc0] sm:$0xff] %vm3497_vm1, %v2684_v1 }
 0x180   : > { %v2929_v5 = vpop.permute.xlu1 %935  ;;  %v884_v6 = vpop.permute.xlu0 %883 }
 0x181   : > { %v2932_v7 = vsel %vm885_vm3, %v882_v54, %v884_v6  ;;  %1083 = vst.msk [vmem:[#allocation2 + $0x198] sm:$0xff] %vm885_vm3, %v884_v6  ;;  %vm845_vm3 = vcmask 908288  }
 0x182   : > { %1084 = vst.msk [vmem:[#allocation2 + $0x198] sm:$0xff] %vm889_vm0, %v2684_v1  ;;  %vm821_vm0 = vcmask 924672   ;;  %v1117_v46 = vld [vmem:[#allocation2 + $0x90] sm:$0xff] }
 0x183   : > { %v1121_v51 = vld [vmem:[#allocation2 + $0xb0] sm:$0xff] }
 0x184   : > { %v740_v10 = vpop.permute.xlu1 %739  ;;  %v782_v11 = vpop.permute.xlu0 %781 }
 0x185   : > { %v742_v12 = vsel %vm741_vm2, %v738_v55, %v740_v10  ;;  %v784_v13 = vsel %vm3498_vm5, %v780_v56, %v782_v11  ;;  %vm827_vm2 = vcmask 1048456   ;;  %v1123_v62 = vld [vmem:[#allocation2 + $0xc0] sm:$0xff]  ;;  %vm1253_vm5 = vcmask 581120  }
 0x186   : > { %v2502_v15 = vpack.c.bf16 %v756_v58, %v742_v12  ;;  %v2524_v58 = vpack.c.bf16 %v1121_v51, %v1119_v50 }
 0x188   : > { %v808_v19 = vpop.permute.xlu1 %807  ;;  %v794_v20 = vpop.permute.xlu0 %793  ;;  %2503 = vmatprep.subr.bf16.mxu1 %v2502_v15 }
 0x189   : > { %v810_v21 = vsel %vm809_vm4, %v806_v60, %v808_v19  ;;  %814 = vst.msk [vmem:[#allocation2 + $0x58] sm:$0xff] %vm809_vm4, %v808_v19  ;;  %v796_v23 = vsel %vm3501_vm7, %v792_v59, %v794_v20  ;;  %2505 = vmatpush1.bf16.msra.mxu1 %v2504_v14  ;;  %vm945_vm4 = vcmask 1048552   ;;  %vm3505_vm7 = vcmask 523720  }
 0x18a   : > { %816 = vst.msk [vmem:[#allocation2 + $0x58] sm:$0xff] %vm815_vm6, %v2684_v1  ;;  %v2506_v26 = vpack.c.bf16 %v796_v23, %v784_v13  ;;  %v2512_v35 = vpack.c.bf16 %v810_v21, %v2837_v22  ;;  %vm981_vm6 = vcmask 1048168  }
 0x18c   : > { %v820_v27 = vpop.permute.xlu1 %819  ;;  %v948_v28 = vpop.permute.xlu0 %947  ;;  %2507 = vmatprep.subr.bf16.mxu1 %v2506_v26 }
 0x18d   : > { %v822_v29 = vsel %vm821_vm0, %v818_v61, %v820_v27  ;;  %826 = vst.msk [vmem:[#allocation2 + $0x68] sm:$0xff] %vm821_vm0, %v820_v27  ;;  %2509 = vmatpush1.bf16.msra.mxu1 %v2508_v25  ;;  %vm1007_vm0 = vcmask 1048232  }
 0x18e   : > { %828 = vst.msk [vmem:[#allocation2 + $0x68] sm:$0xff] %vm827_vm2, %v2684_v1  ;;  %v2516_v43 = vpack.c.bf16 %v2911_v63, %v822_v29  ;;  %vm1003_vm2 = vcmask 695296  }
 0x190   : > { %v844_v30 = vpop.permute.xlu1 %843  ;;  %v972_v31 = vpop.permute.xlu0 %971 }
 0x191   : > { %v846_v32 = vsel %vm845_vm3, %v842_v4, %v844_v30  ;;  %850 = vst.msk [vmem:[#allocation2 + $0x88] sm:$0xff] %vm845_vm3, %v844_v30  ;;  %v1110_v33 = vld [vmem:[#allocation2 + $0x58] sm:$0xff]  ;;  %vm1039_vm3 = vcmask 1048152  }
 0x192   : > { %852 = vst.msk [vmem:[#allocation2 + $0x88] sm:$0xff] %vm851_vm8, %v2684_v1  ;;  %v2510_v34 = vpack.c.bf16 %v1110_v33, %v2839_v24  ;;  %v2520_v52 = vpack.c.bf16 %v1117_v46, %v846_v32  ;;  %vm1035_vm8 = vcmask 613376  }
 0x194   : > { %v872_v37 = vpop.permute.xlu1 %871  ;;  %v912_v38 = vpop.permute.xlu0 %911  ;;  %2511 = vmatprep.subr.bf16.mxu1 %v2510_v34 }
 0x195   : > { %v874_v39 = vsel %vm873_vm12, %v2916_v2, %v872_v37  ;;  %v914_v40 = vsel %vm913_vm13, %v2914_v0, %v912_v38  ;;  %2513 = vmatpush1.bf16.msra.mxu1 %v2512_v35  ;;  %v1112_v41 = vld [vmem:[#allocation2 + $0x68] sm:$0xff]  ;;  %vm957_vm12 = vcmask 1048216   ;;  %vm939_vm13 = vcmask 1022976  }
 0x196   : > { %v2514_v42 = vpack.c.bf16 %v1114_v36, %v1112_v41  ;;  %v2522_v55 = vpack.c.bf16 %v914_v40, %v2932_v7  ;;  %v2528_v2 = vpack.c.bf16 %v2837_v22, %v1123_v62 }
 0x198   : > { %v962_v44 = vpop.permute.xlu1 %961  ;;  %v924_v45 = vpop.permute.xlu0 %923  ;;  %2515 = vmatprep.subr.bf16.mxu1 %v2514_v42 }
 0x199   : > { %968 = vst.msk [vmem:[#allocation2 + $0x108] sm:$0xff] %vm963_vm9, %v962_v44  ;;  %v926_v47 = vsel %vm3497_vm1, %v2924_v3, %v924_v45  ;;  %2517 = vmatpush1.bf16.msra.mxu1 %v2516_v43  ;;  %v1116_v48 = vld [vmem:[#allocation2 + $0x88] sm:$0xff]  ;;  %vm1288_vm1 = vcmask 605720  }
 0x19a   : > { %970 = vst.msk [vmem:[#allocation2 + $0x108] sm:$0xff] %vm969_vm10, %v2684_v1  ;;  %v2518_v49 = vpack.c.bf16 %v874_v39, %v1116_v48  ;;  %v2526_v61 = vpack.c.bf16 %v2839_v24, %v926_v47 }
 0x19c   : > { %v960_v53 = vpop.permute.xlu1 %959  ;;  %v950_v54 = vpop.permute.xlu0 %949  ;;  %2519 = vmatprep.subr.bf16.mxu1 %v2518_v49  ;;  %v1097_v49 = vld [vmem:[%s3482_s3] sm:$0xff] }
 0x19d   : > { %v2956_v56 = vsel %vm963_vm9, %v960_v53, %v962_v44  ;;  %1012 = vst.msk [vmem:[#allocation2 + $0x130] sm:$0xff] %vm969_vm10, %v960_v53  ;;  %v952_v57 = vsel %vm951_vm11, %v948_v28, %v950_v54  ;;  %2521 = vmatpush1.bf16.msra.mxu1 %v2520_v52  ;;  %vm1051_vm10 = vcmask 1047592   ;;  %v1150_v44 = vld [vmem:[#allocation2 + $0x198] sm:$0xff] }
 0x19e   : > { %956 = vst.msk [vmem:[#allocation2 + $0xf8] sm:$0xff] %vm951_vm11, %v950_v54  ;;  %2523 = vmatprep.subr.bf16.mxu1 %v2522_v55  ;;  %vm1061_vm11 = vcmask 1006592  }
 0x19f   : > { %1014 = vst.msk [vmem:[#allocation2 + $0x130] sm:$0xff] %vm963_vm9, %v2684_v1  ;;  %vm3499_vm9 = vcmask 39936  }
 0x1a0   : > { %958 = vst.msk [vmem:[#allocation2 + $0xf8] sm:$0xff] %vm957_vm12, %v2684_v1  ;;  %v938_v59 = vpop.permute.xlu1 %937  ;;  %v974_v60 = vpop.permute.xlu0 %973  ;;  %vm1067_vm12 = vcmask 1048536  }
 0x1a1   : > { %v940_v63 = vsel %vm939_vm13, %v2929_v5, %v938_v59  ;;  %944 = vst.msk [vmem:[#allocation2 + $0xe8] sm:$0xff] %vm939_vm13, %v938_v59  ;;  %v976_v0 = vsel %vm975_vm14, %v972_v31, %v974_v60  ;;  %2525 = vmatpush1.bf16.msra.mxu1 %v2524_v58  ;;  %v1132_v8 = vld [vmem:[#allocation2 + $0x108] sm:$0xff]  ;;  %vm1073_vm13 = vcmask 433152  }
 0x1a2   : > { %980 = vst.msk [vmem:[#allocation2 + $0x118] sm:$0xff] %vm975_vm14, %v974_v60  ;;  %2527 = vmatprep.subr.bf16.mxu1 %v2526_v61  ;;  %v2532_v16 = vpack.c.bf16 %v952_v57, %v940_v63  ;;  %v2536_v25 = vpack.c.bf16 %v976_v0, %v2956_v56  ;;  %vm1079_vm14 = vcmask 1047976  }
 0x1a3   : > { %946 = vst.msk [vmem:[#allocation2 + $0xe8] sm:$0xff] %vm945_vm4, %v2684_v1  ;;  %vm1089_vm4 = vcmask 351232  }
 0x1a4   : > { %982 = vst.msk [vmem:[#allocation2 + $0x118] sm:$0xff] %vm981_vm6, %v2684_v1  ;;  %v1000_v3 = vpop.permute.xlu1 %999  ;;  %v1002_v4 = vpop.permute.xlu0 %1001  ;;  %vm1095_vm6 = vcmask 1047896  }
 0x1a5   : > { %1008 = vst.msk [vmem:[#allocation2 + $0x120] sm:$0xff] %vm1007_vm0, %v1000_v3  ;;  %v1004_v6 = vsel %vm1003_vm2, %v1000_v3, %v1002_v4  ;;  %2529 = vmatpush1.bf16.msra.mxu1 %v2528_v2  ;;  %vm1238_vm0 = vcmask 187520  }
 0x1a6   : > { %1010 = vst.msk [vmem:[#allocation2 + $0x120] sm:$0xff] %vm1003_vm2, %v2684_v1  ;;  %v1137_v23 = vld [vmem:[#allocation2 + $0x130] sm:$0xff]  ;;  %v2538_v28 = vpack.c.bf16 %v2956_v56, %v1004_v6  ;;  %vm3502_vm2 = vcmask 56320  }
 0x1a7   : > { %v1130_v5 = vld [vmem:[#allocation2 + $0xf8] sm:$0xff] }
 0x1a8   : > { %v1032_v9 = vpop.permute.xlu1 %1031  ;;  %v1034_v10 = vpop.permute.xlu0 %1033 }
 0x1a9   : > { %1040 = vst.msk [vmem:[#allocation2 + $0x140] sm:$0xff] %vm1039_vm3, %v1032_v9  ;;  %v1036_v11 = vsel %vm1035_vm8, %v1032_v9, %v1034_v10  ;;  %vm3503_vm3 = vcmask 318720  }
 0x1aa   : > { %v1128_v12 = vld [vmem:[#allocation2 + $0xe8] sm:$0xff]  ;;  %1042 = vst.msk [vmem:[#allocation2 + $0x140] sm:$0xff] %vm1035_vm8, %v2684_v1  ;;  %vm3504_vm8 = vcmask 80920  }
 0x1ab   : > { %v1134_v13 = vld [vmem:[#allocation2 + $0x118] sm:$0xff]  ;;  %v2530_v14 = vpack.c.bf16 %v1130_v5, %v1128_v12 }
 0x1ac   : > { %v2534_v15 = vpack.c.bf16 %v1134_v13, %v1132_v8  ;;  %v1044_v18 = vpop.permute.xlu1 %1043  ;;  %v1046_v19 = vpop.permute.xlu0 %1045 }
 0x1ad   : > { %2531 = vmatprep.subr.bf16.mxu1 %v2530_v14  ;;  %1052 = vst.msk [vmem:[#allocation2 + $0x150] sm:$0xff] %vm1051_vm10, %v1044_v18  ;;  %v1048_v20 = vsel %vm3499_vm9, %v1044_v18, %v1046_v19  ;;  %v1135_v21 = vld [vmem:[#allocation2 + $0x120] sm:$0xff]  ;;  %vm1309_vm10 = vcmask 236720  }
 0x1ae   : > { %2533 = vmatpush1.bf16.msra.mxu1 %v2532_v16  ;;  %1054 = vst.msk [vmem:[#allocation2 + $0x150] sm:$0xff] %vm3499_vm9, %v2684_v1  ;;  %v2540_v30 = vpack.c.bf16 %v1137_v23, %v1135_v21  ;;  %v2542_v34 = vpack.c.bf16 %v1048_v20, %v1036_v11  ;;  %vm3513_vm9 = vcmask 56320  }
 0x1af   : > { %2535 = vmatprep.subr.bf16.mxu1 %v2534_v15 }
 0x1b0   : > { %v1060_v26 = vpop.permute.xlu1 %1059  ;;  %v1058_v27 = vpop.permute.xlu0 %1057 }
 0x1b1   : > { %1066 = vst.msk [vmem:[#allocation2 + $0x178] sm:$0xff] %vm1061_vm11, %v1060_v26  ;;  %v1062_v29 = vsel %vm1061_vm11, %v1058_v27, %v1060_v26  ;;  %v1139_v31 = vld [vmem:[#allocation2 + $0x140] sm:$0xff]  ;;  %vm1273_vm11 = vcmask 212120  }
 0x1b2   : > { %2537 = vmatpush1.bf16.msra.mxu1 %v2536_v25  ;;  %1068 = vst.msk [vmem:[#allocation2 + $0x178] sm:$0xff] %vm1067_vm12, %v2684_v1  ;;  %v2548_v43 = vpack.c.bf16 %v1062_v29, %v2837_v22  ;;  %vm1263_vm12 = vcmask 843520  }
 0x1b3   : > { %2539 = vmatprep.subr.bf16.mxu1 %v2538_v28 }
 0x1b4   : > { %v1072_v32 = vpop.permute.xlu1 %1071  ;;  %v1070_v33 = vpop.permute.xlu0 %1069 }
 0x1b5   : > { %1078 = vst.msk [vmem:[#allocation2 + $0x188] sm:$0xff] %vm1073_vm13, %v1072_v32  ;;  %v1074_v35 = vsel %vm1073_vm13, %v1070_v33, %v1072_v32  ;;  %v1141_v36 = vld [vmem:[#allocation2 + $0x150] sm:$0xff]  ;;  %vm1329_vm13 = vcmask 761520  }
 0x1b6   : > { %2541 = vmatpush1.bf16.msra.mxu1 %v2540_v30  ;;  %1080 = vst.msk [vmem:[#allocation2 + $0x188] sm:$0xff] %vm1079_vm14, %v2684_v1  ;;  %v2544_v37 = vpack.c.bf16 %v1141_v36, %v1139_v31  ;;  %v2552_v47 = vpack.c.bf16 %v2932_v7, %v1074_v35  ;;  %vm1248_vm14 = vcmask 449920  }
 0x1b7   : > { %2543 = vmatprep.subr.bf16.mxu1 %v2542_v34 }
 0x1b8   : > { %v1088_v38 = vpop.permute.xlu1 %1087  ;;  %v1086_v39 = vpop.permute.xlu0 %1085 }
 0x1b9   : > { %1094 = vst.msk [vmem:[#allocation2 + $0x1a8] sm:$0xff] %vm1089_vm4, %v1088_v38  ;;  %v1090_v40 = vsel %vm1089_vm4, %v1086_v39, %v1088_v38  ;;  %v1146_v41 = vld [vmem:[#allocation2 + $0x178] sm:$0xff]  ;;  %vm1278_vm4 = vcmask 343320  }
 0x1ba   : > { %2545 = vmatpush1.bf16.msra.mxu1 %v2544_v37  ;;  %1096 = vst.msk [vmem:[#allocation2 + $0x1a8] sm:$0xff] %vm1095_vm6, %v2684_v1  ;;  %v2546_v42 = vpack.c.bf16 %v1146_v41, %v2839_v24  ;;  %vm1345_vm6 = vcmask 261320  }
 0x1bc   : > { %2547 = vmatprep.subr.bf16.mxu1 %v2546_v42 }
 0x1bd   : > { %v1148_v45 = vld [vmem:[#allocation2 + $0x188] sm:$0xff] }
 0x1be   : > { %2549 = vmatpush1.bf16.msra.mxu1 %v2548_v43  ;;  %v2550_v46 = vpack.c.bf16 %v1150_v44, %v1148_v45 }
 0x1c0   : > { %2551 = vmatprep.subr.bf16.mxu1 %v2550_v46 }
 0x1c1   : > { %v1152_v48 = vld [vmem:[#allocation2 + $0x1a8] sm:$0xff] }
 0x1c2   : > { %2553 = vmatpush1.bf16.msra.mxu1 %v2552_v47 }
 0x1c3   : > { %1215 = vmatprep.subr.mxu1 %v1152_v48 }
 0x1c6   : > { %1216 = vmatpush1.msra.mxu1 %v1090_v40 }
 0x1c7   : > { %1228 = vmatmul.mubr.f32.vlgmr.msra.gmra.mrb[0].mxu1 %v1097_v49 }
 0x1c8   : > { %2211 = vmatprep.mubr.f32.mxu1 %v2684_v1 }
 0x1c9   : > { %v1157_v22 = vpop.permute.xlu1 %1156 }
 0x29a   : > { %v1229_v24 = vpop.f32.mrb[0].mxu1 }
 0x29b   : > { %v2983_v50 = vadd.f32 %v1229_v24, %v1157_v22  ;;  %v1231_v51 = vpop.f32.mrb[1].mxu1 }
 0x29c   : > { %v2989_v53 = vadd.f32 %v1231_v51, %v1157_v22 }
 0x29d   : > { %v1239_v7 = vsel %vm1238_vm0, %v2983_v50, -inf  ;;  %v1235_v52 = vsel %vm3502_vm2, %v2983_v50, -inf  ;;  %v1244_v54 = vsel %vm3503_vm3, %v2983_v50, -inf  ;;  %v1270_v55 = vsel %vm3504_vm8, %v2983_v50, -inf }
 0x29e   : > { %1240 = vmax.xlane.f32.xlu1 %v1239_v7  ;;  %1236 = vmax.xlane.f32.xlu0 %v1235_v52  ;;  %v1310_v56 = vsel %vm1309_vm10, %v2983_v50, -inf  ;;  %v1274_v57 = vsel %vm1273_vm11, %v2983_v50, -inf  ;;  %v3001_v58 = vsel %vm1238_vm0, %v2989_v53, -inf  ;;  %vm3512_vm8 = vcmask 318720  }
 0x29f   : > { %v3005_v59 = vsel %vm3512_vm8, %v2989_v53, -inf  ;;  %v3009_v60 = vsel %vm3513_vm9, %v2989_v53, -inf  ;;  %vm1334_vm2 = vcmask 892720   ;;  %v3013_v61 = vsel %vm1309_vm10, %v2989_v53, -inf }
 0x2a0   : > { %v3017_v62 = vsel %vm1273_vm11, %v2989_v53, -inf  ;;  %vm1416_vm0 = vcmask 1023920   ;;  %vm1370_vm3 = vcmask 917320   ;;  %v3021_v63 = vsel %vm1278_vm4, %v2989_v53, -inf }
 0x2a1   : > { %v3025_v0 = vsel %vm1248_vm14, %v2989_v53, -inf  ;;  %vm1434_vm9 = vcmask 1048520   ;;  %v3029_v2 = vsel %vm1253_vm5, %v2989_v53, -inf  ;;  %v3033_v3 = vsel %vm1345_vm6, %v2989_v53, -inf }
 0x2a2   : > { %1245 = vmax.xlane.f32.xlu1 %v1244_v54  ;;  %1271 = vmax.xlane.f32.xlu0 %v1270_v55  ;;  %v3037_v4 = vsel %vm1288_vm1, %v2989_v53, -inf  ;;  %vm3514_vm8 = vcmask 130120   ;;  %vm3515_vm10 = vcmask 105520   ;;  %v3045_v8 = vsel %vm1324_vm15, %v2989_v53, -inf }
 0x2a3   : > { %v1342_v6 = vsel %vm3514_vm8, %v2983_v50, -inf  ;;  %v1306_v5 = vsel %vm3515_vm10, %v2983_v50, -inf  ;;  %v3049_v9 = vsel %vm3505_vm7, %v2989_v53, -inf  ;;  %v3053_v10 = vsel %vm1263_vm12, %v2989_v53, -inf }
 0x2a4   : > { %vm3516_vm11 = vcmask 712320   ;;  %vm3517_vm8 = vcmask 736920   ;;  %vm3518_vm10 = vcmask 974720   ;;  %v3069_v14 = vsel %vm1329_vm13, %v2989_v53, -inf }
 0x2a5   : > { %v3057_v11 = vsel %vm3516_vm11, %v2989_v53, -inf  ;;  %v3061_v12 = vsel %vm3517_vm8, %v2989_v53, -inf  ;;  %v3065_v13 = vsel %vm3518_vm10, %v2989_v53, -inf  ;;  %vm3519_vm7 = vcmask 786120  }
 0x2a6   : > { %1311 = vmax.xlane.f32.xlu1 %v1310_v56  ;;  %1275 = vmax.xlane.f32.xlu0 %v1274_v57  ;;  %v3073_v15 = vsel %vm3519_vm7, %v2989_v53, -inf  ;;  %v3077_v16 = vsel %vm1416_vm0, %v2989_v53, -inf  ;;  %v3081_v18 = vsel %vm1334_vm2, %v2989_v53, -inf  ;;  %v3085_v19 = vsel %vm1370_vm3, %v2989_v53, -inf }
 0x2a7   : > { %v3089_v20 = vsel %vm1434_vm9, %v2989_v53, -inf  ;;  %v1249_v21 = vsel %vm1248_vm14, %v2983_v50, -inf  ;;  %v1279_v23 = vsel %vm1278_vm4, %v2983_v50, -inf  ;;  %vm1314_vm7 = vcmask 367920   ;;  %vm3520_vm4 = vmmov %vm3516_vm11 }
 0x2a8   : > { %v1315_v25 = vsel %vm1314_vm7, %v2983_v50, -inf  ;;  %v1346_v26 = vsel %vm1345_vm6, %v2983_v50, -inf  ;;  %v1289_v27 = vsel %vm1288_vm1, %v2983_v50, -inf  ;;  %v1254_v28 = vsel %vm1253_vm5, %v2983_v50, -inf  ;;  %vm3522_vm11 = vmmov %vm3517_vm8 }
 0x2a9   : > { %vm1283_vm14 = vcmask 474520   ;;  %v1259_v29 = vsel %vm3520_vm4, %v2983_v50, -inf  ;;  %vm1350_vm6 = vcmask 392520   ;;  %v1325_v31 = vsel %vm1324_vm15, %v2983_v50, -inf  ;;  %vm3523_vm8 = vmmov %vm3518_vm10 }
 0x2aa   : > { %1343 = vmax.xlane.f32.xlu1 %v1342_v6  ;;  %1307 = vmax.xlane.f32.xlu0 %v1306_v5  ;;  %v1284_v30 = vsel %vm1283_vm14, %v2983_v50, -inf  ;;  %v1351_v32 = vsel %vm1350_vm6, %v2983_v50, -inf  ;;  %vm1319_vm5 = vcmask 499120   ;;  %vm3521_vm1 = vcmask 523720  }
 0x2ab   : > { %v1356_v33 = vsel %vm3521_vm1, %v2983_v50, -inf  ;;  %v1320_v34 = vsel %vm1319_vm5, %v2983_v50, -inf  ;;  %v1264_v35 = vsel %vm1263_vm12, %v2983_v50, -inf  ;;  %v1294_v36 = vsel %vm3522_vm11, %v2983_v50, -inf }
 0x2ac   : > { %vm1360_vm15 = vcmask 654920   ;;  %v1381_v37 = vsel %vm3523_vm8, %v2983_v50, -inf  ;;  %vm3524_vm10 = vcmask 786120   ;;  %v1330_v40 = vsel %vm1329_vm13, %v2983_v50, -inf }
 0x2ad   : > { %v1361_v38 = vsel %vm1360_vm15, %v2983_v50, -inf  ;;  %v1366_v39 = vsel %vm3524_vm10, %v2983_v50, -inf  ;;  %vm1298_vm12 = vcmask 868120   ;;  %v1335_v41 = vsel %vm1334_vm2, %v2983_v50, -inf }
 0x2ae   : > { %1250 = vmax.xlane.f32.xlu1 %v1249_v21  ;;  %1280 = vmax.xlane.f32.xlu0 %v1279_v23  ;;  %v1299_v42 = vsel %vm1298_vm12, %v2983_v50, -inf  ;;  %vm1398_vm4 = vcmask 999320   ;;  %v1417_v43 = vsel %vm1416_vm0, %v2983_v50, -inf  ;;  %vm3525_vm13 = vcmask 80920  }
 0x2af   : > { %v1399_v44 = vsel %vm1398_vm4, %v2983_v50, -inf  ;;  %v1403_v45 = vsel %vm3525_vm13, %v2989_v53, -inf  ;;  %v1371_v46 = vsel %vm1370_vm3, %v2983_v50, -inf  ;;  %v1435_v47 = vsel %vm1434_vm9, %v2983_v50, -inf }
 0x2b0   : > { %vm3526_vm2 = vcmask 130120   ;;  %vm3527_vm0 = vcmask 105520   ;;  %v1486_v22 = vsel %vm1314_vm7, %v2989_v53, -inf  ;;  %v1473_v24 = vsel %vm1283_vm14, %v2989_v53, -inf }
 0x2b1   : > { %v1439_v48 = vsel %vm3526_vm2, %v2989_v53, -inf  ;;  %v1421_v49 = vsel %vm3527_vm0, %v2989_v53, -inf  ;;  %v1503_v50 = vsel %vm1350_vm6, %v2989_v53, -inf  ;;  %v1490_v51 = vsel %vm1319_vm5, %v2989_v53, -inf }
 0x2b2   : > { %1316 = vmax.xlane.f32.xlu1 %v1315_v25  ;;  %1347 = vmax.xlane.f32.xlu0 %v1346_v26  ;;  %v1511_v7 = vsel %vm1360_vm15, %v2989_v53, -inf  ;;  %v1541_v52 = vsel %vm1298_vm12, %v2989_v53, -inf  ;;  %v1545_v54 = vsel %vm1398_vm4, %v2989_v53, -inf  ;;  %vm3528_vm3 = vcmask 7168  }
 0x2b3   : > { %vm1303_vm9 = vcmask 15368   ;;  %vm1339_vm7 = vcmask 23568   ;;  %vm1375_vm14 = vcmask 31768   ;;  %vm1393_vm6 = vcmask 39968  }
 0x2b4   : > { %vm1411_vm5 = vcmask 48168   ;;  %vm1429_vm1 = vcmask 56368   ;;  %vm1447_vm11 = vcmask 64568   ;;  %vm1464_vm15 = vcmask 72768  }
 0x2b5   : > { %vm1481_vm8 = vcmask 80968   ;;  %vm1498_vm10 = vcmask 89168   ;;  %vm1515_vm12 = vcmask 97368   ;;  %vm1532_vm4 = vcmask 105568  }
 0x2b6   : > { %1290 = vmax.xlane.f32.xlu1 %v1289_v27  ;;  %1255 = vmax.xlane.f32.xlu0 %v1254_v28  ;;  %vm1549_vm13 = vcmask 113768   ;;  %vm1566_vm2 = vcmask 121968   ;;  %vm1583_vm0 = vcmask 130168  }
 0x2ba   : > { %1260 = vmax.xlane.f32.xlu1 %v1259_v29  ;;  %1285 = vmax.xlane.f32.xlu0 %v1284_v30 }
 0x2be   : > { %1326 = vmax.xlane.f32.xlu1 %v1325_v31  ;;  %1352 = vmax.xlane.f32.xlu0 %v1351_v32 }
 0x2c2   : > { %1357 = vmax.xlane.f32.xlu1 %v1356_v33  ;;  %1321 = vmax.xlane.f32.xlu0 %v1320_v34 }
 0x2c6   : > { %1265 = vmax.xlane.f32.xlu1 %v1264_v35  ;;  %1295 = vmax.xlane.f32.xlu0 %v1294_v36 }
 0x2ca   : > { %1382 = vmax.xlane.f32.xlu1 %v1381_v37  ;;  %1362 = vmax.xlane.f32.xlu0 %v1361_v38 }
 0x2ce   : > { %1367 = vmax.xlane.f32.xlu1 %v1366_v39  ;;  %1331 = vmax.xlane.f32.xlu0 %v1330_v40 }
 0x2d2   : > { %1336 = vmax.xlane.f32.xlu1 %v1335_v41  ;;  %1300 = vmax.xlane.f32.xlu0 %v1299_v42 }
 0x2d6   : > { %1418 = vmax.xlane.f32.xlu1 %v1417_v43  ;;  %1400 = vmax.xlane.f32.xlu0 %v1399_v44 }
 0x2da   : > { %1404 = vmax.xlane.f32.xlu1 %v1403_v45  ;;  %1372 = vmax.xlane.f32.xlu0 %v1371_v46 }
 0x2de   : > { %1390 = vmax.xlane.f32.xlu1 %v3001_v58  ;;  %1436 = vmax.xlane.f32.xlu0 %v1435_v47 }
 0x2e2   : > { %1453 = vmax.xlane.f32.xlu1 %v3005_v59  ;;  %1386 = vmax.xlane.f32.xlu0 %v3009_v60 }
 0x2e6   : > { %1440 = vmax.xlane.f32.xlu1 %v1439_v48  ;;  %1422 = vmax.xlane.f32.xlu0 %v1421_v49 }
 0x2ea   : > { %1426 = vmax.xlane.f32.xlu1 %v3013_v61  ;;  %1408 = vmax.xlane.f32.xlu0 %v3017_v62 }
 0x2ee   : > { %1487 = vmax.xlane.f32.xlu1 %v1486_v22  ;;  %1470 = vmax.xlane.f32.xlu0 %v3021_v63 }
 0x2f2   : > { %1474 = vmax.xlane.f32.xlu1 %v1473_v24  ;;  %1457 = vmax.xlane.f32.xlu0 %v3025_v0 }
 0x2f6   : > { %1461 = vmax.xlane.f32.xlu1 %v3029_v2  ;;  %1444 = vmax.xlane.f32.xlu0 %v3033_v3 }
 0x2fa   : > { %1478 = vmax.xlane.f32.xlu1 %v3037_v4  ;;  %1504 = vmax.xlane.f32.xlu0 %v1503_v50 }
 0x2fe   : > { %1495 = vmax.xlane.f32.xlu1 %v3045_v8  ;;  %1491 = vmax.xlane.f32.xlu0 %v1490_v51 }
 0x302   : > { %1512 = vmax.xlane.f32.xlu1 %v1511_v7  ;;  %1508 = vmax.xlane.f32.xlu0 %v3049_v9 }
 0x306   : > { %1525 = vmax.xlane.f32.xlu1 %v3053_v10  ;;  %1521 = vmax.xlane.f32.xlu0 %v3057_v11 }
 0x30a   : > { %1542 = vmax.xlane.f32.xlu1 %v1541_v52  ;;  %1538 = vmax.xlane.f32.xlu0 %v3061_v12 }
 0x30e   : > { %1529 = vmax.xlane.f32.xlu1 %v3065_v13  ;;  %1555 = vmax.xlane.f32.xlu0 %v3069_v14 }
 0x312   : > { %1546 = vmax.xlane.f32.xlu1 %v1545_v54  ;;  %1572 = vmax.xlane.f32.xlu0 %v3073_v15 }
 0x316   : > { %1563 = vmax.xlane.f32.xlu1 %v3077_v16  ;;  %1559 = vmax.xlane.f32.xlu0 %v3081_v18 }
 0x31a   : > { %1576 = vmax.xlane.f32.xlu0 %v3085_v19 }
 0x31e   : > { %1580 = vmax.xlane.f32.xlu0 %v3089_v20 }
 0x32b   : > { %v1241_v55 = vpop.xlane.xlu1 %1240  ;;  %v1237_v56 = vpop.xlane.xlu0 %1236 }
 0x32c   : > { %v1242_v8 = vmax.f32 %v1237_v56, %v1241_v55 }
 0x32f   : > { %v1246_v57 = vpop.xlane.xlu1 %1245  ;;  %v1272_v58 = vpop.xlane.xlu0 %1271 }
 0x330   : > { %v1247_v11 = vmax.f32 %v1242_v8, %v1246_v57 }
 0x333   : > { %v1312_v59 = vpop.xlane.xlu1 %1311  ;;  %v1276_v60 = vpop.xlane.xlu0 %1275 }
 0x334   : > { %v1277_v20 = vmax.f32 %v1272_v58, %v1276_v60 }
 0x337   : > { %v1344_v61 = vpop.xlane.xlu1 %1343  ;;  %v1308_v62 = vpop.xlane.xlu0 %1307 }
 0x338   : > { %v1313_v21 = vmax.f32 %v1308_v62, %v1312_v59 }
 0x33b   : > { %v1251_v53 = vpop.xlane.xlu1 %1250  ;;  %v1281_v63 = vpop.xlane.xlu0 %1280 }
 0x33c   : > { %v1252_v12 = vmax.f32 %v1247_v11, %v1251_v53  ;;  %v1282_v25 = vmax.f32 %v1277_v20, %v1281_v63 }
 0x33f   : > { %v1317_v0 = vpop.xlane.xlu1 %1316  ;;  %v1348_v2 = vpop.xlane.xlu0 %1347 }
 0x340   : > { %v1318_v26 = vmax.f32 %v1313_v21, %v1317_v0  ;;  %v1349_v35 = vmax.f32 %v1344_v61, %v1348_v2 }
 0x343   : > { %v1291_v3 = vpop.xlane.xlu1 %1290  ;;  %v1256_v4 = vpop.xlane.xlu0 %1255 }
 0x344   : > { %v1257_v15 = vmax.f32 %v1252_v12, %v1256_v4  ;;  %v1377_v22 = vmax.f32 %v1251_v53, %v1256_v4 }
 0x347   : > { %v1261_v6 = vpop.xlane.xlu1 %1260  ;;  %v1286_v5 = vpop.xlane.xlu0 %1285 }
 0x348   : > { %v1262_v16 = vmax.f32 %v1257_v15, %v1261_v6  ;;  %v1287_v29 = vmax.f32 %v1282_v25, %v1286_v5  ;;  %v1378_v50 = vmax.f32 %v1377_v22, %v1261_v6  ;;  %v1395_v54 = vmax.f32 %v1286_v5, %v1291_v3 }
 0x34a   : > { %v1292_v33 = vmax.f32 %v1287_v29, %v1291_v3 }
 0x34b   : > { %v1327_v9 = vpop.xlane.xlu1 %1326  ;;  %v1353_v10 = vpop.xlane.xlu0 %1352 }
 0x34c   : > { %v1354_v40 = vmax.f32 %v1349_v35, %v1353_v10 }
 0x34f   : > { %v3181_v13 = vpop.xlane.xlu1 %1357  ;;  %v1322_v14 = vpop.xlane.xlu0 %1321 }
 0x350   : > { %v1323_v30 = vmax.f32 %v1318_v26, %v1322_v14  ;;  %v1359_v43 = vmax.f32 %v1354_v40, %v3181_v13  ;;  %v1413_v55 = vmax.f32 %v1322_v14, %v1327_v9 }
 0x352   : > { %v1328_v34 = vmax.f32 %v1323_v30, %v1327_v9 }
 0x353   : > { %v3183_v18 = vpop.xlane.xlu1 %1265  ;;  %v1296_v19 = vpop.xlane.xlu0 %1295 }
 0x354   : > { %v1267_v23 = vmax.f32 %v1262_v16, %v3183_v18  ;;  %v1297_v36 = vmax.f32 %v1292_v33, %v1296_v19  ;;  %v1379_v52 = vmax.f32 %v1378_v50, %v3183_v18  ;;  %v1396_v59 = vmax.f32 %v1395_v54, %v1296_v19 }
 0x356   : > { %1268 = vst.msk [vmem:[#allocation4] sm:$0xff] %vm3528_vm3, %v1267_v23 }
 0x357   : > { %v1383_v27 = vpop.xlane.xlu1 %1382  ;;  %v3187_v28 = vpop.xlane.xlu0 %1362 }
 0x358   : > { %v1364_v46 = vmax.f32 %v1359_v43, %v3187_v28  ;;  %v1384_v56 = vmax.f32 %v1379_v52, %v1383_v27  ;;  %v1449_v3 = vmax.f32 %v3183_v18, %v1383_v27  ;;  %v1431_v15 = vmax.f32 %v3181_v13, %v3187_v28 }
 0x35b   : > { %v3189_v31 = vpop.xlane.xlu1 %1367  ;;  %v1332_v32 = vpop.xlane.xlu0 %1331 }
 0x35c   : > { %v1333_v37 = vmax.f32 %v1328_v34, %v1332_v32  ;;  %v1369_v47 = vmax.f32 %v1364_v46, %v3189_v31  ;;  %v1414_v60 = vmax.f32 %v1413_v55, %v1332_v32  ;;  %v1432_v19 = vmax.f32 %v1431_v15, %v3189_v31 }
 0x35f   : > { %v3191_v38 = vpop.xlane.xlu1 %1336  ;;  %v1301_v39 = vpop.xlane.xlu0 %1300 }
 0x360   : > { %v1338_v41 = vmax.f32 %v1333_v37, %v3191_v38  ;;  %v1302_v42 = vmax.f32 %v1297_v36, %v1301_v39  ;;  %v1415_v62 = vmax.f32 %v1414_v60, %v3191_v38  ;;  %v1397_v53 = vmax.f32 %v1396_v59, %v1301_v39 }
 0x362   : > { %1304 = vst.msk [vmem:[#allocation4] sm:$0xff] %vm1303_vm9, %v1302_v42  ;;  %vm3529_vm9 = vcmask 130048  }
 0x363   : > { %v3195_v44 = vpop.xlane.xlu1 %1418  ;;  %v1401_v45 = vpop.xlane.xlu0 %1400  ;;  %1340 = vst.msk [vmem:[#allocation4] sm:$0xff] %vm1339_vm7, %v1338_v41 }
 0x364   : > { %v1420_v4 = vmax.f32 %v1415_v62, %v3195_v44  ;;  %v1402_v6 = vmax.f32 %v1397_v53, %v1401_v45  ;;  %v1466_v21 = vmax.f32 %v1301_v39, %v1401_v45  ;;  %v1483_v31 = vmax.f32 %v3191_v38, %v3195_v44 }
 0x367   : > { %v1405_v48 = vpop.xlane.xlu1 %1404  ;;  %v3199_v49 = vpop.xlane.xlu0 %1372 }
 0x368   : > { %v1374_v24 = vmax.f32 %v1369_v47, %v3199_v49  ;;  %v1406_v5 = vmax.f32 %v1402_v6, %v1405_v48  ;;  %v1433_v23 = vmax.f32 %v1432_v19, %v3199_v49  ;;  %v1467_v27 = vmax.f32 %v1466_v21, %v1405_v48 }
 0x36a   : > { %1376 = vst.msk [vmem:[#allocation4] sm:$0xff] %vm1375_vm14, %v1374_v24  ;;  %vm3506_vm14 = vcmask 64512  }
 0x36b   : > { %v3202_v51 = vpop.xlane.xlu1 %1390  ;;  %v3204_v7 = vpop.xlane.xlu0 %1436 }
 0x36c   : > { %v1438_v29 = vmax.f32 %v1433_v23, %v3204_v7  ;;  %v1500_v43 = vmax.f32 %v3199_v49, %v3204_v7 }
 0x36f   : > { %v3207_v57 = vpop.xlane.xlu1 %1453  ;;  %v1387_v58 = vpop.xlane.xlu0 %1386 }
 0x370   : > { %v1388_v61 = vmax.f32 %v1384_v56, %v1387_v58  ;;  %v1450_v11 = vmax.f32 %v1449_v3, %v1387_v58  ;;  %v1517_v56 = vmax.f32 %v3202_v51, %v3207_v57 }
 0x372   : > { %v1392_v63 = vmax.f32 %v1388_v61, %v3202_v51  ;;  %v1451_v20 = vmax.f32 %v1450_v11, %v3202_v51 }
 0x373   : > { %v1441_v0 = vpop.xlane.xlu1 %1440  ;;  %v1423_v2 = vpop.xlane.xlu0 %1422 }
 0x374   : > { %1394 = vst.msk [vmem:[#allocation4] sm:$0xff] %vm1393_vm6, %v1392_v63  ;;  %v1424_v8 = vmax.f32 %v1420_v4, %v1423_v2  ;;  %v1455_v30 = vmax.f32 %v1451_v20, %v3207_v57  ;;  %v1442_v13 = vmax.f32 %v1438_v29, %v1441_v0  ;;  %v1484_v39 = vmax.f32 %v1483_v31, %v1423_v2 }
 0x375   : > { %v1501_v47 = vmax.f32 %v1500_v43, %v1441_v0  ;;  %vm2711_vm6 = vmmov 0  }
 0x377   : > { %v3213_v9 = vpop.xlane.xlu1 %1426  ;;  %v3215_v10 = vpop.xlane.xlu0 %1408 }
 0x378   : > { %v1428_v12 = vmax.f32 %v1424_v8, %v3213_v9  ;;  %v1410_v14 = vmax.f32 %v1406_v5, %v3215_v10  ;;  %v1468_v28 = vmax.f32 %v1467_v27, %v3215_v10  ;;  %v1485_v45 = vmax.f32 %v1484_v39, %v3213_v9  ;;  %v1677_v39 = vld [vmem:[%s3487_s8] sm:$0xff] }
 0x37a   : > { %1412 = vst.msk [vmem:[#allocation4] sm:$0xff] %vm1411_vm5, %v1410_v14  ;;  %vm3509_vm5 = vcmask 130080  }
 0x37b   : > { %v3221_v16 = vpop.xlane.xlu1 %1487  ;;  %v1471_v18 = vpop.xlane.xlu0 %1470  ;;  %1430 = vst.msk [vmem:[#allocation4] sm:$0xff] %vm1429_vm1, %v1428_v12  ;;  %vm1618_vm1 = vcmask 31744  }
 0x37c   : > { %v1472_v35 = vmax.f32 %v1468_v28, %v1471_v18  ;;  %v1489_v48 = vmax.f32 %v1485_v45, %v3221_v16  ;;  %v1534_v61 = vmax.f32 %v3215_v10, %v1471_v18  ;;  %v1551_v6 = vmax.f32 %v3213_v9, %v3221_v16 }
 0x37d   : > { %v1590_v28 = vand.u32 3, %v2831_v17  ;;  %v2709_v17 = vmov 0.0|0.0  }
 0x37e   : > { %2554 = vmatprep.subr.bf16.mxu0 %v2709_v17 }
 0x37f   : > { %v1475_v25 = vpop.xlane.xlu1 %1474  ;;  %v1458_v26 = vpop.xlane.xlu0 %1457 }
 0x380   : > { %v1459_v32 = vmax.f32 %v1455_v30, %v1458_v26  ;;  %v1476_v40 = vmax.f32 %v1472_v35, %v1475_v25  ;;  %v1518_v7 = vmax.f32 %v1517_v56, %v1458_v26  ;;  %v1535_v53 = vmax.f32 %v1534_v61, %v1475_v25 }
 0x383   : > { %v1462_v33 = vpop.xlane.xlu1 %1461  ;;  %v1445_v34 = vpop.xlane.xlu0 %1444 }
 0x384   : > { %v1463_v36 = vmax.f32 %v1459_v32, %v1462_v33  ;;  %v1446_v37 = vmax.f32 %v1442_v13, %v1445_v34  ;;  %v1502_v22 = vmax.f32 %v1501_v47, %v1445_v34  ;;  %v1519_v62 = vmax.f32 %v1518_v7, %v1462_v33 }
 0x385   : > { %v3242_v33 = vadd.s32 1, %v1590_v28 }
 0x386   : > { %1448 = vst.msk [vmem:[#allocation4] sm:$0xff] %vm1447_vm11, %v1446_v37  ;;  %v612_v37 = vld [vmem:[%s3484_s5] sm:$0xff]  ;;  %vm1609_vm11 = vcmask 130088  }
 0x387   : > { %v1479_v41 = vpop.xlane.xlu1 %1478  ;;  %1465 = vst.msk [vmem:[#allocation4] sm:$0xff] %vm1464_vm15, %v1463_v36  ;;  %v1505_v42 = vpop.xlane.xlu0 %1504  ;;  %vm1600_vm3 = vcmp.lt.s32.totalorder %v3242_v33, 4  ;;  %2365 = vmatmul.mubr.msk.f32.vlgmr.msra.gmra.mrb[2].mxu0 %vm3506_vm14, %v612_v37  ;;  %vm3530_vm15 = vcmask 39936   ;;  %vm1665_vm14 = vcmask 130136   ;;  %v613_v33 = vld [vmem:[%s3485_s6] sm:$0xff] }
 0x388   : > { %v1480_v46 = vmax.f32 %v1476_v40, %v1479_v41  ;;  %v1506_v50 = vmax.f32 %v1502_v22, %v1505_v42  ;;  %v1536_v4 = vmax.f32 %v1535_v53, %v1479_v41  ;;  %v1568_v15 = vmax.f32 %v1445_v34, %v1505_v42  ;;  %2449 = vmatprep.mubr.msk.f32.mxu0 %vm2711_vm6, %v2684_v1 }
 0x389   : > { %v3244_v34 = vadd.s32 4294967295, %v1590_v28 }
 0x38a   : > { %1482 = vst.msk [vmem:[#allocation4] sm:$0xff] %vm1481_vm8, %v1480_v46  ;;  %vm1631_vm8 = vcmask 130072  }
 0x38b   : > { %v1496_v38 = vpop.xlane.xlu1 %1495  ;;  %v1492_v44 = vpop.xlane.xlu0 %1491  ;;  %vm3508_vm7 = vcmp.ge.s32.totalorder %v3244_v34, 0 }
 0x38c   : > { %v1493_v24 = vmax.f32 %v1489_v48, %v1492_v44  ;;  %v1552_v8 = vmax.f32 %v1551_v6, %v1492_v44  ;;  %v1814_v6 = vld [vmem:[%s3489_s10] sm:$0xff] }
 0x38e   : > { %v1497_v52 = vmax.f32 %v1493_v24, %v1496_v38  ;;  %v1553_v18 = vmax.f32 %v1552_v8, %v1496_v38 }
 0x38f   : > { %v1513_v54 = vpop.xlane.xlu1 %1512  ;;  %v1509_v55 = vpop.xlane.xlu0 %1508 }
 0x390   : > { %1499 = vst.msk [vmem:[#allocation4] sm:$0xff] %vm1498_vm10, %v1497_v52  ;;  %v1510_v49 = vmax.f32 %v1506_v50, %v1509_v55  ;;  %v1569_v20 = vmax.f32 %v1568_v15, %v1509_v55  ;;  %vm3531_vm10 = vcmask 121856  }
 0x392   : > { %v1514_v58 = vmax.f32 %v1510_v49, %v1513_v54  ;;  %v1570_v25 = vmax.f32 %v1569_v20, %v1513_v54 }
 0x393   : > { %v1526_v59 = vpop.xlane.xlu1 %1525  ;;  %v1522_v60 = vpop.xlane.xlu0 %1521 }
 0x394   : > { %1516 = vst.msk [vmem:[#allocation4] sm:$0xff] %vm1515_vm12, %v1514_v58  ;;  %v1523_v63 = vmax.f32 %v1519_v62, %v1522_v60  ;;  %vm1656_vm12 = vcmask 97280   ;;  %v1667_v60 = vld [vmem:[%s3486_s7] sm:$0xff] }
 0x396   : > { %v1527_v57 = vmax.f32 %v1523_v63, %v1526_v59 }
 0x397   : > { %v1543_v0 = vpop.xlane.xlu1 %1542  ;;  %v1539_v2 = vpop.xlane.xlu0 %1538 }
 0x398   : > { %v1540_v51 = vmax.f32 %v1536_v4, %v1539_v2 }
 0x39a   : > { %v1544_v12 = vmax.f32 %v1540_v51, %v1543_v0 }
 0x39b   : > { %v1530_v3 = vpop.xlane.xlu1 %1529  ;;  %v1556_v5 = vpop.xlane.xlu0 %1555 }
 0x39c   : > { %v1531_v11 = vmax.f32 %v1527_v57, %v1530_v3  ;;  %v1557_v21 = vmax.f32 %v1553_v18, %v1556_v5 }
 0x39e   : > { %1533 = vst.msk [vmem:[#allocation4] sm:$0xff] %vm1532_vm4, %v1531_v11  ;;  %vm3532_vm4 = vcmask 23552  }
 0x39f   : > { %v1547_v10 = vpop.xlane.xlu1 %1546  ;;  %v1573_v14 = vpop.xlane.xlu0 %1572 }
 0x3a0   : > { %v1548_v19 = vmax.f32 %v1544_v12, %v1547_v10  ;;  %v1574_v29 = vmax.f32 %v1570_v25, %v1573_v14 }
 0x3a2   : > { %1550 = vst.msk [vmem:[#allocation4] sm:$0xff] %vm1549_vm13, %v1548_v19  ;;  %vm3507_vm13 = vcmask 130144  }
 0x3a3   : > { %v1560_v23 = vpop.xlane.xlu0 %1559  ;;  %v1564_v16 = vpop.xlane.xlu1 %1563 }
 0x3a4   : > { %v1561_v9 = vmax.f32 %v1557_v21, %v1560_v23 }
 0x3a6   : > { %v1565_v26 = vmax.f32 %v1561_v9, %v1564_v16 }
 0x3a7   : > { %v1577_v27 = vpop.xlane.xlu0 %1576 }
 0x3a8   : > { %1567 = vst.msk [vmem:[#allocation4] sm:$0xff] %vm1566_vm2, %v1565_v26  ;;  %v1578_v30 = vmax.f32 %v1574_v29, %v1577_v27  ;;  %vm1637_vm2 = vcmask 130056  }
 0x3ab   : > { %v1581_v13 = vpop.xlane.xlu0 %1580 }
 0x3ac   : > { %v1582_v32 = vmax.f32 %v1578_v30, %v1581_v13  ;;  %v1804_v30 = vld [vmem:[%s3488_s9] sm:$0xff] }
 0x3ae   : > { %1584 = vst.msk [vmem:[#allocation4] sm:$0xff] %vm1583_vm0, %v1582_v32 }
 0x3b5   : > { %v1585_v31 = vld [vmem:[#allocation4] sm:$0xff] }
 0x3b6   : > { %1613 = vrot.lane.b32.xlu0 %v1585_v31, %s2708_s19  ;;  %1640 = vst.msk [vmem:[#allocation3 + $0x20] sm:$0xff] %vm3529_vm9, %v1585_v31  ;;  %v1604_v35 = vsel %vm1600_vm3, %v1585_v31, 0.0  ;;  %v1626_v36 = vsel %vm3508_vm7, %v1585_v31, 0.0  ;;  %vm3533_vm9 = vcmask 7168  }
 0x3b7   : > { %1606 = vrot.lane.b32.xlu1 %v1604_v35, %s2704_s27 }
 0x3ba   : > { %1641 = vrot.lane.b32.xlu0 %v1626_v36, %s2692_s26 }
 0x3bb   : > { %1628 = vrot.lane.b32.xlu1 %v1626_v36, %s2696_s0 }
 0x3bd   : > { %v1672_v55 = vld [vmem:[#allocation3 + $0x20] sm:$0xff] }
 0x3be   : > { %1653 = vrot.lane.b32.xlu0 %v1585_v31, %s2710_s25 }
 0x3bf   : > { %1634 = vrot.lane.b32.xlu1 %v1604_v35, %s2691_s24 }
 0x3c2   : > { %1680 = vperm.xlu0 %2634, %v1677_v39   ;;  %v1950_v39 = vld [vmem:[%s3491_s12] sm:$0xff] }
 0x3c3   : > { %1646 = vrot.lane.b32.xlu1 %v1604_v35, %s2698_s17 }
 0x3c7   : > { %1660 = vrot.lane.b32.xlu1 %v1626_v36, %s2705_s28 }
 0x428   : > { %v1614_v40 = vpop.permute.xlu0 %1613 }
 0x429   : > { %1617 = vst.msk [vmem:[#allocation3 + $0x8] sm:$0xff] %vm3509_vm5, %v1614_v40  ;;  %v1607_v41 = vpop.permute.xlu1 %1606  ;;  %v2111_v40 = vld [vmem:[%s3494_s15] sm:$0xff] }
 0x42a   : > { %1619 = vst.msk [vmem:[#allocation3 + $0x8] sm:$0xff] %vm1618_vm1, %v2684_v1 }
 0x42b   : > { %1610 = vst.msk [vmem:[#allocation3] sm:$0xff] %vm1609_vm11, %v1607_v41  ;;  %v2114_v41 = vld [vmem:[%s3494_s15 + $0x18] sm:$0xff] }
 0x42c   : > { %1611 = vst.msk [vmem:[#allocation3] sm:$0xff] %vm3530_vm15, %v2684_v1  ;;  %v1642_v42 = vpop.permute.xlu0 %1641  ;;  %vm1649_vm15 = vcmask 105472  }
 0x42d   : > { %1644 = vst.msk [vmem:[#allocation3 + $0x28] sm:$0xff] %vm3531_vm10, %v1642_v42  ;;  %v1629_v43 = vpop.permute.xlu1 %1628  ;;  %vm1651_vm10 = vcmask 130152   ;;  %v2113_v42 = vld [vmem:[%s3494_s15 + $0x10] sm:$0xff] }
 0x42e   : > { %1645 = vst.msk [vmem:[#allocation3 + $0x28] sm:$0xff] %vm1583_vm0, %v2684_v1 }
 0x42f   : > { %1632 = vst.msk [vmem:[#allocation3 + $0x10] sm:$0xff] %vm1631_vm8, %v1629_v43 }
 0x430   : > { %1633 = vst.msk [vmem:[#allocation3 + $0x10] sm:$0xff] %vm3532_vm4, %v2684_v1  ;;  %v1654_v45 = vpop.permute.xlu0 %1653  ;;  %vm1663_vm4 = vcmask 89088  }
 0x431   : > { %1657 = vst.msk [vmem:[#allocation3 + $0x38] sm:$0xff] %vm1656_vm12, %v1654_v45  ;;  %v1635_v46 = vpop.permute.xlu1 %1634  ;;  %v1669_v47 = vld [vmem:[#allocation3 + $0x8] sm:$0xff] }
 0x432   : > { %1659 = vst.msk [vmem:[#allocation3 + $0x38] sm:$0xff] %vm3507_vm13, %v2684_v1  ;;  %vm3534_vm13 = vcmask 130048  }
 0x433   : > { %1638 = vst.msk [vmem:[#allocation3 + $0x18] sm:$0xff] %vm1637_vm2, %v1635_v46  ;;  %v1668_v48 = vld [vmem:[#allocation3] sm:$0xff] }
 0x434   : > { %1639 = vst.msk [vmem:[#allocation3 + $0x18] sm:$0xff] %vm3533_vm9, %v2684_v1  ;;  %v2555_v38 = vpack.c.bf16 %v1669_v47, %v1668_v48  ;;  %vm1683_vm9 = vcmask 588800  }
 0x435   : > { %v1647_v44 = vpop.permute.xlu1 %1646  ;;  %v1673_v54 = vld [vmem:[#allocation3 + $0x28] sm:$0xff] }
 0x436   : > { %2556 = vmatpush3.bf16.msra.mxu0 %v2555_v38  ;;  %1650 = vst.msk [vmem:[#allocation3 + $0x30] sm:$0xff] %vm1649_vm15, %v1647_v44  ;;  %v2561_v7 = vpack.c.bf16 %v1673_v54, %v1672_v55 }
 0x437   : > { %2557 = vmatprep.subr.bf16.mxu0 %v2709_v17  ;;  %1652 = vst.msk [vmem:[#allocation3 + $0x30] sm:$0xff] %vm1651_vm10, %v2684_v1  ;;  %v1670_v22 = vld [vmem:[#allocation3 + $0x10] sm:$0xff] }
 0x439   : > { %v1661_v24 = vpop.permute.xlu1 %1660  ;;  %v1675_v49 = vld [vmem:[#allocation3 + $0x38] sm:$0xff] }
 0x43a   : > { %1664 = vst.msk [vmem:[#allocation3 + $0x40] sm:$0xff] %vm1663_vm4, %v1661_v24 }
 0x43b   : > { %v1671_v50 = vld [vmem:[#allocation3 + $0x18] sm:$0xff]  ;;  %1666 = vst.msk [vmem:[#allocation3 + $0x40] sm:$0xff] %vm1665_vm14, %v2684_v1 }
 0x43c   : > { %v2558_v52 = vpack.c.bf16 %v1671_v50, %v1670_v22 }
 0x43e   : > { %2559 = vmatpush3.bf16.msra.mxu0 %v2558_v52  ;;  %v1674_v56 = vld [vmem:[#allocation3 + $0x30] sm:$0xff] }
 0x43f   : > { %2560 = vmatprep.subr.bf16.mxu0 %v2709_v17  ;;  %v2564_v58 = vpack.c.bf16 %v1675_v49, %v1674_v56 }
 0x441   : > { %v1681_v61 = vpop.permute.xlu0 %1680 }
 0x442   : > { %2562 = vmatpush3.bf16.msra.mxu0 %v2561_v7  ;;  %v1676_v59 = vld [vmem:[#allocation3 + $0x40] sm:$0xff] }
 0x443   : > { %2563 = vmatprep.subr.bf16.mxu0 %v2709_v17 }
 0x446   : > { %2565 = vmatpush3.bf16.msra.mxu0 %v2564_v58 }
 0x447   : > { %2447 = vmatprep.subr.mxu0 %v2684_v1 }
 0x44a   : > { %2448 = vmatpush3.msra.mxu0 %v1676_v59 }
 0x44b   : > { %2450 = vmatmul.mubr.msk.f32.vlgmr.msra.gmra.mrb[4].mxu0 %vm1683_vm9, %v1667_v60  ;;  %2566 = vmatprep.subr.bf16.mxu0 %v2709_v17 }
 0x44c   : > { %2470 = vmatprep.mubr.msk.f32.mxu0 %vm2711_vm6, %v2684_v1 }
 0x51e   : > { %v1753_v62 = vpop.f32.mrb[4].mxu0 }
 0x51f   : > { %v1754_v53 = vadd.f32 %v1753_v62, %v1681_v61  ;;  %v2451_v63 = vpop.f32.mrb[5].mxu0  ;;  %v2030_v62 = vld [vmem:[%s3492_s13 + $0x8] sm:$0xff] }
 0x521   : > { %v1757_v0 = vmax.f32 %v1754_v53, 0.0  ;;  %v2032_v53 = vld [vmem:[%s3492_s13 + $0x18] sm:$0xff] }
 0x523   : > { %1783 = vst.msk [vmem:[#allocation3 + $0x20] sm:$0xff] %vm3534_vm13, %v1757_v0  ;;  %1766 = vrot.lane.b32.xlu0 %v1757_v0, %s2708_s19  ;;  %v1758_v2 = vsel %vm1600_vm3, %v1757_v0, 0.0  ;;  %v1771_v4 = vsel %vm3508_vm7, %v1757_v0, 0.0  ;;  %vm3535_vm13 = vcmask 39936   ;;  %vm3536_vm7 = vcmask 7168  }
 0x524   : > { %1760 = vrot.lane.b32.xlu1 %v1758_v2, %s2704_s27 }
 0x527   : > { %1778 = vrot.lane.b32.xlu0 %v1758_v2, %s2691_s24 }
 0x528   : > { %1773 = vrot.lane.b32.xlu1 %v1771_v4, %s2696_s0 }
 0x52a   : > { %v1809_v23 = vld [vmem:[#allocation3 + $0x20] sm:$0xff] }
 0x52b   : > { %1789 = vrot.lane.b32.xlu0 %v1758_v2, %s2698_s17  ;;  %v1940_v2 = vld [vmem:[%s3490_s11] sm:$0xff] }
 0x52c   : > { %1784 = vrot.lane.b32.xlu1 %v1771_v4, %s2692_s26 }
 0x52f   : > { %1799 = vrot.lane.b32.xlu0 %v1771_v4, %s2705_s28  ;;  %v2031_v4 = vld [vmem:[%s3492_s13 + $0x10] sm:$0xff] }
 0x530   : > { %1794 = vrot.lane.b32.xlu1 %v1757_v0, %s2710_s25  ;;  %v2590_v0 = vpack.c.bf16 %v2032_v53, %v2030_v62  ;;  %v2668_v53 = vld [vmem:[%s2817_s29] sm:$0xff] }
 0x534   : > { %1817 = vperm.xlu1 %2635, %v1814_v6  }
 0x595   : > { %v1767_v51 = vpop.permute.xlu0 %1766 }
 0x596   : > { %1769 = vst.msk [vmem:[#allocation3 + $0x8] sm:$0xff] %vm3509_vm5, %v1767_v51  ;;  %v1761_v57 = vpop.permute.xlu1 %1760  ;;  %vm3537_vm5 = vcmask 23552  }
 0x597   : > { %1770 = vst.msk [vmem:[#allocation3 + $0x8] sm:$0xff] %vm1618_vm1, %v2684_v1 }
 0x598   : > { %1763 = vst.msk [vmem:[#allocation3] sm:$0xff] %vm1609_vm11, %v1761_v57 }
 0x599   : > { %1764 = vst.msk [vmem:[#allocation3] sm:$0xff] %vm3535_vm13, %v2684_v1  ;;  %v1779_v3 = vpop.permute.xlu0 %1778  ;;  %vm3538_vm13 = vcmask 121856  }
 0x59a   : > { %1781 = vst.msk [vmem:[#allocation3 + $0x18] sm:$0xff] %vm1637_vm2, %v1779_v3  ;;  %v1774_v5 = vpop.permute.xlu1 %1773 }
 0x59b   : > { %1782 = vst.msk [vmem:[#allocation3 + $0x18] sm:$0xff] %vm3536_vm7, %v2684_v1  ;;  %vm3539_vm7 = vcmask 130144  }
 0x59c   : > { %1776 = vst.msk [vmem:[#allocation3 + $0x10] sm:$0xff] %vm1631_vm8, %v1774_v5 }
 0x59d   : > { %1777 = vst.msk [vmem:[#allocation3 + $0x10] sm:$0xff] %vm3537_vm5, %v2684_v1  ;;  %v1790_v8 = vpop.permute.xlu0 %1789  ;;  %vm3540_vm5 = vcmask 130048  }
 0x59e   : > { %1792 = vst.msk [vmem:[#allocation3 + $0x30] sm:$0xff] %vm1649_vm15, %v1790_v8  ;;  %v1785_v11 = vpop.permute.xlu1 %1784  ;;  %v1806_v12 = vld [vmem:[#allocation3 + $0x8] sm:$0xff] }
 0x59f   : > { %1793 = vst.msk [vmem:[#allocation3 + $0x30] sm:$0xff] %vm1651_vm10, %v2684_v1 }
 0x5a0   : > { %1787 = vst.msk [vmem:[#allocation3 + $0x28] sm:$0xff] %vm3538_vm13, %v1785_v11  ;;  %v1805_v10 = vld [vmem:[#allocation3] sm:$0xff]  ;;  %vm3541_vm13 = vcmp.ge.s32.totalorder %v3244_v34, 0  ;;  %v2112_v34 = vld [vmem:[%s3494_s15 + $0x8] sm:$0xff] }
 0x5a1   : > { %1788 = vst.msk [vmem:[#allocation3 + $0x28] sm:$0xff] %vm1583_vm0, %v2684_v1  ;;  %v2567_v14 = vpack.c.bf16 %v1806_v12, %v1805_v10  ;;  %v1800_v15 = vpop.permute.xlu0 %1799 }
 0x5a2   : > { %1802 = vst.msk [vmem:[#allocation3 + $0x40] sm:$0xff] %vm1663_vm4, %v1800_v15  ;;  %v1795_v18 = vpop.permute.xlu1 %1794  ;;  %v1808_v19 = vld [vmem:[#allocation3 + $0x18] sm:$0xff]  ;;  %v2033_v15 = vld [vmem:[%s3493_s14] sm:$0xff] }
 0x5a3   : > { %2568 = vmatpush3.bf16.msra.mxu0 %v2567_v14  ;;  %1803 = vst.msk [vmem:[#allocation3 + $0x40] sm:$0xff] %vm1665_vm14, %v2684_v1 }
 0x5a4   : > { %1797 = vst.msk [vmem:[#allocation3 + $0x38] sm:$0xff] %vm1656_vm12, %v1795_v18  ;;  %2569 = vmatprep.subr.bf16.mxu0 %v2709_v17  ;;  %v1807_v20 = vld [vmem:[#allocation3 + $0x10] sm:$0xff]  ;;  %v2034_v18 = vld [vmem:[%s3493_s14 + $0x8] sm:$0xff] }
 0x5a5   : > { %1798 = vst.msk [vmem:[#allocation3 + $0x38] sm:$0xff] %vm3539_vm7, %v2684_v1  ;;  %v2570_v21 = vpack.c.bf16 %v1808_v19, %v1807_v20  ;;  %vm3544_vm7 = vcmask 7168   ;;  %v2035_v19 = vld [vmem:[%s3493_s14 + $0x10] sm:$0xff]  ;;  %v2036_v20 = vld [vmem:[%s3493_s14 + $0x18] sm:$0xff] }
 0x5a6   : > { %v1811_v25 = vld [vmem:[#allocation3 + $0x30] sm:$0xff] }
 0x5a7   : > { %2571 = vmatpush3.bf16.msra.mxu0 %v2570_v21 }
 0x5a8   : > { %2572 = vmatprep.subr.bf16.mxu0 %v2709_v17  ;;  %v1810_v9 = vld [vmem:[#allocation3 + $0x28] sm:$0xff] }
 0x5a9   : > { %v2573_v16 = vpack.c.bf16 %v1810_v9, %v1809_v23 }
 0x5aa   : > { %v1813_v29 = vld [vmem:[#allocation3 + $0x40] sm:$0xff] }
 0x5ab   : > { %2574 = vmatpush3.bf16.msra.mxu0 %v2573_v16 }
 0x5ac   : > { %2575 = vmatprep.subr.bf16.mxu0 %v2709_v17  ;;  %v1812_v26 = vld [vmem:[#allocation3 + $0x38] sm:$0xff] }
 0x5ad   : > { %v2576_v27 = vpack.c.bf16 %v1812_v26, %v1811_v25 }
 0x5af   : > { %2577 = vmatpush3.bf16.msra.mxu0 %v2576_v27 }
 0x5b0   : > { %2468 = vmatprep.subr.mxu0 %v2684_v1 }
 0x5b3   : > { %2469 = vmatpush3.msra.mxu0 %v1813_v29  ;;  %v1818_v13 = vpop.permute.xlu1 %1817 }
 0x5b4   : > { %2471 = vmatmul.mubr.msk.f32.vlgmr.msra.gmra.mrb[6].mxu0 %vm1683_vm9, %v1804_v30  ;;  %2578 = vmatprep.subr.bf16.mxu0 %v2709_v17 }
 0x5b5   : > { %2491 = vmatprep.mubr.msk.f32.mxu0 %vm2711_vm6, %v2684_v1  ;;  %vm3543_vm6 = vcmask 39936  }
 0x687   : > { %v1889_v28 = vpop.f32.mrb[6].mxu0 }
 0x688   : > { %v1890_v32 = vadd.f32 %v1889_v28, %v1818_v13  ;;  %v2472_v31 = vpop.f32.mrb[7].mxu0 }
 0x68a   : > { %v1893_v35 = vmax.f32 %v1890_v32, 0.0 }
 0x68c   : > { %1919 = vst.msk [vmem:[#allocation3 + $0x20] sm:$0xff] %vm3540_vm5, %v1893_v35  ;;  %1902 = vrot.lane.b32.xlu1 %v1893_v35, %s2708_s19  ;;  %v1894_v36 = vsel %vm1600_vm3, %v1893_v35, 0.0  ;;  %v1907_v37 = vsel %vm3541_vm13, %v1893_v35, 0.0  ;;  %vm3542_vm3 = vcmask 130080   ;;  %vm3545_vm5 = vcmask 23552  }
 0x68d   : > { %1896 = vrot.lane.b32.xlu0 %v1894_v36, %s2704_s27 }
 0x690   : > { %1914 = vrot.lane.b32.xlu1 %v1894_v36, %s2691_s24 }
 0x691   : > { %1909 = vrot.lane.b32.xlu0 %v1907_v37, %s2696_s0 }
 0x693   : > { %v1945_v49 = vld [vmem:[#allocation3 + $0x20] sm:$0xff] }
 0x694   : > { %1925 = vrot.lane.b32.xlu1 %v1894_v36, %s2698_s17  ;;  %s3553_s17 = sshll.u32 %s3555_s22, 6 }
 0x695   : > { %1920 = vrot.lane.b32.xlu0 %v1907_v37, %s2692_s26 }
 0x698   : > { %1935 = vrot.lane.b32.xlu1 %v1907_v37, %s2705_s28 }
 0x699   : > { %1930 = vrot.lane.b32.xlu0 %v1893_v35, %s2710_s25  ;;  %s3458_s25 = scalar_lea.vmem %s3495_s16, %s3553_s17 }
 0x69c   : > { %616 = vperm.xlu1 %2635, %v613_v33  }
 0x69d   : > { %1953 = vperm.xlu0 %2634, %v1950_v39  }
 0x6a0   : > { %2122 = vperm.xlu1 %2635, %v2112_v34  }
 0x6a1   : > { %2117 = vperm.xlu0 %2634, %v2111_v40  }
 0x6a4   : > { %2132 = vperm.xlu1 %2635, %v2114_v41  }
 0x6a5   : > { %2127 = vperm.xlu0 %2634, %v2113_v42  }
 0x6fe   : > { %v1903_v43 = vpop.permute.xlu1 %1902 }
 0x6ff   : > { %1905 = vst.msk [vmem:[#allocation3 + $0x8] sm:$0xff] %vm3542_vm3, %v1903_v43  ;;  %v1897_v45 = vpop.permute.xlu0 %1896 }
 0x700   : > { %1906 = vst.msk [vmem:[#allocation3 + $0x8] sm:$0xff] %vm1618_vm1, %v2684_v1  ;;  %vm3546_vm1 = vcmask 121856  }
 0x701   : > { %1899 = vst.msk [vmem:[#allocation3] sm:$0xff] %vm1609_vm11, %v1897_v45  ;;  %vm3547_vm11 = vcmask 130144  }
 0x702   : > { %1900 = vst.msk [vmem:[#allocation3] sm:$0xff] %vm3543_vm6, %v2684_v1  ;;  %v1915_v46 = vpop.permute.xlu1 %1914 }
 0x703   : > { %1917 = vst.msk [vmem:[#allocation3 + $0x18] sm:$0xff] %vm1637_vm2, %v1915_v46  ;;  %v1910_v47 = vpop.permute.xlu0 %1909 }
 0x704   : > { %1918 = vst.msk [vmem:[#allocation3 + $0x18] sm:$0xff] %vm3544_vm7, %v2684_v1 }
 0x705   : > { %1912 = vst.msk [vmem:[#allocation3 + $0x10] sm:$0xff] %vm1631_vm8, %v1910_v47 }
 0x706   : > { %1913 = vst.msk [vmem:[#allocation3 + $0x10] sm:$0xff] %vm3545_vm5, %v2684_v1  ;;  %v1926_v48 = vpop.permute.xlu1 %1925 }
 0x707   : > { %1928 = vst.msk [vmem:[#allocation3 + $0x30] sm:$0xff] %vm1649_vm15, %v1926_v48  ;;  %v1921_v38 = vpop.permute.xlu0 %1920  ;;  %v1942_v44 = vld [vmem:[#allocation3 + $0x8] sm:$0xff] }
 0x708   : > { %1929 = vst.msk [vmem:[#allocation3 + $0x30] sm:$0xff] %vm1651_vm10, %v2684_v1 }
 0x709   : > { %1923 = vst.msk [vmem:[#allocation3 + $0x28] sm:$0xff] %vm3546_vm1, %v1921_v38  ;;  %v1941_v22 = vld [vmem:[#allocation3] sm:$0xff] }
 0x70a   : > { %1924 = vst.msk [vmem:[#allocation3 + $0x28] sm:$0xff] %vm1583_vm0, %v2684_v1  ;;  %v2579_v24 = vpack.c.bf16 %v1942_v44, %v1941_v22  ;;  %v1936_v50 = vpop.permute.xlu1 %1935  ;;  %vm3548_vm0 = vcmask 130048  }
 0x70b   : > { %1938 = vst.msk [vmem:[#allocation3 + $0x40] sm:$0xff] %vm1663_vm4, %v1936_v50  ;;  %v1931_v52 = vpop.permute.xlu0 %1930  ;;  %v1944_v54 = vld [vmem:[#allocation3 + $0x18] sm:$0xff] }
 0x70c   : > { %2580 = vmatpush3.bf16.msra.mxu0 %v2579_v24  ;;  %1939 = vst.msk [vmem:[#allocation3 + $0x40] sm:$0xff] %vm1665_vm14, %v2684_v1  ;;  %vm3549_vm14 = vcmask 64512  }
 0x70d   : > { %1933 = vst.msk [vmem:[#allocation3 + $0x38] sm:$0xff] %vm1656_vm12, %v1931_v52  ;;  %2581 = vmatprep.subr.bf16.mxu0 %v2709_v17  ;;  %v1943_v55 = vld [vmem:[#allocation3 + $0x10] sm:$0xff]  ;;  %vm3550_vm8 = vmmov %vm3549_vm14 }
 0x70e   : > { %1934 = vst.msk [vmem:[#allocation3 + $0x38] sm:$0xff] %vm3547_vm11, %v2684_v1  ;;  %v2582_v56 = vpack.c.bf16 %v1944_v54, %v1943_v55  ;;  %vm3551_vm12 = vmmov %vm3550_vm8 }
 0x70f   : > { %v1947_v59 = vld [vmem:[#allocation3 + $0x30] sm:$0xff]  ;;  %vm3552_vm2 = vmmov %vm3550_vm8 }
 0x710   : > { %2583 = vmatpush3.bf16.msra.mxu0 %v2582_v56 }
 0x711   : > { %2584 = vmatprep.subr.bf16.mxu0 %v2709_v17  ;;  %v1946_v7 = vld [vmem:[#allocation3 + $0x28] sm:$0xff] }
 0x712   : > { %v2585_v58 = vpack.c.bf16 %v1946_v7, %v1945_v49 }
 0x713   : > { %v1949_v63 = vld [vmem:[#allocation3 + $0x40] sm:$0xff] }
 0x714   : > { %2586 = vmatpush3.bf16.msra.mxu0 %v2585_v58 }
 0x715   : > { %2587 = vmatprep.subr.bf16.mxu0 %v2709_v17  ;;  %v1948_v60 = vld [vmem:[#allocation3 + $0x38] sm:$0xff]  ;;  %v2029_v17 = vld [vmem:[%s3492_s13] sm:$0xff] }
 0x716   : > { %v2588_v61 = vpack.c.bf16 %v1948_v60, %v1947_v59  ;;  %v2592_v6 = vpack.c.bf16 %v2031_v4, %v2029_v17 }
 0x718   : > { %2589 = vmatpush3.bf16.msra.mxu0 %v2588_v61 }
 0x719   : > { %2489 = vmatprep.subr.mxu0 %v2684_v1 }
 0x71b   : > { %v617_v11 = vpop.permute.xlu1 %616 }
 0x71c   : > { %2490 = vmatpush3.msra.mxu0 %v1949_v63  ;;  %v1954_v51 = vpop.permute.xlu0 %1953 }
 0x71d   : > { %2492 = vmatmul.mubr.msk.f32.vlgmr.msra.gmra.mrb[8].mxu0 %vm1683_vm9, %v1940_v2  ;;  %2591 = vmatprep.subr.bf16.mxu0 %v2590_v0  ;;  %v2669_v2 = vld [vmem:[%s2817_s29 + $0x8] sm:$0xff] }
 0x71e   : > { %2104 = vmatprep.mubr.f32.mxu0 %v2684_v1  ;;  %2593 = vmatpush1.bf16.msra.mxu0 %v2592_v6 }
 0x71f   : > { %v2123_v27 = vpop.permute.xlu1 %2122 }
 0x720   : > { %v2118_v21 = vpop.permute.xlu0 %2117 }
 0x723   : > { %v2133_v40 = vpop.permute.xlu1 %2132 }
 0x724   : > { %v2128_v31 = vpop.permute.xlu0 %2127 }
 0x7f0   : > { %v2025_v57 = vpop.f32.mrb[8].mxu0 }
 0x7f1   : > { %v2026_v3 = vadd.f32 %v2025_v57, %v1954_v51  ;;  %v2493_v5 = vpop.f32.mrb[9].mxu0  ;;  %v2670_v57 = vld [vmem:[%s2817_s29 + $0x10] sm:$0xff] }
 0x7f2   : > { %v2671_v5 = vld [vmem:[%s2817_s29 + $0x18] sm:$0xff] }
 0x7f3   : > { %2384 = vmatmul.mubr.msk.f32.vlgmr.msra.gmra.mrb[2].mxu0 %vm3548_vm0, %v2026_v3 }
 0x8c6   : > { %v2106_v8 = vpop.f32.mrb[2].mxu0 }
 0x8c7   : > { %v2108_v12 = vpop.f32.mrb[3].mxu0  ;;  %v2594_v14 = vadd.f32 %v2106_v8, %v617_v11 }
 0x8c8   : > { %v2595_v10 = vadd.f32 %v2108_v12, %v617_v11 }
 0x8ca   : > { %2147 = vmatprep.subr.mxu1 %v2595_v10  ;;  %v2672_v10 = vld [vmem:[%s2817_s29 + $0x20] sm:$0xff] }
 0x8cb   : > { %2148 = vmatpush1.msra.mxu1 %v2594_v14 }
 0x8cc   : > { %2385 = vmatmul.mubr.msk.f32.vlgmr.msra.gmra.mrb[2].mxu1 %vm3549_vm14, %v2033_v15  ;;  %v2673_v15 = vld [vmem:[%s2817_s29 + $0x28] sm:$0xff] }
 0x8cd   : > { %2217 = vmatprep.mubr.f32.mxu1 %v2684_v1 }
 0x8d0   : > { %2386 = vmatmul.mubr.msk.f32.gmra.mrb[4].mxu1 %vm3550_vm8, %v2034_v18 }
 0x8d1   : > { %2223 = vmatprep.mubr.f32.mxu1 %v2684_v1 }
 0x8d4   : > { %2387 = vmatmul.mubr.msk.f32.gmra.mrb[6].mxu1 %vm3551_vm12, %v2035_v19 }
 0x8d5   : > { %2229 = vmatprep.mubr.f32.mxu1 %v2684_v1 }
 0x8d8   : > { %2388 = vmatmul.mubr.msk.f32.gmra.mrb[8].mxu1 %vm3552_vm2, %v2036_v20  ;;  %v2674_v20 = vld [vmem:[%s2817_s29 + $0x30] sm:$0xff] }
 0x99f   : > { %v2213_v23 = vpop.f32.mrb[2].mxu1 }
 0x9a0   : > { %v2214_v9 = vadd.f32 %v2213_v23, %v2118_v21  ;;  %v2215_v16 = vpop.f32.mrb[3].mxu1 }
 0x9a1   : > { %v2216_v25 = vadd.f32 %v2215_v16, %v2118_v21 }
 0x9a2   : > { %v2389_v26 = vmul.f32 -1.442695, %v2214_v9  ;;  %v2675_v9 = vld [vmem:[%s2817_s29 + $0x38] sm:$0xff] }
 0x9a3   : > { %v2390_v29 = vmul.f32 -1.442695, %v2216_v25  ;;  %v2219_v30 = vpop.f32.mrb[4].mxu1 }
 0x9a4   : > { %2636 = vpow2.f32 %v2389_v26  ;;  %v2220_v13 = vadd.f32 %v2219_v30, %v2123_v27  ;;  %v2221_v28 = vpop.f32.mrb[5].mxu1 }
 0x9a5   : > { %2638 = vpow2.f32 %v2390_v29  ;;  %v2222_v1 = vadd.f32 %v2221_v28, %v2123_v27 }
 0x9a6   : > { %v2391_v32 = vmul.f32 -1.442695, %v2220_v13 }
 0x9a7   : > { %v2392_v35 = vmul.f32 -1.442695, %v2222_v1  ;;  %v2225_v36 = vpop.f32.mrb[6].mxu1 }
 0x9a8   : > { %2640 = vpow2.f32 %v2391_v32  ;;  %v2226_v37 = vadd.f32 %v2225_v36, %v2128_v31  ;;  %v2227_v33 = vpop.f32.mrb[7].mxu1 }
 0x9a9   : > { %2642 = vpow2.f32 %v2392_v35  ;;  %v2228_v39 = vadd.f32 %v2227_v33, %v2128_v31 }
 0x9aa   : > { %v2393_v34 = vmul.f32 -1.442695, %v2226_v37 }
 0x9ab   : > { %v2394_v41 = vmul.f32 -1.442695, %v2228_v39  ;;  %v2231_v42 = vpop.f32.mrb[8].mxu1 }
 0x9ac   : > { %2644 = vpow2.f32 %v2393_v34  ;;  %v2232_v43 = vadd.f32 %v2231_v42, %v2133_v40  ;;  %v2233_v45 = vpop.f32.mrb[9].mxu1 }
 0x9ad   : > { %2646 = vpow2.f32 %v2394_v41  ;;  %v2234_v46 = vadd.f32 %v2233_v45, %v2133_v40 }
 0x9ae   : > { %v2637_v47 = vpop.eup %2636  ;;  %v2395_v48 = vmul.f32 -1.442695, %v2232_v43 }
 0x9af   : > { %v2639_v38 = vpop.eup %2638  ;;  %v2260_v44 = vadd.f32 1.0, %v2637_v47  ;;  %v2396_v22 = vmul.f32 -1.442695, %v2234_v46 }
 0x9b0   : > { %v2261_v24 = vadd.f32 1.0, %v2639_v38  ;;  %2648 = vpow2.f32 %v2395_v48 }
 0x9b1   : > { %2650 = vrcp.f32 %v2260_v44 }
 0x9b2   : > { %v2641_v50 = vpop.eup %2640  ;;  %2652 = vrcp.f32 %v2261_v24 }
 0x9b3   : > { %v2643_v52 = vpop.eup %2642  ;;  %v2262_v54 = vadd.f32 1.0, %v2641_v50  ;;  %2654 = vpow2.f32 %v2396_v22 }
 0x9b4   : > { %v2263_v55 = vadd.f32 1.0, %v2643_v52 }
 0x9b5   : > { %2656 = vrcp.f32 %v2262_v54 }
 0x9b6   : > { %v2645_v56 = vpop.eup %2644  ;;  %2658 = vrcp.f32 %v2263_v55 }
 0x9b7   : > { %v2647_v49 = vpop.eup %2646  ;;  %v2264_v7 = vadd.f32 1.0, %v2645_v56 }
 0x9b8   : > { %v2265_v58 = vadd.f32 1.0, %v2647_v49 }
 0x9b9   : > { %2660 = vrcp.f32 %v2264_v7 }
 0x9ba   : > { %v2649_v59 = vpop.eup %2648  ;;  %2662 = vrcp.f32 %v2265_v58 }
 0x9bb   : > { %v2651_v60 = vpop.eup %2650  ;;  %v2266_v61 = vadd.f32 1.0, %v2649_v59 }
 0x9bc   : > { %v2653_v62 = vpop.eup %2652  ;;  %v2284_v63 = vmul.f32 %v2668_v53, %v2651_v60 }
 0x9bd   : > { %v2655_v0 = vpop.eup %2654  ;;  %v2285_v17 = vmul.f32 %v2669_v2, %v2653_v62  ;;  %2664 = vrcp.f32 %v2266_v61 }
 0x9be   : > { %2292 = vst [vmem:[%s3458_s25] sm:$0xff] %v2284_v63  ;;  %v2267_v4 = vadd.f32 1.0, %v2655_v0 }
 0x9bf   : > { %v2657_v6 = vpop.eup %2656  ;;  %2293 = vst [vmem:[%s3458_s25 + $0x8] sm:$0xff] %v2285_v17 }
 0x9c0   : > { %v2659_v51 = vpop.eup %2658  ;;  %v2286_v3 = vmul.f32 %v2670_v57, %v2657_v6  ;;  %2666 = vrcp.f32 %v2267_v4 }
 0x9c1   : > { %v2287_v8 = vmul.f32 %v2671_v5, %v2659_v51 }
 0x9c2   : > { %2294 = vst [vmem:[%s3458_s25 + $0x10] sm:$0xff] %v2286_v3 }
 0x9c3   : > { %v2661_v11 = vpop.eup %2660  ;;  %2295 = vst [vmem:[%s3458_s25 + $0x18] sm:$0xff] %v2287_v8 }
 0x9c4   : > { %v2663_v12 = vpop.eup %2662  ;;  %v2288_v14 = vmul.f32 %v2672_v10, %v2661_v11 }
 0x9c5   : > { %v2289_v18 = vmul.f32 %v2673_v15, %v2663_v12 }
 0x9c6   : > { %2296 = vst [vmem:[%s3458_s25 + $0x20] sm:$0xff] %v2288_v14 }
 0x9c7   : > { %v2665_v19 = vpop.eup %2664  ;;  %2297 = vst [vmem:[%s3458_s25 + $0x28] sm:$0xff] %v2289_v18 }
 0x9c8   : > { %v2290_v21 = vmul.f32 %v2674_v20, %v2665_v19 }
 0x9ca   : > { %v2667_v23 = vpop.eup %2666  ;;  %2298 = vst [vmem:[%s3458_s25 + $0x30] sm:$0xff] %v2290_v21 }
 0x9cb   : > { %v2291_v16 = vmul.f32 %v2675_v9, %v2667_v23 }
 0x9cd   : > { %2299 = vst [vmem:[%s3458_s25 + $0x38] sm:$0xff] %v2291_v16 }
 0x9ce PF: > { %s26_s21 = sadd.s32 1, %s2682_s21  }
 0x9cf   : > { %p23_p4 = scmp.ge.s32.totalorder %s26_s21, 4  }
 0x9d1   :  { %25 = sbr.rel (!%p23_p4) target bundleno = 2 (0x2), region = 114 }

</bundles_post_ra>
